<compile_context>
chip_gen: v6e
topology: v6e:2x2x1
jax: 0.10.0
libtpu: 0.0.40
codegen_flags: <defaults>
</compile_context>

<pallas_src>
import math
import functools

import numpy as np
import jax
import jax.numpy as jnp
from jax.experimental import pallas as pl
from jax.experimental.pallas import tpu as pltpu

# ----------------------------- configuration --------------------------------
NTOKENS_POSE = 4          # ntokens_pose (sequence length per clip)
BATCH_CLIPS = 2           # number of clips -> N = BATCH_CLIPS * NTOKENS_POSE frames
D_MODEL = 32              # transformer_d_model
NHEAD = 4                 # transformer_nhead
DIM_FF = 64               # transformer_dim_feedforward
NUM_LAYERS_POSE = 2       # transformer_num_encoder_layers_pose
NUM_JOINTS = 21           # is_single_hand=True
IMG_H = IMG_W = 16
C_IN = 3
C_MID = 16
TRANS_FACTOR = 100.0
SCALE_FACTOR = 1e-4
LAMBDA_HAND_2D = 1.0
LAMBDA_HAND_Z = 1.0
LN_EPS = 1e-5
PAD_OUT = 128             # lane-dense padded width for the num_joints*3 = 63 pose vector
N_FRAMES = BATCH_CLIPS * NTOKENS_POSE   # 8 == one sublane tile

# ---- param slab layout (all row offsets are multiples of 8) ----------------
BB_CONV = 0               # rows 0..31 : block-diag 1x1 conv (32, 8) lanes 0:8, bias lane 8
BB_LIN = 32               # rows 32..63: stacked feature linear (32, D) lanes 0:D
BB_LINB = 64              # row 64     : summed linear bias (1, D)
ENC_OFF = 72
ENC_STRIDE = 136          # per encoder layer (multiple of 8)
L_W = 0                   # rows +0..31 : [Wq|Wk|Wv|Wo]  (Wq pre-scaled by 1/sqrt(dh))
L_FW1 = 32                # rows +32..63: fw1 (D, F) lanes 0:F
L_FW2 = 64                # rows +64..127: fw2 (F, D) lanes 0:D
L_BIAS = 128              # row  +128   : [bq|bk|bv|bo]  (bq pre-scaled)
L_FB = 129                # row  +129   : [fb1(0:F) | fb2(F:F+D)]
L_LN = 130                # row  +130   : [ln1g|ln1b|ln2g|ln2b]
HEAD_OFF = ENC_OFF + NUM_LAYERS_POSE * ENC_STRIDE   # 344
H_W12 = 0                 # rows +0..31 : [mw1(0:D) | mw2(D:2D)]
H_W3 = 32                 # rows +32..63: mw3 (D, 128) (lanes >= 63 zero)
H_VEC = 64                # row  +64    : [lng|lnb|mb1|mb2]
H_B3 = 65                 # row  +65    : mb3 (1, 128)
PARAM_ROWS = HEAD_OFF + 72                          # 416

# ---- data slab layout (each block is N_FRAMES = 8 rows) --------------------
D_GT25 = 0                # gt joints abs-2.5d, flat (N, 128)
D_GT3 = 8                 # gt joints 3d, flat
D_CXY = 16                # cx on x lanes, cy on y lanes, 0 elsewhere
D_FOC = 24                # fx on x lanes, fy on y lanes, 1 elsewhere
D_ISXY = 32               # 1.0 on valid x/y lanes
D_ISZ = 40                # 1.0 on valid z lanes
D_VALID = 48              # 1.0 on lanes < num_joints*3
D_PE = 56                 # positional encoding (lanes 0:D)
D_BIAS = 64               # additive attention bias (lanes 0:N): 0 / -1e9
D_W = 72                  # not_padding weight replicated across lanes
DATA_ROWS = 80


# ------------------------------- fused kernel --------------------------------
def _temporal_net_kernel(img_ref, p_ref, d_ref,
                         rep25d_ref, rep3d_ref, loss_ref,
                         *, nhead, d_model, dim_ff, num_layers, num_joints,
                         trans_factor, scale_factor, lambda_2d, lambda_z):
  f32 = jnp.float32
  n, pad_out = rep25d_ref.shape
  dh = d_model // nhead
  nhw = img_ref.shape[1]

  # ---------------- fused backbones: block-diag 1x1 conv + ReLU + avg pool + linear ----------
  conv_w = p_ref[BB_CONV:BB_CONV + 2 * C_MID, 0:8]          # (32, 8) block-diag, padded cols 0
  conv_b = p_ref[BB_CONV:BB_CONV + 2 * C_MID, 8:9]          # (32, 1)
  n_chunks = 2 if nhw % 256 == 0 and nhw >= 2048 else 1     # cap the (32, nhw) live range
  ck = nhw // n_chunks
  pooled = jnp.zeros((n, 2 * C_MID), f32)
  for c in range(n_chunks):
    imgs_c = img_ref[0:n, c * ck:(c + 1) * ck]              # stacked images (8, ck)
    pool_c = img_ref[n:2 * n, c * ck:(c + 1) * ck]          # pooling operator (8, ck)
    h_c = jnp.maximum(jnp.dot(conv_w, imgs_c, preferred_element_type=f32) + conv_b, 0.0)
    # per-frame global average pool as an MXU contraction over the lane axis (A @ B^T form).
    pooled = pooled + jnp.einsum('nr,cr->nc', pool_c, h_c, preferred_element_type=f32)
  lin_w = p_ref[BB_LIN:BB_LIN + 2 * C_MID, 0:d_model]       # stacked (bw2; tw2): branch add
  lin_b = p_ref[BB_LINB:BB_LINB + 1, 0:d_model]             # bb2 + tb2
  src = jnp.dot(pooled, lin_w, preferred_element_type=f32) + lin_b            # (N, D)

  pe = d_ref[D_PE:D_PE + n, 0:d_model]                      # (N, D)
  attn_bias = d_ref[D_BIAS:D_BIAS + n, 0:n]                 # (N, N) 0 / -1e9

  def layer_norm(x, g, b):
    mu = jnp.mean(x, axis=-1, keepdims=True)
    xc = x - mu
    var = jnp.mean(xc * xc, axis=-1, keepdims=True)
    return xc * jax.lax.rsqrt(var + LN_EPS) * g + b

  # ---------------- pre-norm transformer encoder (statically unrolled layers) ----------------
  for l in range(num_layers):
    base = ENC_OFF + l * ENC_STRIDE
    ln_row = p_ref[base + L_LN:base + L_LN + 1, :]
    b_row = p_ref[base + L_BIAS:base + L_BIAS + 1, :]

    # --- self-attention block (dropout = 0) ---
    s2 = layer_norm(src, ln_row[:, 0:d_model], ln_row[:, d_model:2 * d_model])
    qk_in = s2 + pe                                         # PE added to q, k only
    w_qk = p_ref[base + L_W:base + L_W + d_model, 0:2 * d_model]
    w_v = p_ref[base + L_W:base + L_W + d_model, 2 * d_model:3 * d_model]
    w_o = p_ref[base + L_W:base + L_W + d_model, 3 * d_model:4 * d_model]
    # fused Q|K projection; 1/sqrt(dh) already folded into Wq/bq at pack time.
    qk = jnp.dot(qk_in, w_qk, preferred_element_type=f32) + b_row[:, 0:2 * d_model]
    v = jnp.dot(s2, w_v, preferred_element_type=f32) + b_row[:, 2 * d_model:3 * d_model]

    ctx_heads = []
    for hh in range(nhead):                                 # static heads, 8-lane slices
      qs = slice(hh * dh, (hh + 1) * dh)
      ks = slice(d_model + hh * dh, d_model + (hh + 1) * dh)
      logits = jnp.einsum('qd,kd->qk', qk[:, qs], qk[:, ks],
                          preferred_element_type=f32) + attn_bias
      logits = logits - jnp.max(logits, axis=-1, keepdims=True)
      pr = jnp.exp(logits)
      pr = pr * pl.reciprocal(jnp.sum(pr, axis=-1, keepdims=True), approx=True)
      ctx_heads.append(jnp.dot(pr, v[:, qs], preferred_element_type=f32))
    # one lane-concat + ONE output-projection matmul per layer (not nhead tiny matmuls).
    ctx = jnp.concatenate(ctx_heads, axis=1)                # (N, D)
    src = src + jnp.dot(ctx, w_o, preferred_element_type=f32) + b_row[:, 3 * d_model:4 * d_model]

    # --- feed-forward block (relu) ---
    s2 = layer_norm(src, ln_row[:, 2 * d_model:3 * d_model], ln_row[:, 3 * d_model:4 * d_model])
    fw1 = p_ref[base + L_FW1:base + L_FW1 + d_model, 0:dim_ff]
    fw2 = p_ref[base + L_FW2:base + L_FW2 + dim_ff, 0:d_model]
    fb_row = p_ref[base + L_FB:base + L_FB + 1, :]
    hmid = jnp.maximum(jnp.dot(s2, fw1, preferred_element_type=f32) + fb_row[:, 0:dim_ff], 0.0)
    src = src + jnp.dot(hmid, fw2, preferred_element_type=f32) + fb_row[:, dim_ff:dim_ff + d_model]

  # ---------------- final LayerNorm + image_to_hand_pose MLP (leakyrelu hidden) --------------
  hv = p_ref[HEAD_OFF + H_VEC:HEAD_OFF + H_VEC + 1, :]
  xh = layer_norm(src, hv[:, 0:d_model], hv[:, d_model:2 * d_model])
  mw1 = p_ref[HEAD_OFF + H_W12:HEAD_OFF + H_W12 + d_model, 0:d_model]
  mw2 = p_ref[HEAD_OFF + H_W12:HEAD_OFF + H_W12 + d_model, d_model:2 * d_model]
  mw3 = p_ref[HEAD_OFF + H_W3:HEAD_OFF + H_W3 + d_model, :]
  mb3 = p_ref[HEAD_OFF + H_B3:HEAD_OFF + H_B3 + 1, :]

  def lrelu(z):
    return jnp.where(z >= 0.0, z, 0.01 * z)

  h1 = lrelu(jnp.dot(xh, mw1, preferred_element_type=f32) + hv[:, 2 * d_model:3 * d_model])
  h2 = lrelu(jnp.dot(h1, mw2, preferred_element_type=f32) + hv[:, 3 * d_model:4 * d_model])
  hp = jnp.dot(h2, mw3, preferred_element_type=f32) + mb3             # (N, 128) lane-padded

  # ---------------- To25DBranch post-process + weighted-L2 losses (flat lane layout) ---------
  isxy = d_ref[D_ISXY:D_ISXY + n, :]
  isz_f = d_ref[D_ISZ:D_ISZ + n, :]
  valid_f = d_ref[D_VALID:D_VALID + n, :]
  is_z = isz_f > 0.5
  valid = valid_f > 0.5

  rep25d = jnp.where(valid,
                     jnp.where(is_z, hp * scale_factor + 0.4, hp * trans_factor),
                     0.0)

  # broadcast each joint's z (lane 3j+2) onto its x/y lanes with two XLU lane rotations
  # (shift k == pad_out-k rolls values toward LOWER lane indices, matching jnp.roll(x, -k)).
  zonly = jnp.where(is_z, rep25d, 0.0)
  zb = (zonly
        + pltpu.roll(zonly, pad_out - 1, axis=1)
        + pltpu.roll(zonly, pad_out - 2, axis=1))

  cxy = d_ref[D_CXY:D_CXY + n, :]
  foc = d_ref[D_FOC:D_FOC + n, :]
  # exact division for the back-projection (review correctness concern).
  rep3d = jnp.where(valid,
                    jnp.where(is_z, rep25d, (rep25d - cxy) * zb / foc),
                    0.0)

  rep25d_ref[...] = rep25d
  rep3d_ref[...] = rep3d

  gt25 = d_ref[D_GT25:D_GT25 + n, :]
  gt3 = d_ref[D_GT3:D_GT3 + n, :]
  w_b = d_ref[D_W:D_W + n, :]
  d25 = rep25d - gt25
  d3 = rep3d - gt3
  se25 = d25 * d25 * w_b
  se3 = d3 * d3 * w_b

  def wsum(x):                                              # full weighted reduction -> (1,1)
    return jnp.sum(jnp.sum(x, axis=1, keepdims=True), axis=0, keepdims=True)

  # exact division for the weight normalization (review correctness concern).
  inv_w = 1.0 / (jnp.sum(w_b[:, 0:1], axis=0, keepdims=True) + 1e-8)
  l2d = wsum(se25 * isxy) * inv_w * (1.0 / (2.0 * num_joints))
  lz = wsum(se25 * isz_f) * inv_w * (1.0 / float(num_joints))
  l3d = wsum(se3 * valid_f) * inv_w * (1.0 / (3.0 * num_joints))
  total = lambda_2d * l2d + lambda_z * lz                   # l3d reported, not optimized

  # lane-dense (1, 128) loss vector: [l2d, lz, l3d, total, 0, ...] -> one unmasked store.
  lane_id = jax.lax.broadcasted_iota(jnp.int32, (1, pad_out), 1)
  loss_ref[...] = (jnp.where(lane_id == 0, l2d, 0.0)
                   + jnp.where(lane_id == 1, lz, 0.0)
                   + jnp.where(lane_id == 2, l3d, 0.0)
                   + jnp.where(lane_id == 3, total, 0.0))


# ------------------------------ glue (plain JAX) ------------------------------
def sinusoidal_pe(seq_len, d_model):
  pos = jnp.arange(seq_len, dtype=jnp.float32)[:, None]
  i = jnp.arange(0, d_model, 2, dtype=jnp.float32)
  div = jnp.exp(-math.log(10000.0) * i / d_model)
  pe = jnp.zeros((seq_len, d_model), jnp.float32)
  pe = pe.at[:, 0::2].set(jnp.sin(pos * div))
  pe = pe.at[:, 1::2].set(jnp.cos(pos * div))
  return pe


def init_params(key):
  keys = jax.random.split(key, 40)
  ki = iter(keys)

  def dense(shape):
    return 0.02 * jax.random.normal(next(ki), shape, jnp.float32)

  def bb_params():
    return dict(w1=dense((C_MID, C_IN)), b1=jnp.zeros((C_MID, 1), jnp.float32),
                w2=dense((C_MID, D_MODEL)), b2=jnp.zeros((1, D_MODEL), jnp.float32))

  D, F = D_MODEL, DIM_FF
  layers = []
  for _ in range(NUM_LAYERS_POSE):
    layers.append(dict(
        wq=dense((D, D)), wk=dense((D, D)), wv=dense((D, D)), wo=dense((D, D)),
        bq=jnp.zeros((D,), jnp.float32), bk=jnp.zeros((D,), jnp.float32),
        bv=jnp.zeros((D,), jnp.float32), bo=jnp.zeros((D,), jnp.float32),
        ln1g=jnp.ones((D,), jnp.float32), ln1b=jnp.zeros((D,), jnp.float32),
        ln2g=jnp.ones((D,), jnp.float32), ln2b=jnp.zeros((D,), jnp.float32),
        fw1=dense((D, F)), fb1=jnp.zeros((F,), jnp.float32),
        fw2=dense((F, D)), fb2=jnp.zeros((D,), jnp.float32)))

  j3 = NUM_JOINTS * 3
  mlp = dict(w1=dense((D, D)), b1=jnp.zeros((D,), jnp.float32),
             w2=dense((D, D)), b2=jnp.zeros((D,), jnp.float32),
             w3=dense((D, j3)), b3=jnp.zeros((j3,), jnp.float32))

  return dict(backbone=bb_params(), backbone_t=bb_params(), encoder=layers,
              final_ln=dict(g=jnp.ones((D,), jnp.float32), b=jnp.zeros((D,), jnp.float32)),
              mlp=mlp)


def pack_params(params):
  """Pack all weights into one lane-dense (PARAM_ROWS, 128) f32 slab (done once)."""
  f32 = jnp.float32
  D, F, J3 = D_MODEL, DIM_FF, NUM_JOINTS * 3
  slab = jnp.zeros((PARAM_ROWS, PAD_OUT), f32)

  bb, bbt = params['backbone'], params['backbone_t']
  # fused block-diagonal 1x1 conv + stacked feature linear (branch add folded in)
  slab = slab.at[BB_CONV:BB_CONV + C_MID, 0:C_IN].set(bb['w1'])
  slab = slab.at[BB_CONV + C_MID:BB_CONV + 2 * C_MID, C_IN:2 * C_IN].set(bbt['w1'])
  slab = slab.at[BB_CONV:BB_CONV + C_MID, 8:9].set(bb['b1'])
  slab = slab.at[BB_CONV + C_MID:BB_CONV + 2 * C_MID, 8:9].set(bbt['b1'])
  slab = slab.at[BB_LIN:BB_LIN + C_MID, 0:D].set(bb['w2'])
  slab = slab.at[BB_LIN + C_MID:BB_LIN + 2 * C_MID, 0:D].set(bbt['w2'])
  slab = slab.at[BB_LINB, 0:D].set((bb['b2'] + bbt['b2'])[0])

  # encoder layers (Wq/bq pre-scaled by 1/sqrt(dh), review suggestion)
  scale = 1.0 / math.sqrt(D // NHEAD)
  for l, lp in enumerate(params['encoder']):
    base = ENC_OFF + l * ENC_STRIDE
    slab = slab.at[base:base + D, 0:D].set(lp['wq'] * scale)
    slab = slab.at[base:base + D, D:2 * D].set(lp['wk'])
    slab = slab.at[base:base + D, 2 * D:3 * D].set(lp['wv'])
    slab = slab.at[base:base + D, 3 * D:4 * D].set(lp['wo'])
    slab = slab.at[base + L_FW1:base + L_FW1 + D, 0:F].set(lp['fw1'])
    slab = slab.at[base + L_FW2:base + L_FW2 + F, 0:D].set(lp['fw2'])
    slab = slab.at[base + L_BIAS, 0:D].set(lp['bq'] * scale)
    slab = slab.at[base + L_BIAS, D:2 * D].set(lp['bk'])
    slab = slab.at[base + L_BIAS, 2 * D:3 * D].set(lp['bv'])
    slab = slab.at[base + L_BIAS, 3 * D:4 * D].set(lp['bo'])
    slab = slab.at[base + L_FB, 0:F].set(lp['fb1'])
    slab = slab.at[base + L_FB, F:F + D].set(lp['fb2'])
    slab = slab.at[base + L_LN, 0:D].set(lp['ln1g'])
    slab = slab.at[base + L_LN, D:2 * D].set(lp['ln1b'])
    slab = slab.at[base + L_LN, 2 * D:3 * D].set(lp['ln2g'])
    slab = slab.at[base + L_LN, 3 * D:4 * D].set(lp['ln2b'])

  fin, mlp = params['final_ln'], params['mlp']
  slab = slab.at[HEAD_OFF:HEAD_OFF + D, 0:D].set(mlp['w1'])
  slab = slab.at[HEAD_OFF:HEAD_OFF + D, D:2 * D].set(mlp['w2'])
  slab = slab.at[HEAD_OFF + H_W3:HEAD_OFF + H_W3 + D, 0:J3].set(mlp['w3'])
  slab = slab.at[HEAD_OFF + H_VEC, 0:D].set(fin['g'])
  slab = slab.at[HEAD_OFF + H_VEC, D:2 * D].set(fin['b'])
  slab = slab.at[HEAD_OFF + H_VEC, 2 * D:3 * D].set(mlp['b1'])
  slab = slab.at[HEAD_OFF + H_VEC, 3 * D:4 * D].set(mlp['b2'])
  slab = slab.at[HEAD_OFF + H_B3, 0:J3].set(mlp['b3'])
  return slab


def temporal_net_forward(param_slab, batch):
  f32 = jnp.float32
  images = batch['image']                  # (N, C, H, W)
  images_t = batch['image_t']
  not_padding = batch['not_padding'].astype(f32)             # (N,)
  camintr = batch['camintr']               # (N, 3, 3)
  gt3d = batch['joints3d']                 # (N, J, 3)
  gt25d = batch['jointsabs25d']            # (N, J, 3)

  n = images.shape[0]
  hw = IMG_H * IMG_W
  nhw = n * hw
  j3 = NUM_JOINTS * 3
  assert n == N_FRAMES == 8, "toy config assumes N == 8 frames (one sublane tile)"

  # ---- image slab: stacked channel-major images + pooling operator (layout plumbing only)
  x2 = jnp.transpose(images, (1, 0, 2, 3)).reshape(C_IN, nhw)
  x2t = jnp.transpose(images_t, (1, 0, 2, 3)).reshape(C_IN, nhw)
  x_stk = jnp.concatenate([x2, x2t], axis=0)                       # (6, N*H*W)
  x_stk = jnp.pad(x_stk, ((0, 8 - 2 * C_IN), (0, 0)))              # pad to 8 sublanes
  frame = np.repeat(np.arange(n), hw)
  pool_t = (frame[None, :] == np.arange(n)[:, None]).astype(np.float32) / float(hw)
  img_slab = jnp.concatenate([x_stk, jnp.asarray(pool_t)], axis=0)  # (16, N*H*W)

  # ---- lane-layout constants (host numpy -> constant-folded into the data slab) ----
  lane = np.arange(PAD_OUT)
  comp = lane % 3
  valid_m = (lane < j3).astype(np.float32)
  isx_m = valid_m * (comp == 0)
  isy_m = valid_m * (comp == 1)
  isz_m = valid_m * (comp == 2)
  isxy_m = isx_m + isy_m

  fx = camintr[:, 0, 0][:, None]
  fy = camintr[:, 1, 1][:, None]
  cx = camintr[:, 0, 2][:, None]
  cy = camintr[:, 1, 2][:, None]
  cxy_map = isx_m[None, :] * cx + isy_m[None, :] * cy              # (N, 128)
  foc_map = isx_m[None, :] * fx + isy_m[None, :] * fy + (1.0 - isxy_m)[None, :]

  gt25_flat = jnp.pad(gt25d.reshape(n, j3), ((0, 0), (0, PAD_OUT - j3)))
  gt3_flat = jnp.pad(gt3d.reshape(n, j3), ((0, 0), (0, PAD_OUT - j3)))

  # block-diagonal clip attention + key padding; batch_seq_pweights[:, 0] = 1.0
  wkeys = not_padding.reshape(-1, NTOKENS_POSE).at[:, 0].set(1.0).reshape(n)
  clip = np.arange(n) // NTOKENS_POSE
  same_clip = clip[:, None] == clip[None, :]
  attn_bias = jnp.where(jnp.asarray(same_clip) & (wkeys[None, :] > 0.5), 0.0, -1e9)
  attn_bias = jnp.pad(attn_bias, ((0, 0), (0, PAD_OUT - n)))

  pe = jnp.tile(sinusoidal_pe(NTOKENS_POSE, D_MODEL), (n // NTOKENS_POSE, 1))
  pe = jnp.pad(pe, ((0, 0), (0, PAD_OUT - D_MODEL)))

  w_b = jnp.broadcast_to(not_padding[:, None], (n, PAD_OUT))

  def rep(row):
    return jnp.broadcast_to(jnp.asarray(row, dtype=jnp.float32)[None, :], (n, PAD_OUT))

  data_slab = jnp.concatenate(
      [gt25_flat, gt3_flat, cxy_map, foc_map,
       rep(isxy_m), rep(isz_m), rep(valid_m),
       pe, attn_bias, w_b], axis=0).astype(f32)                    # (80, 128)

  kernel = functools.partial(
      _temporal_net_kernel, nhead=NHEAD, d_model=D_MODEL, dim_ff=DIM_FF,
      num_layers=NUM_LAYERS_POSE, num_joints=NUM_JOINTS,
      trans_factor=TRANS_FACTOR, scale_factor=SCALE_FACTOR,
      lambda_2d=LAMBDA_HAND_2D, lambda_z=LAMBDA_HAND_Z)

  out_shape = (jax.ShapeDtypeStruct((n, PAD_OUT), f32),   # rep25d (flat, lane-padded)
               jax.ShapeDtypeStruct((n, PAD_OUT), f32),   # rep3d  (flat, lane-padded)
               jax.ShapeDtypeStruct((1, PAD_OUT), f32))   # lanes 0..3: l2d, lz, l3d, total

  # single fused, gridless pallas_call; 3 packed inputs, 3 lane-dense outputs, all VMEM.
  rep25_flat, rep3_flat, loss_vec = pl.pallas_call(kernel, out_shape=out_shape)(
      img_slab, param_slab, data_slab)

  rep25 = rep25_flat[:, :j3].reshape(n, NUM_JOINTS, 3)
  rep3d = rep3_flat[:, :j3].reshape(n, NUM_JOINTS, 3)
  total_loss = loss_vec[0, 3:4]

  results = {'gt_joints3d': gt3d,
             'pred_joints3d': rep3d,
             'pred_joints2d': rep25[:, :, 0:2],
             'pred_jointsz': rep25[:, :, 2:3]}
  losses = {'recov_joints2d': loss_vec[0, 0],
            'recov_joints_absz': loss_vec[0, 1],
            'recov_joints3d': loss_vec[0, 2]}
  return total_loss, results, losses


# ----------------------------------- main -------------------------------------
if __name__ == "__main__":
  key = jax.random.PRNGKey(0)
  kp, kd = jax.random.split(key)
  params = init_params(kp)
  param_slab = pack_params(params)          # packed once, reused every step

  ks = jax.random.split(kd, 5)
  N = BATCH_CLIPS * NTOKENS_POSE
  images = jax.random.normal(ks[0], (N, C_IN, IMG_H, IMG_W), jnp.float32)
  images_t = jax.random.normal(ks[1], (N, C_IN, IMG_H, IMG_W), jnp.float32)
  not_padding = jnp.array([1, 1, 1, 0, 1, 1, 0, 0], jnp.int32)
  camintr = jnp.tile(jnp.array([[100., 0., 8.],
                                [0., 100., 8.],
                                [0., 0., 1.]], jnp.float32)[None], (N, 1, 1))
  joints3d = 0.1 * jax.random.normal(ks[2], (N, NUM_JOINTS, 3), jnp.float32)
  joints25d = jnp.concatenate(
      [8.0 + 2.0 * jax.random.normal(ks[3], (N, NUM_JOINTS, 2), jnp.float32),
       0.4 + 0.05 * jax.random.normal(ks[4], (N, NUM_JOINTS, 1), jnp.float32)],
      axis=-1)

  batch = dict(image=images, image_t=images_t, not_padding=not_padding,
               camintr=camintr, joints3d=joints3d, jointsabs25d=joints25d)

  fwd = jax.jit(temporal_net_forward)
  total_loss, results, losses = fwd(param_slab, batch)
  jax.block_until_ready((total_loss, results, losses))
  print("KERNEL_OK")
</pallas_src>

<mosaic_0001>
module attributes {stable_mosaic.version = 11 : i64} {
  func.func @_temporal_net_kernel(%arg0: memref<16x2048xf32, #tpu.memory_space<vmem>>, %arg1: memref<416x128xf32, #tpu.memory_space<vmem>>, %arg2: memref<80x128xf32, #tpu.memory_space<vmem>>, %arg3: memref<8x128xf32, #tpu.memory_space<vmem>>, %arg4: memref<8x128xf32, #tpu.memory_space<vmem>>, %arg5: memref<1x128xf32, #tpu.memory_space<vmem>>) attributes {dimension_semantics = [], scalar_prefetch = 0 : i64, scratch_operands = 0 : i64, tpu.core_type = #tpu.core_type<tc>} {
    %c0 = arith.constant 0 : index
    %c0_0 = arith.constant 0 : index
    %0 = vector.load %arg1[%c0, %c0_0] : memref<416x128xf32, #tpu.memory_space<vmem>>, vector<32x8xf32>
    %c0_1 = arith.constant 0 : index
    %c8 = arith.constant 8 : index
    %1 = vector.load %arg1[%c0_1, %c8] : memref<416x128xf32, #tpu.memory_space<vmem>>, vector<32x1xf32>
    %cst = arith.constant 0.000000e+00 : f32
    %2 = vector.broadcast %cst : f32 to vector<8x32xf32>
    %c0_2 = arith.constant 0 : index
    %c0_3 = arith.constant 0 : index
    %3 = vector.load %arg0[%c0_2, %c0_3] : memref<16x2048xf32, #tpu.memory_space<vmem>>, vector<8x1024xf32>
    %c8_4 = arith.constant 8 : index
    %c0_5 = arith.constant 0 : index
    %4 = vector.load %arg0[%c8_4, %c0_5] : memref<16x2048xf32, #tpu.memory_space<vmem>>, vector<8x1024xf32>
    %cst_6 = arith.constant dense<0.000000e+00> : vector<32x1024xf32>
    %5 = tpu.matmul %0, %3, %cst_6 {dimension_numbers = #tpu.dot_dimension_numbers<[1], [0], [0], [1], [0, 0, 1, 1], [], []>} : vector<32x8xf32>, vector<8x1024xf32>, vector<32x1024xf32> -> vector<32x1024xf32>
    %6 = vector.broadcast %1 : vector<32x1xf32> to vector<32x1024xf32>
    %7 = arith.addf %5, %6 : vector<32x1024xf32>
    %cst_7 = arith.constant 0.000000e+00 : f32
    %8 = vector.broadcast %cst_7 : f32 to vector<32x1024xf32>
    %9 = arith.maximumf %7, %8 : vector<32x1024xf32>
    "tpu.trace_start"() <{level = 10 : i32, message = "nr,cr->nc"}> : () -> ()
    %cst_8 = arith.constant dense<0.000000e+00> : vector<8x32xf32>
    %10 = tpu.matmul %4, %9, %cst_8 {dimension_numbers = #tpu.dot_dimension_numbers<[1], [1], [0], [0], [0, 0, 1, 0], [], []>} : vector<8x1024xf32>, vector<32x1024xf32>, vector<8x32xf32> -> vector<8x32xf32>
    "tpu.trace_stop"() : () -> ()
    %11 = arith.addf %2, %10 : vector<8x32xf32>
    %c0_9 = arith.constant 0 : index
    %c1024 = arith.constant 1024 : index
    %12 = vector.load %arg0[%c0_9, %c1024] : memref<16x2048xf32, #tpu.memory_space<vmem>>, vector<8x1024xf32>
    %c8_10 = arith.constant 8 : index
    %c1024_11 = arith.constant 1024 : index
    %13 = vector.load %arg0[%c8_10, %c1024_11] : memref<16x2048xf32, #tpu.memory_space<vmem>>, vector<8x1024xf32>
    %cst_12 = arith.constant dense<0.000000e+00> : vector<32x1024xf32>
    %14 = tpu.matmul %0, %12, %cst_12 {dimension_numbers = #tpu.dot_dimension_numbers<[1], [0], [0], [1], [0, 0, 1, 1], [], []>} : vector<32x8xf32>, vector<8x1024xf32>, vector<32x1024xf32> -> vector<32x1024xf32>
    %15 = vector.broadcast %1 : vector<32x1xf32> to vector<32x1024xf32>
    %16 = arith.addf %14, %15 : vector<32x1024xf32>
    %cst_13 = arith.constant 0.000000e+00 : f32
    %17 = vector.broadcast %cst_13 : f32 to vector<32x1024xf32>
    %18 = arith.maximumf %16, %17 : vector<32x1024xf32>
    "tpu.trace_start"() <{level = 10 : i32, message = "nr,cr->nc"}> : () -> ()
    %cst_14 = arith.constant dense<0.000000e+00> : vector<8x32xf32>
    %19 = tpu.matmul %13, %18, %cst_14 {dimension_numbers = #tpu.dot_dimension_numbers<[1], [1], [0], [0], [0, 0, 1, 0], [], []>} : vector<8x1024xf32>, vector<32x1024xf32>, vector<8x32xf32> -> vector<8x32xf32>
    "tpu.trace_stop"() : () -> ()
    %20 = arith.addf %11, %19 : vector<8x32xf32>
    %c32 = arith.constant 32 : index
    %c0_15 = arith.constant 0 : index
    %21 = vector.load %arg1[%c32, %c0_15] : memref<416x128xf32, #tpu.memory_space<vmem>>, vector<32x32xf32>
    %c64 = arith.constant 64 : index
    %c0_16 = arith.constant 0 : index
    %22 = vector.load %arg1[%c64, %c0_16] : memref<416x128xf32, #tpu.memory_space<vmem>>, vector<1x32xf32>
    %cst_17 = arith.constant dense<0.000000e+00> : vector<8x32xf32>
    %23 = tpu.matmul %20, %21, %cst_17 {dimension_numbers = #tpu.dot_dimension_numbers<[1], [0], [0], [1], [0, 0, 1, 1], [], []>} : vector<8x32xf32>, vector<32x32xf32>, vector<8x32xf32> -> vector<8x32xf32>
    %24 = vector.broadcast %22 : vector<1x32xf32> to vector<8x32xf32>
    %25 = arith.addf %23, %24 : vector<8x32xf32>
    %c56 = arith.constant 56 : index
    %c0_18 = arith.constant 0 : index
    %26 = vector.load %arg2[%c56, %c0_18] : memref<80x128xf32, #tpu.memory_space<vmem>>, vector<8x32xf32>
    %c64_19 = arith.constant 64 : index
    %c0_20 = arith.constant 0 : index
    %27 = vector.load %arg2[%c64_19, %c0_20] : memref<80x128xf32, #tpu.memory_space<vmem>>, vector<8x8xf32>
    %c202 = arith.constant 202 : index
    %c0_21 = arith.constant 0 : index
    %28 = vector.load %arg1[%c202, %c0_21] : memref<416x128xf32, #tpu.memory_space<vmem>>, vector<1x128xf32>
    %c200 = arith.constant 200 : index
    %c0_22 = arith.constant 0 : index
    %29 = vector.load %arg1[%c200, %c0_22] : memref<416x128xf32, #tpu.memory_space<vmem>>, vector<1x128xf32>
    %30 = vector.extract_strided_slice %28 {offsets = [0, 0], sizes = [1, 32], strides = [1, 1]} : vector<1x128xf32> to vector<1x32xf32>
    %31 = vector.extract_strided_slice %28 {offsets = [0, 32], sizes = [1, 32], strides = [1, 1]} : vector<1x128xf32> to vector<1x32xf32>
    %cst_23 = arith.constant dense<0.000000e+00> : vector<8xf32>
    %32 = vector.multi_reduction <add>, %25, %cst_23 [1] : vector<8x32xf32> to vector<8xf32>
    %33 = vector.shape_cast %32 : vector<8xf32> to vector<8x1xf32>
    %cst_24 = arith.constant 3.200000e+01 : f32
    %34 = vector.broadcast %cst_24 : f32 to vector<8x1xf32>
    %35 = arith.divf %33, %34 : vector<8x1xf32>
    %36 = vector.broadcast %35 : vector<8x1xf32> to vector<8x32xf32>
    %37 = arith.subf %25, %36 : vector<8x32xf32>
    %38 = arith.mulf %37, %37 : vector<8x32xf32>
    %cst_25 = arith.constant dense<0.000000e+00> : vector<8xf32>
    %39 = vector.multi_reduction <add>, %38, %cst_25 [1] : vector<8x32xf32> to vector<8xf32>
    %40 = vector.shape_cast %39 : vector<8xf32> to vector<8x1xf32>
    %cst_26 = arith.constant 3.200000e+01 : f32
    %41 = vector.broadcast %cst_26 : f32 to vector<8x1xf32>
    %42 = arith.divf %40, %41 : vector<8x1xf32>
    %cst_27 = arith.constant 9.99999974E-6 : f32
    %43 = vector.broadcast %cst_27 : f32 to vector<8x1xf32>
    %44 = arith.addf %42, %43 : vector<8x1xf32>
    %45 = math.rsqrt %44 : vector<8x1xf32>
    %46 = vector.broadcast %45 : vector<8x1xf32> to vector<8x32xf32>
    %47 = arith.mulf %37, %46 : vector<8x32xf32>
    %48 = vector.broadcast %30 : vector<1x32xf32> to vector<8x32xf32>
    %49 = arith.mulf %47, %48 : vector<8x32xf32>
    %50 = vector.broadcast %31 : vector<1x32xf32> to vector<8x32xf32>
    %51 = arith.addf %49, %50 : vector<8x32xf32>
    %52 = arith.addf %51, %26 : vector<8x32xf32>
    %c72 = arith.constant 72 : index
    %c0_28 = arith.constant 0 : index
    %53 = vector.load %arg1[%c72, %c0_28] : memref<416x128xf32, #tpu.memory_space<vmem>>, vector<32x64xf32>
    %c72_29 = arith.constant 72 : index
    %c64_30 = arith.constant 64 : index
    %54 = vector.load %arg1[%c72_29, %c64_30] : memref<416x128xf32, #tpu.memory_space<vmem>>, vector<32x32xf32>
    %c72_31 = arith.constant 72 : index
    %c96 = arith.constant 96 : index
    %55 = vector.load %arg1[%c72_31, %c96] : memref<416x128xf32, #tpu.memory_space<vmem>>, vector<32x32xf32>
    %cst_32 = arith.constant dense<0.000000e+00> : vector<8x64xf32>
    %56 = tpu.matmul %52, %53, %cst_32 {dimension_numbers = #tpu.dot_dimension_numbers<[1], [0], [0], [1], [0, 0, 1, 1], [], []>} : vector<8x32xf32>, vector<32x64xf32>, vector<8x64xf32> -> vector<8x64xf32>
    %57 = vector.extract_strided_slice %29 {offsets = [0, 0], sizes = [1, 64], strides = [1, 1]} : vector<1x128xf32> to vector<1x64xf32>
    %58 = vector.broadcast %57 : vector<1x64xf32> to vector<8x64xf32>
    %59 = arith.addf %56, %58 : vector<8x64xf32>
    %cst_33 = arith.constant dense<0.000000e+00> : vector<8x32xf32>
    %60 = tpu.matmul %51, %54, %cst_33 {dimension_numbers = #tpu.dot_dimension_numbers<[1], [0], [0], [1], [0, 0, 1, 1], [], []>} : vector<8x32xf32>, vector<32x32xf32>, vector<8x32xf32> -> vector<8x32xf32>
    %61 = vector.extract_strided_slice %29 {offsets = [0, 64], sizes = [1, 32], strides = [1, 1]} : vector<1x128xf32> to vector<1x32xf32>
    %62 = vector.broadcast %61 : vector<1x32xf32> to vector<8x32xf32>
    %63 = arith.addf %60, %62 : vector<8x32xf32>
    %64 = vector.extract_strided_slice %59 {offsets = [0, 0], sizes = [8, 8], strides = [1, 1]} : vector<8x64xf32> to vector<8x8xf32>
    %65 = vector.extract_strided_slice %59 {offsets = [0, 32], sizes = [8, 8], strides = [1, 1]} : vector<8x64xf32> to vector<8x8xf32>
    "tpu.trace_start"() <{level = 10 : i32, message = "qd,kd->qk"}> : () -> ()
    %cst_34 = arith.constant dense<0.000000e+00> : vector<8x8xf32>
    %66 = tpu.matmul %64, %65, %cst_34 {dimension_numbers = #tpu.dot_dimension_numbers<[1], [1], [0], [0], [0, 0, 1, 0], [], []>} : vector<8x8xf32>, vector<8x8xf32>, vector<8x8xf32> -> vector<8x8xf32>
    "tpu.trace_stop"() : () -> ()
    %67 = arith.addf %66, %27 : vector<8x8xf32>
    %cst_35 = arith.constant dense<0xFF800000> : vector<8xf32>
    %68 = vector.multi_reduction <maximumf>, %67, %cst_35 [1] : vector<8x8xf32> to vector<8xf32>
    %69 = vector.shape_cast %68 : vector<8xf32> to vector<8x1xf32>
    %70 = vector.broadcast %69 : vector<8x1xf32> to vector<8x8xf32>
    %71 = arith.subf %67, %70 : vector<8x8xf32>
    %72 = math.exp %71 : vector<8x8xf32>
    %cst_36 = arith.constant dense<0.000000e+00> : vector<8xf32>
    %73 = vector.multi_reduction <add>, %72, %cst_36 [1] : vector<8x8xf32> to vector<8xf32>
    %74 = vector.shape_cast %73 : vector<8xf32> to vector<8x1xf32>
    %75 = tpu.reciprocal %74 {approx = true} : vector<8x1xf32> -> vector<8x1xf32>
    %76 = vector.broadcast %75 : vector<8x1xf32> to vector<8x8xf32>
    %77 = arith.mulf %72, %76 : vector<8x8xf32>
    %78 = vector.extract_strided_slice %63 {offsets = [0, 0], sizes = [8, 8], strides = [1, 1]} : vector<8x32xf32> to vector<8x8xf32>
    %cst_37 = arith.constant dense<0.000000e+00> : vector<8x8xf32>
    %79 = tpu.matmul %77, %78, %cst_37 {dimension_numbers = #tpu.dot_dimension_numbers<[1], [0], [0], [1], [0, 0, 1, 1], [], []>} : vector<8x8xf32>, vector<8x8xf32>, vector<8x8xf32> -> vector<8x8xf32>
    %80 = vector.extract_strided_slice %59 {offsets = [0, 8], sizes = [8, 8], strides = [1, 1]} : vector<8x64xf32> to vector<8x8xf32>
    %81 = vector.extract_strided_slice %59 {offsets = [0, 40], sizes = [8, 8], strides = [1, 1]} : vector<8x64xf32> to vector<8x8xf32>
    "tpu.trace_start"() <{level = 10 : i32, message = "qd,kd->qk"}> : () -> ()
    %cst_38 = arith.constant dense<0.000000e+00> : vector<8x8xf32>
    %82 = tpu.matmul %80, %81, %cst_38 {dimension_numbers = #tpu.dot_dimension_numbers<[1], [1], [0], [0], [0, 0, 1, 0], [], []>} : vector<8x8xf32>, vector<8x8xf32>, vector<8x8xf32> -> vector<8x8xf32>
    "tpu.trace_stop"() : () -> ()
    %83 = arith.addf %82, %27 : vector<8x8xf32>
    %cst_39 = arith.constant dense<0xFF800000> : vector<8xf32>
    %84 = vector.multi_reduction <maximumf>, %83, %cst_39 [1] : vector<8x8xf32> to vector<8xf32>
    %85 = vector.shape_cast %84 : vector<8xf32> to vector<8x1xf32>
    %86 = vector.broadcast %85 : vector<8x1xf32> to vector<8x8xf32>
    %87 = arith.subf %83, %86 : vector<8x8xf32>
    %88 = math.exp %87 : vector<8x8xf32>
    %cst_40 = arith.constant dense<0.000000e+00> : vector<8xf32>
    %89 = vector.multi_reduction <add>, %88, %cst_40 [1] : vector<8x8xf32> to vector<8xf32>
    %90 = vector.shape_cast %89 : vector<8xf32> to vector<8x1xf32>
    %91 = tpu.reciprocal %90 {approx = true} : vector<8x1xf32> -> vector<8x1xf32>
    %92 = vector.broadcast %91 : vector<8x1xf32> to vector<8x8xf32>
    %93 = arith.mulf %88, %92 : vector<8x8xf32>
    %94 = vector.extract_strided_slice %63 {offsets = [0, 8], sizes = [8, 8], strides = [1, 1]} : vector<8x32xf32> to vector<8x8xf32>
    %cst_41 = arith.constant dense<0.000000e+00> : vector<8x8xf32>
    %95 = tpu.matmul %93, %94, %cst_41 {dimension_numbers = #tpu.dot_dimension_numbers<[1], [0], [0], [1], [0, 0, 1, 1], [], []>} : vector<8x8xf32>, vector<8x8xf32>, vector<8x8xf32> -> vector<8x8xf32>
    %96 = vector.extract_strided_slice %59 {offsets = [0, 16], sizes = [8, 8], strides = [1, 1]} : vector<8x64xf32> to vector<8x8xf32>
    %97 = vector.extract_strided_slice %59 {offsets = [0, 48], sizes = [8, 8], strides = [1, 1]} : vector<8x64xf32> to vector<8x8xf32>
    "tpu.trace_start"() <{level = 10 : i32, message = "qd,kd->qk"}> : () -> ()
    %cst_42 = arith.constant dense<0.000000e+00> : vector<8x8xf32>
    %98 = tpu.matmul %96, %97, %cst_42 {dimension_numbers = #tpu.dot_dimension_numbers<[1], [1], [0], [0], [0, 0, 1, 0], [], []>} : vector<8x8xf32>, vector<8x8xf32>, vector<8x8xf32> -> vector<8x8xf32>
    "tpu.trace_stop"() : () -> ()
    %99 = arith.addf %98, %27 : vector<8x8xf32>
    %cst_43 = arith.constant dense<0xFF800000> : vector<8xf32>
    %100 = vector.multi_reduction <maximumf>, %99, %cst_43 [1] : vector<8x8xf32> to vector<8xf32>
    %101 = vector.shape_cast %100 : vector<8xf32> to vector<8x1xf32>
    %102 = vector.broadcast %101 : vector<8x1xf32> to vector<8x8xf32>
    %103 = arith.subf %99, %102 : vector<8x8xf32>
    %104 = math.exp %103 : vector<8x8xf32>
    %cst_44 = arith.constant dense<0.000000e+00> : vector<8xf32>
    %105 = vector.multi_reduction <add>, %104, %cst_44 [1] : vector<8x8xf32> to vector<8xf32>
    %106 = vector.shape_cast %105 : vector<8xf32> to vector<8x1xf32>
    %107 = tpu.reciprocal %106 {approx = true} : vector<8x1xf32> -> vector<8x1xf32>
    %108 = vector.broadcast %107 : vector<8x1xf32> to vector<8x8xf32>
    %109 = arith.mulf %104, %108 : vector<8x8xf32>
    %110 = vector.extract_strided_slice %63 {offsets = [0, 16], sizes = [8, 8], strides = [1, 1]} : vector<8x32xf32> to vector<8x8xf32>
    %cst_45 = arith.constant dense<0.000000e+00> : vector<8x8xf32>
    %111 = tpu.matmul %109, %110, %cst_45 {dimension_numbers = #tpu.dot_dimension_numbers<[1], [0], [0], [1], [0, 0, 1, 1], [], []>} : vector<8x8xf32>, vector<8x8xf32>, vector<8x8xf32> -> vector<8x8xf32>
    %112 = vector.extract_strided_slice %59 {offsets = [0, 24], sizes = [8, 8], strides = [1, 1]} : vector<8x64xf32> to vector<8x8xf32>
    %113 = vector.extract_strided_slice %59 {offsets = [0, 56], sizes = [8, 8], strides = [1, 1]} : vector<8x64xf32> to vector<8x8xf32>
    "tpu.trace_start"() <{level = 10 : i32, message = "qd,kd->qk"}> : () -> ()
    %cst_46 = arith.constant dense<0.000000e+00> : vector<8x8xf32>
    %114 = tpu.matmul %112, %113, %cst_46 {dimension_numbers = #tpu.dot_dimension_numbers<[1], [1], [0], [0], [0, 0, 1, 0], [], []>} : vector<8x8xf32>, vector<8x8xf32>, vector<8x8xf32> -> vector<8x8xf32>
    "tpu.trace_stop"() : () -> ()
    %115 = arith.addf %114, %27 : vector<8x8xf32>
    %cst_47 = arith.constant dense<0xFF800000> : vector<8xf32>
    %116 = vector.multi_reduction <maximumf>, %115, %cst_47 [1] : vector<8x8xf32> to vector<8xf32>
    %117 = vector.shape_cast %116 : vector<8xf32> to vector<8x1xf32>
    %118 = vector.broadcast %117 : vector<8x1xf32> to vector<8x8xf32>
    %119 = arith.subf %115, %118 : vector<8x8xf32>
    %120 = math.exp %119 : vector<8x8xf32>
    %cst_48 = arith.constant dense<0.000000e+00> : vector<8xf32>
    %121 = vector.multi_reduction <add>, %120, %cst_48 [1] : vector<8x8xf32> to vector<8xf32>
    %122 = vector.shape_cast %121 : vector<8xf32> to vector<8x1xf32>
    %123 = tpu.reciprocal %122 {approx = true} : vector<8x1xf32> -> vector<8x1xf32>
    %124 = vector.broadcast %123 : vector<8x1xf32> to vector<8x8xf32>
    %125 = arith.mulf %120, %124 : vector<8x8xf32>
    %126 = vector.extract_strided_slice %63 {offsets = [0, 24], sizes = [8, 8], strides = [1, 1]} : vector<8x32xf32> to vector<8x8xf32>
    %cst_49 = arith.constant dense<0.000000e+00> : vector<8x8xf32>
    %127 = tpu.matmul %125, %126, %cst_49 {dimension_numbers = #tpu.dot_dimension_numbers<[1], [0], [0], [1], [0, 0, 1, 1], [], []>} : vector<8x8xf32>, vector<8x8xf32>, vector<8x8xf32> -> vector<8x8xf32>
    %128 = tpu.concatenate %79, %95, %111, %127 in 1 : vector<8x8xf32>, vector<8x8xf32>, vector<8x8xf32>, vector<8x8xf32> -> vector<8x32xf32>
    %cst_50 = arith.constant dense<0.000000e+00> : vector<8x32xf32>
    %129 = tpu.matmul %128, %55, %cst_50 {dimension_numbers = #tpu.dot_dimension_numbers<[1], [0], [0], [1], [0, 0, 1, 1], [], []>} : vector<8x32xf32>, vector<32x32xf32>, vector<8x32xf32> -> vector<8x32xf32>
    %130 = arith.addf %25, %129 : vector<8x32xf32>
    %131 = vector.extract_strided_slice %29 {offsets = [0, 96], sizes = [1, 32], strides = [1, 1]} : vector<1x128xf32> to vector<1x32xf32>
    %132 = vector.broadcast %131 : vector<1x32xf32> to vector<8x32xf32>
    %133 = arith.addf %130, %132 : vector<8x32xf32>
    %134 = vector.extract_strided_slice %28 {offsets = [0, 64], sizes = [1, 32], strides = [1, 1]} : vector<1x128xf32> to vector<1x32xf32>
    %135 = vector.extract_strided_slice %28 {offsets = [0, 96], sizes = [1, 32], strides = [1, 1]} : vector<1x128xf32> to vector<1x32xf32>
    %cst_51 = arith.constant dense<0.000000e+00> : vector<8xf32>
    %136 = vector.multi_reduction <add>, %133, %cst_51 [1] : vector<8x32xf32> to vector<8xf32>
    %137 = vector.shape_cast %136 : vector<8xf32> to vector<8x1xf32>
    %cst_52 = arith.constant 3.200000e+01 : f32
    %138 = vector.broadcast %cst_52 : f32 to vector<8x1xf32>
    %139 = arith.divf %137, %138 : vector<8x1xf32>
    %140 = vector.broadcast %139 : vector<8x1xf32> to vector<8x32xf32>
    %141 = arith.subf %133, %140 : vector<8x32xf32>
    %142 = arith.mulf %141, %141 : vector<8x32xf32>
    %cst_53 = arith.constant dense<0.000000e+00> : vector<8xf32>
    %143 = vector.multi_reduction <add>, %142, %cst_53 [1] : vector<8x32xf32> to vector<8xf32>
    %144 = vector.shape_cast %143 : vector<8xf32> to vector<8x1xf32>
    %cst_54 = arith.constant 3.200000e+01 : f32
    %145 = vector.broadcast %cst_54 : f32 to vector<8x1xf32>
    %146 = arith.divf %144, %145 : vector<8x1xf32>
    %cst_55 = arith.constant 9.99999974E-6 : f32
    %147 = vector.broadcast %cst_55 : f32 to vector<8x1xf32>
    %148 = arith.addf %146, %147 : vector<8x1xf32>
    %149 = math.rsqrt %148 : vector<8x1xf32>
    %150 = vector.broadcast %149 : vector<8x1xf32> to vector<8x32xf32>
    %151 = arith.mulf %141, %150 : vector<8x32xf32>
    %152 = vector.broadcast %134 : vector<1x32xf32> to vector<8x32xf32>
    %153 = arith.mulf %151, %152 : vector<8x32xf32>
    %154 = vector.broadcast %135 : vector<1x32xf32> to vector<8x32xf32>
    %155 = arith.addf %153, %154 : vector<8x32xf32>
    %c104 = arith.constant 104 : index
    %c0_56 = arith.constant 0 : index
    %156 = vector.load %arg1[%c104, %c0_56] : memref<416x128xf32, #tpu.memory_space<vmem>>, vector<32x64xf32>
    %c136 = arith.constant 136 : index
    %c0_57 = arith.constant 0 : index
    %157 = vector.load %arg1[%c136, %c0_57] : memref<416x128xf32, #tpu.memory_space<vmem>>, vector<64x32xf32>
    %c201 = arith.constant 201 : index
    %c0_58 = arith.constant 0 : index
    %158 = vector.load %arg1[%c201, %c0_58] : memref<416x128xf32, #tpu.memory_space<vmem>>, vector<1x128xf32>
    %cst_59 = arith.constant dense<0.000000e+00> : vector<8x64xf32>
    %159 = tpu.matmul %155, %156, %cst_59 {dimension_numbers = #tpu.dot_dimension_numbers<[1], [0], [0], [1], [0, 0, 1, 1], [], []>} : vector<8x32xf32>, vector<32x64xf32>, vector<8x64xf32> -> vector<8x64xf32>
    %160 = vector.extract_strided_slice %158 {offsets = [0, 0], sizes = [1, 64], strides = [1, 1]} : vector<1x128xf32> to vector<1x64xf32>
    %161 = vector.broadcast %160 : vector<1x64xf32> to vector<8x64xf32>
    %162 = arith.addf %159, %161 : vector<8x64xf32>
    %cst_60 = arith.constant 0.000000e+00 : f32
    %163 = vector.broadcast %cst_60 : f32 to vector<8x64xf32>
    %164 = arith.maximumf %162, %163 : vector<8x64xf32>
    %cst_61 = arith.constant dense<0.000000e+00> : vector<8x32xf32>
    %165 = tpu.matmul %164, %157, %cst_61 {dimension_numbers = #tpu.dot_dimension_numbers<[1], [0], [0], [1], [0, 0, 1, 1], [], []>} : vector<8x64xf32>, vector<64x32xf32>, vector<8x32xf32> -> vector<8x32xf32>
    %166 = arith.addf %133, %165 : vector<8x32xf32>
    %167 = vector.extract_strided_slice %158 {offsets = [0, 64], sizes = [1, 32], strides = [1, 1]} : vector<1x128xf32> to vector<1x32xf32>
    %168 = vector.broadcast %167 : vector<1x32xf32> to vector<8x32xf32>
    %169 = arith.addf %166, %168 : vector<8x32xf32>
    %c338 = arith.constant 338 : index
    %c0_62 = arith.constant 0 : index
    %170 = vector.load %arg1[%c338, %c0_62] : memref<416x128xf32, #tpu.memory_space<vmem>>, vector<1x128xf32>
    %c336 = arith.constant 336 : index
    %c0_63 = arith.constant 0 : index
    %171 = vector.load %arg1[%c336, %c0_63] : memref<416x128xf32, #tpu.memory_space<vmem>>, vector<1x128xf32>
    %172 = vector.extract_strided_slice %170 {offsets = [0, 0], sizes = [1, 32], strides = [1, 1]} : vector<1x128xf32> to vector<1x32xf32>
    %173 = vector.extract_strided_slice %170 {offsets = [0, 32], sizes = [1, 32], strides = [1, 1]} : vector<1x128xf32> to vector<1x32xf32>
    %cst_64 = arith.constant dense<0.000000e+00> : vector<8xf32>
    %174 = vector.multi_reduction <add>, %169, %cst_64 [1] : vector<8x32xf32> to vector<8xf32>
    %175 = vector.shape_cast %174 : vector<8xf32> to vector<8x1xf32>
    %cst_65 = arith.constant 3.200000e+01 : f32
    %176 = vector.broadcast %cst_65 : f32 to vector<8x1xf32>
    %177 = arith.divf %175, %176 : vector<8x1xf32>
    %178 = vector.broadcast %177 : vector<8x1xf32> to vector<8x32xf32>
    %179 = arith.subf %169, %178 : vector<8x32xf32>
    %180 = arith.mulf %179, %179 : vector<8x32xf32>
    %cst_66 = arith.constant dense<0.000000e+00> : vector<8xf32>
    %181 = vector.multi_reduction <add>, %180, %cst_66 [1] : vector<8x32xf32> to vector<8xf32>
    %182 = vector.shape_cast %181 : vector<8xf32> to vector<8x1xf32>
    %cst_67 = arith.constant 3.200000e+01 : f32
    %183 = vector.broadcast %cst_67 : f32 to vector<8x1xf32>
    %184 = arith.divf %182, %183 : vector<8x1xf32>
    %cst_68 = arith.constant 9.99999974E-6 : f32
    %185 = vector.broadcast %cst_68 : f32 to vector<8x1xf32>
    %186 = arith.addf %184, %185 : vector<8x1xf32>
    %187 = math.rsqrt %186 : vector<8x1xf32>
    %188 = vector.broadcast %187 : vector<8x1xf32> to vector<8x32xf32>
    %189 = arith.mulf %179, %188 : vector<8x32xf32>
    %190 = vector.broadcast %172 : vector<1x32xf32> to vector<8x32xf32>
    %191 = arith.mulf %189, %190 : vector<8x32xf32>
    %192 = vector.broadcast %173 : vector<1x32xf32> to vector<8x32xf32>
    %193 = arith.addf %191, %192 : vector<8x32xf32>
    %194 = arith.addf %193, %26 : vector<8x32xf32>
    %c208 = arith.constant 208 : index
    %c0_69 = arith.constant 0 : index
    %195 = vector.load %arg1[%c208, %c0_69] : memref<416x128xf32, #tpu.memory_space<vmem>>, vector<32x64xf32>
    %c208_70 = arith.constant 208 : index
    %c64_71 = arith.constant 64 : index
    %196 = vector.load %arg1[%c208_70, %c64_71] : memref<416x128xf32, #tpu.memory_space<vmem>>, vector<32x32xf32>
    %c208_72 = arith.constant 208 : index
    %c96_73 = arith.constant 96 : index
    %197 = vector.load %arg1[%c208_72, %c96_73] : memref<416x128xf32, #tpu.memory_space<vmem>>, vector<32x32xf32>
    %cst_74 = arith.constant dense<0.000000e+00> : vector<8x64xf32>
    %198 = tpu.matmul %194, %195, %cst_74 {dimension_numbers = #tpu.dot_dimension_numbers<[1], [0], [0], [1], [0, 0, 1, 1], [], []>} : vector<8x32xf32>, vector<32x64xf32>, vector<8x64xf32> -> vector<8x64xf32>
    %199 = vector.extract_strided_slice %171 {offsets = [0, 0], sizes = [1, 64], strides = [1, 1]} : vector<1x128xf32> to vector<1x64xf32>
    %200 = vector.broadcast %199 : vector<1x64xf32> to vector<8x64xf32>
    %201 = arith.addf %198, %200 : vector<8x64xf32>
    %cst_75 = arith.constant dense<0.000000e+00> : vector<8x32xf32>
    %202 = tpu.matmul %193, %196, %cst_75 {dimension_numbers = #tpu.dot_dimension_numbers<[1], [0], [0], [1], [0, 0, 1, 1], [], []>} : vector<8x32xf32>, vector<32x32xf32>, vector<8x32xf32> -> vector<8x32xf32>
    %203 = vector.extract_strided_slice %171 {offsets = [0, 64], sizes = [1, 32], strides = [1, 1]} : vector<1x128xf32> to vector<1x32xf32>
    %204 = vector.broadcast %203 : vector<1x32xf32> to vector<8x32xf32>
    %205 = arith.addf %202, %204 : vector<8x32xf32>
    %206 = vector.extract_strided_slice %201 {offsets = [0, 0], sizes = [8, 8], strides = [1, 1]} : vector<8x64xf32> to vector<8x8xf32>
    %207 = vector.extract_strided_slice %201 {offsets = [0, 32], sizes = [8, 8], strides = [1, 1]} : vector<8x64xf32> to vector<8x8xf32>
    "tpu.trace_start"() <{level = 10 : i32, message = "qd,kd->qk"}> : () -> ()
    %cst_76 = arith.constant dense<0.000000e+00> : vector<8x8xf32>
    %208 = tpu.matmul %206, %207, %cst_76 {dimension_numbers = #tpu.dot_dimension_numbers<[1], [1], [0], [0], [0, 0, 1, 0], [], []>} : vector<8x8xf32>, vector<8x8xf32>, vector<8x8xf32> -> vector<8x8xf32>
    "tpu.trace_stop"() : () -> ()
    %209 = arith.addf %208, %27 : vector<8x8xf32>
    %cst_77 = arith.constant dense<0xFF800000> : vector<8xf32>
    %210 = vector.multi_reduction <maximumf>, %209, %cst_77 [1] : vector<8x8xf32> to vector<8xf32>
    %211 = vector.shape_cast %210 : vector<8xf32> to vector<8x1xf32>
    %212 = vector.broadcast %211 : vector<8x1xf32> to vector<8x8xf32>
    %213 = arith.subf %209, %212 : vector<8x8xf32>
    %214 = math.exp %213 : vector<8x8xf32>
    %cst_78 = arith.constant dense<0.000000e+00> : vector<8xf32>
    %215 = vector.multi_reduction <add>, %214, %cst_78 [1] : vector<8x8xf32> to vector<8xf32>
    %216 = vector.shape_cast %215 : vector<8xf32> to vector<8x1xf32>
    %217 = tpu.reciprocal %216 {approx = true} : vector<8x1xf32> -> vector<8x1xf32>
    %218 = vector.broadcast %217 : vector<8x1xf32> to vector<8x8xf32>
    %219 = arith.mulf %214, %218 : vector<8x8xf32>
    %220 = vector.extract_strided_slice %205 {offsets = [0, 0], sizes = [8, 8], strides = [1, 1]} : vector<8x32xf32> to vector<8x8xf32>
    %cst_79 = arith.constant dense<0.000000e+00> : vector<8x8xf32>
    %221 = tpu.matmul %219, %220, %cst_79 {dimension_numbers = #tpu.dot_dimension_numbers<[1], [0], [0], [1], [0, 0, 1, 1], [], []>} : vector<8x8xf32>, vector<8x8xf32>, vector<8x8xf32> -> vector<8x8xf32>
    %222 = vector.extract_strided_slice %201 {offsets = [0, 8], sizes = [8, 8], strides = [1, 1]} : vector<8x64xf32> to vector<8x8xf32>
    %223 = vector.extract_strided_slice %201 {offsets = [0, 40], sizes = [8, 8], strides = [1, 1]} : vector<8x64xf32> to vector<8x8xf32>
    "tpu.trace_start"() <{level = 10 : i32, message = "qd,kd->qk"}> : () -> ()
    %cst_80 = arith.constant dense<0.000000e+00> : vector<8x8xf32>
    %224 = tpu.matmul %222, %223, %cst_80 {dimension_numbers = #tpu.dot_dimension_numbers<[1], [1], [0], [0], [0, 0, 1, 0], [], []>} : vector<8x8xf32>, vector<8x8xf32>, vector<8x8xf32> -> vector<8x8xf32>
    "tpu.trace_stop"() : () -> ()
    %225 = arith.addf %224, %27 : vector<8x8xf32>
    %cst_81 = arith.constant dense<0xFF800000> : vector<8xf32>
    %226 = vector.multi_reduction <maximumf>, %225, %cst_81 [1] : vector<8x8xf32> to vector<8xf32>
    %227 = vector.shape_cast %226 : vector<8xf32> to vector<8x1xf32>
    %228 = vector.broadcast %227 : vector<8x1xf32> to vector<8x8xf32>
    %229 = arith.subf %225, %228 : vector<8x8xf32>
    %230 = math.exp %229 : vector<8x8xf32>
    %cst_82 = arith.constant dense<0.000000e+00> : vector<8xf32>
    %231 = vector.multi_reduction <add>, %230, %cst_82 [1] : vector<8x8xf32> to vector<8xf32>
    %232 = vector.shape_cast %231 : vector<8xf32> to vector<8x1xf32>
    %233 = tpu.reciprocal %232 {approx = true} : vector<8x1xf32> -> vector<8x1xf32>
    %234 = vector.broadcast %233 : vector<8x1xf32> to vector<8x8xf32>
    %235 = arith.mulf %230, %234 : vector<8x8xf32>
    %236 = vector.extract_strided_slice %205 {offsets = [0, 8], sizes = [8, 8], strides = [1, 1]} : vector<8x32xf32> to vector<8x8xf32>
    %cst_83 = arith.constant dense<0.000000e+00> : vector<8x8xf32>
    %237 = tpu.matmul %235, %236, %cst_83 {dimension_numbers = #tpu.dot_dimension_numbers<[1], [0], [0], [1], [0, 0, 1, 1], [], []>} : vector<8x8xf32>, vector<8x8xf32>, vector<8x8xf32> -> vector<8x8xf32>
    %238 = vector.extract_strided_slice %201 {offsets = [0, 16], sizes = [8, 8], strides = [1, 1]} : vector<8x64xf32> to vector<8x8xf32>
    %239 = vector.extract_strided_slice %201 {offsets = [0, 48], sizes = [8, 8], strides = [1, 1]} : vector<8x64xf32> to vector<8x8xf32>
    "tpu.trace_start"() <{level = 10 : i32, message = "qd,kd->qk"}> : () -> ()
    %cst_84 = arith.constant dense<0.000000e+00> : vector<8x8xf32>
    %240 = tpu.matmul %238, %239, %cst_84 {dimension_numbers = #tpu.dot_dimension_numbers<[1], [1], [0], [0], [0, 0, 1, 0], [], []>} : vector<8x8xf32>, vector<8x8xf32>, vector<8x8xf32> -> vector<8x8xf32>
    "tpu.trace_stop"() : () -> ()
    %241 = arith.addf %240, %27 : vector<8x8xf32>
    %cst_85 = arith.constant dense<0xFF800000> : vector<8xf32>
    %242 = vector.multi_reduction <maximumf>, %241, %cst_85 [1] : vector<8x8xf32> to vector<8xf32>
    %243 = vector.shape_cast %242 : vector<8xf32> to vector<8x1xf32>
    %244 = vector.broadcast %243 : vector<8x1xf32> to vector<8x8xf32>
    %245 = arith.subf %241, %244 : vector<8x8xf32>
    %246 = math.exp %245 : vector<8x8xf32>
    %cst_86 = arith.constant dense<0.000000e+00> : vector<8xf32>
    %247 = vector.multi_reduction <add>, %246, %cst_86 [1] : vector<8x8xf32> to vector<8xf32>
    %248 = vector.shape_cast %247 : vector<8xf32> to vector<8x1xf32>
    %249 = tpu.reciprocal %248 {approx = true} : vector<8x1xf32> -> vector<8x1xf32>
    %250 = vector.broadcast %249 : vector<8x1xf32> to vector<8x8xf32>
    %251 = arith.mulf %246, %250 : vector<8x8xf32>
    %252 = vector.extract_strided_slice %205 {offsets = [0, 16], sizes = [8, 8], strides = [1, 1]} : vector<8x32xf32> to vector<8x8xf32>
    %cst_87 = arith.constant dense<0.000000e+00> : vector<8x8xf32>
    %253 = tpu.matmul %251, %252, %cst_87 {dimension_numbers = #tpu.dot_dimension_numbers<[1], [0], [0], [1], [0, 0, 1, 1], [], []>} : vector<8x8xf32>, vector<8x8xf32>, vector<8x8xf32> -> vector<8x8xf32>
    %254 = vector.extract_strided_slice %201 {offsets = [0, 24], sizes = [8, 8], strides = [1, 1]} : vector<8x64xf32> to vector<8x8xf32>
    %255 = vector.extract_strided_slice %201 {offsets = [0, 56], sizes = [8, 8], strides = [1, 1]} : vector<8x64xf32> to vector<8x8xf32>
    "tpu.trace_start"() <{level = 10 : i32, message = "qd,kd->qk"}> : () -> ()
    %cst_88 = arith.constant dense<0.000000e+00> : vector<8x8xf32>
    %256 = tpu.matmul %254, %255, %cst_88 {dimension_numbers = #tpu.dot_dimension_numbers<[1], [1], [0], [0], [0, 0, 1, 0], [], []>} : vector<8x8xf32>, vector<8x8xf32>, vector<8x8xf32> -> vector<8x8xf32>
    "tpu.trace_stop"() : () -> ()
    %257 = arith.addf %256, %27 : vector<8x8xf32>
    %cst_89 = arith.constant dense<0xFF800000> : vector<8xf32>
    %258 = vector.multi_reduction <maximumf>, %257, %cst_89 [1] : vector<8x8xf32> to vector<8xf32>
    %259 = vector.shape_cast %258 : vector<8xf32> to vector<8x1xf32>
    %260 = vector.broadcast %259 : vector<8x1xf32> to vector<8x8xf32>
    %261 = arith.subf %257, %260 : vector<8x8xf32>
    %262 = math.exp %261 : vector<8x8xf32>
    %cst_90 = arith.constant dense<0.000000e+00> : vector<8xf32>
    %263 = vector.multi_reduction <add>, %262, %cst_90 [1] : vector<8x8xf32> to vector<8xf32>
    %264 = vector.shape_cast %263 : vector<8xf32> to vector<8x1xf32>
    %265 = tpu.reciprocal %264 {approx = true} : vector<8x1xf32> -> vector<8x1xf32>
    %266 = vector.broadcast %265 : vector<8x1xf32> to vector<8x8xf32>
    %267 = arith.mulf %262, %266 : vector<8x8xf32>
    %268 = vector.extract_strided_slice %205 {offsets = [0, 24], sizes = [8, 8], strides = [1, 1]} : vector<8x32xf32> to vector<8x8xf32>
    %cst_91 = arith.constant dense<0.000000e+00> : vector<8x8xf32>
    %269 = tpu.matmul %267, %268, %cst_91 {dimension_numbers = #tpu.dot_dimension_numbers<[1], [0], [0], [1], [0, 0, 1, 1], [], []>} : vector<8x8xf32>, vector<8x8xf32>, vector<8x8xf32> -> vector<8x8xf32>
    %270 = tpu.concatenate %221, %237, %253, %269 in 1 : vector<8x8xf32>, vector<8x8xf32>, vector<8x8xf32>, vector<8x8xf32> -> vector<8x32xf32>
    %cst_92 = arith.constant dense<0.000000e+00> : vector<8x32xf32>
    %271 = tpu.matmul %270, %197, %cst_92 {dimension_numbers = #tpu.dot_dimension_numbers<[1], [0], [0], [1], [0, 0, 1, 1], [], []>} : vector<8x32xf32>, vector<32x32xf32>, vector<8x32xf32> -> vector<8x32xf32>
    %272 = arith.addf %169, %271 : vector<8x32xf32>
    %273 = vector.extract_strided_slice %171 {offsets = [0, 96], sizes = [1, 32], strides = [1, 1]} : vector<1x128xf32> to vector<1x32xf32>
    %274 = vector.broadcast %273 : vector<1x32xf32> to vector<8x32xf32>
    %275 = arith.addf %272, %274 : vector<8x32xf32>
    %276 = vector.extract_strided_slice %170 {offsets = [0, 64], sizes = [1, 32], strides = [1, 1]} : vector<1x128xf32> to vector<1x32xf32>
    %277 = vector.extract_strided_slice %170 {offsets = [0, 96], sizes = [1, 32], strides = [1, 1]} : vector<1x128xf32> to vector<1x32xf32>
    %cst_93 = arith.constant dense<0.000000e+00> : vector<8xf32>
    %278 = vector.multi_reduction <add>, %275, %cst_93 [1] : vector<8x32xf32> to vector<8xf32>
    %279 = vector.shape_cast %278 : vector<8xf32> to vector<8x1xf32>
    %cst_94 = arith.constant 3.200000e+01 : f32
    %280 = vector.broadcast %cst_94 : f32 to vector<8x1xf32>
    %281 = arith.divf %279, %280 : vector<8x1xf32>
    %282 = vector.broadcast %281 : vector<8x1xf32> to vector<8x32xf32>
    %283 = arith.subf %275, %282 : vector<8x32xf32>
    %284 = arith.mulf %283, %283 : vector<8x32xf32>
    %cst_95 = arith.constant dense<0.000000e+00> : vector<8xf32>
    %285 = vector.multi_reduction <add>, %284, %cst_95 [1] : vector<8x32xf32> to vector<8xf32>
    %286 = vector.shape_cast %285 : vector<8xf32> to vector<8x1xf32>
    %cst_96 = arith.constant 3.200000e+01 : f32
    %287 = vector.broadcast %cst_96 : f32 to vector<8x1xf32>
    %288 = arith.divf %286, %287 : vector<8x1xf32>
    %cst_97 = arith.constant 9.99999974E-6 : f32
    %289 = vector.broadcast %cst_97 : f32 to vector<8x1xf32>
    %290 = arith.addf %288, %289 : vector<8x1xf32>
    %291 = math.rsqrt %290 : vector<8x1xf32>
    %292 = vector.broadcast %291 : vector<8x1xf32> to vector<8x32xf32>
    %293 = arith.mulf %283, %292 : vector<8x32xf32>
    %294 = vector.broadcast %276 : vector<1x32xf32> to vector<8x32xf32>
    %295 = arith.mulf %293, %294 : vector<8x32xf32>
    %296 = vector.broadcast %277 : vector<1x32xf32> to vector<8x32xf32>
    %297 = arith.addf %295, %296 : vector<8x32xf32>
    %c240 = arith.constant 240 : index
    %c0_98 = arith.constant 0 : index
    %298 = vector.load %arg1[%c240, %c0_98] : memref<416x128xf32, #tpu.memory_space<vmem>>, vector<32x64xf32>
    %c272 = arith.constant 272 : index
    %c0_99 = arith.constant 0 : index
    %299 = vector.load %arg1[%c272, %c0_99] : memref<416x128xf32, #tpu.memory_space<vmem>>, vector<64x32xf32>
    %c337 = arith.constant 337 : index
    %c0_100 = arith.constant 0 : index
    %300 = vector.load %arg1[%c337, %c0_100] : memref<416x128xf32, #tpu.memory_space<vmem>>, vector<1x128xf32>
    %cst_101 = arith.constant dense<0.000000e+00> : vector<8x64xf32>
    %301 = tpu.matmul %297, %298, %cst_101 {dimension_numbers = #tpu.dot_dimension_numbers<[1], [0], [0], [1], [0, 0, 1, 1], [], []>} : vector<8x32xf32>, vector<32x64xf32>, vector<8x64xf32> -> vector<8x64xf32>
    %302 = vector.extract_strided_slice %300 {offsets = [0, 0], sizes = [1, 64], strides = [1, 1]} : vector<1x128xf32> to vector<1x64xf32>
    %303 = vector.broadcast %302 : vector<1x64xf32> to vector<8x64xf32>
    %304 = arith.addf %301, %303 : vector<8x64xf32>
    %cst_102 = arith.constant 0.000000e+00 : f32
    %305 = vector.broadcast %cst_102 : f32 to vector<8x64xf32>
    %306 = arith.maximumf %304, %305 : vector<8x64xf32>
    %cst_103 = arith.constant dense<0.000000e+00> : vector<8x32xf32>
    %307 = tpu.matmul %306, %299, %cst_103 {dimension_numbers = #tpu.dot_dimension_numbers<[1], [0], [0], [1], [0, 0, 1, 1], [], []>} : vector<8x64xf32>, vector<64x32xf32>, vector<8x32xf32> -> vector<8x32xf32>
    %308 = arith.addf %275, %307 : vector<8x32xf32>
    %309 = vector.extract_strided_slice %300 {offsets = [0, 64], sizes = [1, 32], strides = [1, 1]} : vector<1x128xf32> to vector<1x32xf32>
    %310 = vector.broadcast %309 : vector<1x32xf32> to vector<8x32xf32>
    %311 = arith.addf %308, %310 : vector<8x32xf32>
    %c408 = arith.constant 408 : index
    %c0_104 = arith.constant 0 : index
    %312 = vector.load %arg1[%c408, %c0_104] : memref<416x128xf32, #tpu.memory_space<vmem>>, vector<1x128xf32>
    %313 = vector.extract_strided_slice %312 {offsets = [0, 0], sizes = [1, 32], strides = [1, 1]} : vector<1x128xf32> to vector<1x32xf32>
    %314 = vector.extract_strided_slice %312 {offsets = [0, 32], sizes = [1, 32], strides = [1, 1]} : vector<1x128xf32> to vector<1x32xf32>
    %cst_105 = arith.constant dense<0.000000e+00> : vector<8xf32>
    %315 = vector.multi_reduction <add>, %311, %cst_105 [1] : vector<8x32xf32> to vector<8xf32>
    %316 = vector.shape_cast %315 : vector<8xf32> to vector<8x1xf32>
    %cst_106 = arith.constant 3.200000e+01 : f32
    %317 = vector.broadcast %cst_106 : f32 to vector<8x1xf32>
    %318 = arith.divf %316, %317 : vector<8x1xf32>
    %319 = vector.broadcast %318 : vector<8x1xf32> to vector<8x32xf32>
    %320 = arith.subf %311, %319 : vector<8x32xf32>
    %321 = arith.mulf %320, %320 : vector<8x32xf32>
    %cst_107 = arith.constant dense<0.000000e+00> : vector<8xf32>
    %322 = vector.multi_reduction <add>, %321, %cst_107 [1] : vector<8x32xf32> to vector<8xf32>
    %323 = vector.shape_cast %322 : vector<8xf32> to vector<8x1xf32>
    %cst_108 = arith.constant 3.200000e+01 : f32
    %324 = vector.broadcast %cst_108 : f32 to vector<8x1xf32>
    %325 = arith.divf %323, %324 : vector<8x1xf32>
    %cst_109 = arith.constant 9.99999974E-6 : f32
    %326 = vector.broadcast %cst_109 : f32 to vector<8x1xf32>
    %327 = arith.addf %325, %326 : vector<8x1xf32>
    %328 = math.rsqrt %327 : vector<8x1xf32>
    %329 = vector.broadcast %328 : vector<8x1xf32> to vector<8x32xf32>
    %330 = arith.mulf %320, %329 : vector<8x32xf32>
    %331 = vector.broadcast %313 : vector<1x32xf32> to vector<8x32xf32>
    %332 = arith.mulf %330, %331 : vector<8x32xf32>
    %333 = vector.broadcast %314 : vector<1x32xf32> to vector<8x32xf32>
    %334 = arith.addf %332, %333 : vector<8x32xf32>
    %c344 = arith.constant 344 : index
    %c0_110 = arith.constant 0 : index
    %335 = vector.load %arg1[%c344, %c0_110] : memref<416x128xf32, #tpu.memory_space<vmem>>, vector<32x32xf32>
    %c344_111 = arith.constant 344 : index
    %c32_112 = arith.constant 32 : index
    %336 = vector.load %arg1[%c344_111, %c32_112] : memref<416x128xf32, #tpu.memory_space<vmem>>, vector<32x32xf32>
    %c376 = arith.constant 376 : index
    %c0_113 = arith.constant 0 : index
    %337 = vector.load %arg1[%c376, %c0_113] : memref<416x128xf32, #tpu.memory_space<vmem>>, vector<32x128xf32>
    %c409 = arith.constant 409 : index
    %c0_114 = arith.constant 0 : index
    %338 = vector.load %arg1[%c409, %c0_114] : memref<416x128xf32, #tpu.memory_space<vmem>>, vector<1x128xf32>
    %cst_115 = arith.constant dense<0.000000e+00> : vector<8x32xf32>
    %339 = tpu.matmul %334, %335, %cst_115 {dimension_numbers = #tpu.dot_dimension_numbers<[1], [0], [0], [1], [0, 0, 1, 1], [], []>} : vector<8x32xf32>, vector<32x32xf32>, vector<8x32xf32> -> vector<8x32xf32>
    %340 = vector.extract_strided_slice %312 {offsets = [0, 64], sizes = [1, 32], strides = [1, 1]} : vector<1x128xf32> to vector<1x32xf32>
    %341 = vector.broadcast %340 : vector<1x32xf32> to vector<8x32xf32>
    %342 = arith.addf %339, %341 : vector<8x32xf32>
    %cst_116 = arith.constant 0.000000e+00 : f32
    %343 = vector.broadcast %cst_116 : f32 to vector<8x32xf32>
    %344 = arith.cmpf oge, %342, %343 : vector<8x32xf32>
    %cst_117 = arith.constant 0.00999999977 : f32
    %345 = vector.broadcast %cst_117 : f32 to vector<8x32xf32>
    %346 = arith.mulf %345, %342 : vector<8x32xf32>
    %347 = arith.select %344, %342, %346 : vector<8x32xi1>, vector<8x32xf32>
    %cst_118 = arith.constant dense<0.000000e+00> : vector<8x32xf32>
    %348 = tpu.matmul %347, %336, %cst_118 {dimension_numbers = #tpu.dot_dimension_numbers<[1], [0], [0], [1], [0, 0, 1, 1], [], []>} : vector<8x32xf32>, vector<32x32xf32>, vector<8x32xf32> -> vector<8x32xf32>
    %349 = vector.extract_strided_slice %312 {offsets = [0, 96], sizes = [1, 32], strides = [1, 1]} : vector<1x128xf32> to vector<1x32xf32>
    %350 = vector.broadcast %349 : vector<1x32xf32> to vector<8x32xf32>
    %351 = arith.addf %348, %350 : vector<8x32xf32>
    %cst_119 = arith.constant 0.000000e+00 : f32
    %352 = vector.broadcast %cst_119 : f32 to vector<8x32xf32>
    %353 = arith.cmpf oge, %351, %352 : vector<8x32xf32>
    %cst_120 = arith.constant 0.00999999977 : f32
    %354 = vector.broadcast %cst_120 : f32 to vector<8x32xf32>
    %355 = arith.mulf %354, %351 : vector<8x32xf32>
    %356 = arith.select %353, %351, %355 : vector<8x32xi1>, vector<8x32xf32>
    %cst_121 = arith.constant dense<0.000000e+00> : vector<8x128xf32>
    %357 = tpu.matmul %356, %337, %cst_121 {dimension_numbers = #tpu.dot_dimension_numbers<[1], [0], [0], [1], [0, 0, 1, 1], [], []>} : vector<8x32xf32>, vector<32x128xf32>, vector<8x128xf32> -> vector<8x128xf32>
    %358 = vector.broadcast %338 : vector<1x128xf32> to vector<8x128xf32>
    %359 = arith.addf %357, %358 : vector<8x128xf32>
    %c32_122 = arith.constant 32 : index
    %c0_123 = arith.constant 0 : index
    %360 = vector.load %arg2[%c32_122, %c0_123] : memref<80x128xf32, #tpu.memory_space<vmem>>, vector<8x128xf32>
    %c40 = arith.constant 40 : index
    %c0_124 = arith.constant 0 : index
    %361 = vector.load %arg2[%c40, %c0_124] : memref<80x128xf32, #tpu.memory_space<vmem>>, vector<8x128xf32>
    %c48 = arith.constant 48 : index
    %c0_125 = arith.constant 0 : index
    %362 = vector.load %arg2[%c48, %c0_125] : memref<80x128xf32, #tpu.memory_space<vmem>>, vector<8x128xf32>
    %cst_126 = arith.constant 5.000000e-01 : f32
    %363 = vector.broadcast %cst_126 : f32 to vector<8x128xf32>
    %364 = arith.cmpf ogt, %361, %363 : vector<8x128xf32>
    %cst_127 = arith.constant 5.000000e-01 : f32
    %365 = vector.broadcast %cst_127 : f32 to vector<8x128xf32>
    %366 = arith.cmpf ogt, %362, %365 : vector<8x128xf32>
    %cst_128 = arith.constant 9.99999974E-5 : f32
    %367 = vector.broadcast %cst_128 : f32 to vector<8x128xf32>
    %368 = arith.mulf %359, %367 : vector<8x128xf32>
    %cst_129 = arith.constant 4.000000e-01 : f32
    %369 = vector.broadcast %cst_129 : f32 to vector<8x128xf32>
    %370 = arith.addf %368, %369 : vector<8x128xf32>
    %cst_130 = arith.constant 1.000000e+02 : f32
    %371 = vector.broadcast %cst_130 : f32 to vector<8x128xf32>
    %372 = arith.mulf %359, %371 : vector<8x128xf32>
    %373 = arith.select %364, %370, %372 : vector<8x128xi1>, vector<8x128xf32>
    %cst_131 = arith.constant 0.000000e+00 : f32
    %374 = vector.broadcast %cst_131 : f32 to vector<8x128xf32>
    %375 = arith.select %366, %373, %374 : vector<8x128xi1>, vector<8x128xf32>
    %cst_132 = arith.constant 0.000000e+00 : f32
    %376 = vector.broadcast %cst_132 : f32 to vector<8x128xf32>
    %377 = arith.select %364, %375, %376 : vector<8x128xi1>, vector<8x128xf32>
    %c127_i32 = arith.constant 127 : i32
    %378 = tpu.dynamic_rotate %377 by %c127_i32 dim 1 : vector<8x128xf32>, i32 -> vector<8x128xf32>
    %379 = arith.addf %377, %378 : vector<8x128xf32>
    %c126_i32 = arith.constant 126 : i32
    %380 = tpu.dynamic_rotate %377 by %c126_i32 dim 1 : vector<8x128xf32>, i32 -> vector<8x128xf32>
    %381 = arith.addf %379, %380 : vector<8x128xf32>
    %c16 = arith.constant 16 : index
    %c0_133 = arith.constant 0 : index
    %382 = vector.load %arg2[%c16, %c0_133] : memref<80x128xf32, #tpu.memory_space<vmem>>, vector<8x128xf32>
    %c24 = arith.constant 24 : index
    %c0_134 = arith.constant 0 : index
    %383 = vector.load %arg2[%c24, %c0_134] : memref<80x128xf32, #tpu.memory_space<vmem>>, vector<8x128xf32>
    %384 = arith.subf %375, %382 : vector<8x128xf32>
    %385 = arith.mulf %384, %381 : vector<8x128xf32>
    %386 = arith.divf %385, %383 : vector<8x128xf32>
    %387 = arith.select %364, %375, %386 : vector<8x128xi1>, vector<8x128xf32>
    %cst_135 = arith.constant 0.000000e+00 : f32
    %388 = vector.broadcast %cst_135 : f32 to vector<8x128xf32>
    %389 = arith.select %366, %387, %388 : vector<8x128xi1>, vector<8x128xf32>
    %c0_136 = arith.constant 0 : index
    %c0_137 = arith.constant 0 : index
    %390 = vector.load %arg3[%c0_136, %c0_137] : memref<8x128xf32, #tpu.memory_space<vmem>>, vector<8x128xf32>
    tpu.vector_store %arg3[%c0_136, %c0_137], %375 {strides = array<i32>} : memref<8x128xf32, #tpu.memory_space<vmem>>, vector<8x128xf32>,
    %c0_138 = arith.constant 0 : index
    %c0_139 = arith.constant 0 : index
    %391 = vector.load %arg4[%c0_138, %c0_139] : memref<8x128xf32, #tpu.memory_space<vmem>>, vector<8x128xf32>
    tpu.vector_store %arg4[%c0_138, %c0_139], %389 {strides = array<i32>} : memref<8x128xf32, #tpu.memory_space<vmem>>, vector<8x128xf32>,
    %c0_140 = arith.constant 0 : index
    %c0_141 = arith.constant 0 : index
    %392 = vector.load %arg2[%c0_140, %c0_141] : memref<80x128xf32, #tpu.memory_space<vmem>>, vector<8x128xf32>
    %c8_142 = arith.constant 8 : index
    %c0_143 = arith.constant 0 : index
    %393 = vector.load %arg2[%c8_142, %c0_143] : memref<80x128xf32, #tpu.memory_space<vmem>>, vector<8x128xf32>
    %c72_144 = arith.constant 72 : index
    %c0_145 = arith.constant 0 : index
    %394 = vector.load %arg2[%c72_144, %c0_145] : memref<80x128xf32, #tpu.memory_space<vmem>>, vector<8x128xf32>
    %395 = arith.subf %375, %392 : vector<8x128xf32>
    %396 = arith.subf %389, %393 : vector<8x128xf32>
    %397 = arith.mulf %395, %395 : vector<8x128xf32>
    %398 = arith.mulf %397, %394 : vector<8x128xf32>
    %399 = arith.mulf %396, %396 : vector<8x128xf32>
    %400 = arith.mulf %399, %394 : vector<8x128xf32>
    %401 = vector.extract_strided_slice %394 {offsets = [0, 0], sizes = [8, 1], strides = [1, 1]} : vector<8x128xf32> to vector<8x1xf32>
    %cst_146 = arith.constant dense<0.000000e+00> : vector<1xf32>
    %402 = vector.multi_reduction <add>, %401, %cst_146 [0] : vector<8x1xf32> to vector<1xf32>
    %403 = vector.shape_cast %402 : vector<1xf32> to vector<1x1xf32>
    %cst_147 = arith.constant 9.99999993E-9 : f32
    %404 = vector.broadcast %cst_147 : f32 to vector<1x1xf32>
    %405 = arith.addf %403, %404 : vector<1x1xf32>
    %cst_148 = arith.constant 1.000000e+00 : f32
    %406 = vector.broadcast %cst_148 : f32 to vector<1x1xf32>
    %407 = arith.divf %406, %405 : vector<1x1xf32>
    %408 = arith.mulf %398, %360 : vector<8x128xf32>
    %cst_149 = arith.constant dense<0.000000e+00> : vector<8xf32>
    %409 = vector.multi_reduction <add>, %408, %cst_149 [1] : vector<8x128xf32> to vector<8xf32>
    %410 = vector.shape_cast %409 : vector<8xf32> to vector<8x1xf32>
    %cst_150 = arith.constant dense<0.000000e+00> : vector<1xf32>
    %411 = vector.multi_reduction <add>, %410, %cst_150 [0] : vector<8x1xf32> to vector<1xf32>
    %412 = vector.shape_cast %411 : vector<1xf32> to vector<1x1xf32>
    %413 = arith.mulf %412, %407 : vector<1x1xf32>
    %cst_151 = arith.constant 0.0238095243 : f32
    %414 = vector.broadcast %cst_151 : f32 to vector<1x1xf32>
    %415 = arith.mulf %413, %414 : vector<1x1xf32>
    %416 = arith.mulf %398, %361 : vector<8x128xf32>
    %cst_152 = arith.constant dense<0.000000e+00> : vector<8xf32>
    %417 = vector.multi_reduction <add>, %416, %cst_152 [1] : vector<8x128xf32> to vector<8xf32>
    %418 = vector.shape_cast %417 : vector<8xf32> to vector<8x1xf32>
    %cst_153 = arith.constant dense<0.000000e+00> : vector<1xf32>
    %419 = vector.multi_reduction <add>, %418, %cst_153 [0] : vector<8x1xf32> to vector<1xf32>
    %420 = vector.shape_cast %419 : vector<1xf32> to vector<1x1xf32>
    %421 = arith.mulf %420, %407 : vector<1x1xf32>
    %cst_154 = arith.constant 0.0476190485 : f32
    %422 = vector.broadcast %cst_154 : f32 to vector<1x1xf32>
    %423 = arith.mulf %421, %422 : vector<1x1xf32>
    %424 = arith.mulf %400, %362 : vector<8x128xf32>
    %cst_155 = arith.constant dense<0.000000e+00> : vector<8xf32>
    %425 = vector.multi_reduction <add>, %424, %cst_155 [1] : vector<8x128xf32> to vector<8xf32>
    %426 = vector.shape_cast %425 : vector<8xf32> to vector<8x1xf32>
    %cst_156 = arith.constant dense<0.000000e+00> : vector<1xf32>
    %427 = vector.multi_reduction <add>, %426, %cst_156 [0] : vector<8x1xf32> to vector<1xf32>
    %428 = vector.shape_cast %427 : vector<1xf32> to vector<1x1xf32>
    %429 = arith.mulf %428, %407 : vector<1x1xf32>
    %cst_157 = arith.constant 0.0158730168 : f32
    %430 = vector.broadcast %cst_157 : f32 to vector<1x1xf32>
    %431 = arith.mulf %429, %430 : vector<1x1xf32>
    %cst_158 = arith.constant 1.000000e+00 : f32
    %432 = vector.broadcast %cst_158 : f32 to vector<1x1xf32>
    %433 = arith.mulf %432, %415 : vector<1x1xf32>
    %cst_159 = arith.constant 1.000000e+00 : f32
    %434 = vector.broadcast %cst_159 : f32 to vector<1x1xf32>
    %435 = arith.mulf %434, %423 : vector<1x1xf32>
    %436 = arith.addf %433, %435 : vector<1x1xf32>
    %437 = tpu.iota {dimensions = array<i32: 1>} : vector<1x128xi32>
    %c0_i32 = arith.constant 0 : i32
    %438 = vector.broadcast %c0_i32 : i32 to vector<1x128xi32>
    %439 = arith.cmpi eq, %437, %438 : vector<1x128xi32>
    %cst_160 = arith.constant 0.000000e+00 : f32
    %440 = vector.shape_cast %415 : vector<1x1xf32> to vector<1x1xf32>
    %441 = vector.broadcast %440 : vector<1x1xf32> to vector<1x128xf32>
    %442 = vector.broadcast %cst_160 : f32 to vector<1x128xf32>
    %443 = arith.select %439, %441, %442 : vector<1x128xi1>, vector<1x128xf32>
    %c1_i32 = arith.constant 1 : i32
    %444 = vector.broadcast %c1_i32 : i32 to vector<1x128xi32>
    %445 = arith.cmpi eq, %437, %444 : vector<1x128xi32>
    %cst_161 = arith.constant 0.000000e+00 : f32
    %446 = vector.shape_cast %423 : vector<1x1xf32> to vector<1x1xf32>
    %447 = vector.broadcast %446 : vector<1x1xf32> to vector<1x128xf32>
    %448 = vector.broadcast %cst_161 : f32 to vector<1x128xf32>
    %449 = arith.select %445, %447, %448 : vector<1x128xi1>, vector<1x128xf32>
    %450 = arith.addf %443, %449 : vector<1x128xf32>
    %c2_i32 = arith.constant 2 : i32
    %451 = vector.broadcast %c2_i32 : i32 to vector<1x128xi32>
    %452 = arith.cmpi eq, %437, %451 : vector<1x128xi32>
    %cst_162 = arith.constant 0.000000e+00 : f32
    %453 = vector.shape_cast %431 : vector<1x1xf32> to vector<1x1xf32>
    %454 = vector.broadcast %453 : vector<1x1xf32> to vector<1x128xf32>
    %455 = vector.broadcast %cst_162 : f32 to vector<1x128xf32>
    %456 = arith.select %452, %454, %455 : vector<1x128xi1>, vector<1x128xf32>
    %457 = arith.addf %450, %456 : vector<1x128xf32>
    %c3_i32 = arith.constant 3 : i32
    %458 = vector.broadcast %c3_i32 : i32 to vector<1x128xi32>
    %459 = arith.cmpi eq, %437, %458 : vector<1x128xi32>
    %cst_163 = arith.constant 0.000000e+00 : f32
    %460 = vector.shape_cast %436 : vector<1x1xf32> to vector<1x1xf32>
    %461 = vector.broadcast %460 : vector<1x1xf32> to vector<1x128xf32>
    %462 = vector.broadcast %cst_163 : f32 to vector<1x128xf32>
    %463 = arith.select %459, %461, %462 : vector<1x128xi1>, vector<1x128xf32>
    %464 = arith.addf %457, %463 : vector<1x128xf32>
    %c0_164 = arith.constant 0 : index
    %c0_165 = arith.constant 0 : index
    %465 = vector.load %arg5[%c0_164, %c0_165] : memref<1x128xf32, #tpu.memory_space<vmem>>, vector<1x128xf32>
    tpu.vector_store %arg5[%c0_164, %c0_165], %464 {strides = array<i32>} : memref<1x128xf32, #tpu.memory_space<vmem>>, vector<1x128xf32>,
    return
  }
}

</mosaic_0001>

<bundles_post_ra>
// kernel: temporal_net_forward.1
= control target key start
LH: loop header
LB: loop body
LE: loop exit
PB: predicated region body
PF: predicated region fallthrough
CT: control target
= control target key end

     0   :  { %v5765_v2 = vmov 0.0   ;;  %vm57_vm0 = vcmask 64512   ;;  %v4734_v15 = vmov 8   ;;  %vm4735_vm1 = vmmov 0   ;;  %s4736_s28 = smov 96   ;;  %s4737_s6 = smov 64   ;;  %s5759_s0 = inlined_call_operand.vmem [shape: f32[16,2048], index: 0, kind: input, shape index: {}]   ;;  %s5760_s1 = inlined_call_operand.vmem [shape: f32[416,128], index: 1, kind: input, shape index: {}]   ;;  %s5761_s2 = inlined_call_operand.vmem [shape: f32[80,128], index: 2, kind: input, shape index: {}]   ;;  %s5762_s3 = inlined_call_operand.vmem [shape: f32[8,128], index: 3, kind: output, shape index: {0}]   ;;  %s5763_s4 = inlined_call_operand.vmem [shape: f32[8,128], index: 4, kind: output, shape index: {1}]   ;;  %s5764_s5 = inlined_call_operand.vmem [shape: f32[1,128], index: 5, kind: output, shape index: {2}]  }
   0x1   :  { %v22_v0 = vld [vmem:[%s5759_s0 + $0x8] sm:$0xff]  ;;  %v21_v1 = vld [vmem:[%s5759_s0] sm:$0xff]  ;;  %130 = vmatprep.mubr.f32.mxu0 %v5765_v2  ;;  %148 = vmatprep.mubr.f32.mxu1 %v5765_v2  ;;  %v4797_v4 = vld [vmem:[%s5760_s1 + $0x18] sm:$0xff]  ;;  %vm1427_vm2 = vcmask 261120   ;;  %s4738_s15 = smov 120   ;;  %s4739_s16 = smov 112  }
   0x2   :  { %v4792_v3 = vld [vmem:[%s5760_s1] sm:$0xff]  ;;  %96 = vmatprep.subr.mxu0 %v22_v0  ;;  %4663 = vmatprep.subr.mxu1 %v22_v0  ;;  %v24_v5 = vld [vmem:[%s5759_s0 + $0x18] sm:$0xff]  ;;  %v23_v6 = vld [vmem:[%s5759_s0 + $0x10] sm:$0xff]  ;;  %s4740_s17 = smov 88   ;;  %s4741_s18 = smov 104   ;;  %vm2374_vm3 = vcmask 130048  }
   0x3   :  { %97 = vmatpush1.msra.mxu0 %v21_v1  ;;  %4664 = vmatpush1.msra.mxu1 %v21_v1  ;;  %v28_v7 = vld [vmem:[%s5759_s0 + $0x38] sm:$0xff]  ;;  %v26_v8 = vld [vmem:[%s5759_s0 + $0x28] sm:$0xff]  ;;  %v27_v10 = vld [vmem:[%s5759_s0 + $0x30] sm:$0xff]  ;;  %s4742_s19 = smov 80   ;;  %s4743_s20 = smov 72   ;;  %vm2376_vm4 = vcmask 195584  }
   0x4   :  { %4224 = vmatmul.mubr.msk.f32.vlgmr.msra.gmra.mxu0 %vm57_vm0, %v4792_v3  ;;  %4227 = vmatmul.mubr.msk.f32.vlgmr.msra.gmra.mxu1 %vm57_vm0, %v4797_v4  ;;  %v4819_v9 = vld [vmem:[%s5760_s1 + $0x8] sm:$0xff]  ;;  %v25_v11 = vld [vmem:[%s5759_s0 + $0x20] sm:$0xff]  ;;  %v457_v13 = vld [vmem:[%s5759_s0 + $0x58] sm:$0xff]  ;;  %s4744_s22 = smov 32   ;;  %s4745_s23 = smov 8   ;;  %vm2580_vm5 = vcmask 523264  }
   0x5   :  { %185 = vmatprep.subr.mxu1 %v24_v5  ;;  %136 = vmatprep.mubr.f32.mxu0 %v5765_v2  ;;  %v455_v12 = vld [vmem:[%s5759_s0 + $0x48] sm:$0xff]  ;;  %v4842_v14 = vld [vmem:[%s5760_s1 + $0x10] sm:$0xff]  ;;  %v454_v16 = vld [vmem:[%s5759_s0 + $0x40] sm:$0xff]  ;;  %s4746_s24 = smov 16   ;;  %s4747_s25 = smov 24   ;;  %vm4133_vm10 = vcmask 7168  }
   0x6   :  { %186 = vmatpush1.msra.mxu1 %v23_v6  ;;  %219 = vmatprep.mubr.f32.mxu1 %v5765_v2  ;;  %v459_v17 = vld [vmem:[%s5759_s0 + $0x68] sm:$0xff]  ;;  %v456_v18 = vld [vmem:[%s5759_s0 + $0x50] sm:$0xff]  ;;  %v461_v19 = vld [vmem:[%s5759_s0 + $0x78] sm:$0xff] }
   0x7   :  { %363 = vmatprep.subr.mxu1 %v28_v7  ;;  %274 = vmatprep.subr.mxu0 %v26_v8  ;;  %v458_v20 = vld [vmem:[%s5759_s0 + $0x60] sm:$0xff]  ;;  %v460_v21 = vld [vmem:[%s5759_s0 + $0x70] sm:$0xff]  ;;  %v463_v22 = vld [vmem:[%s5759_s0 + $0xc8] sm:$0xff] }
   0x8   :  { %4225 = vmatmul.mubr.msk.f32.gmra.mxu0 %vm57_vm0, %v4819_v9  ;;  %4228 = vmatmul.mubr.msk.f32.vlgmr.msra.gmra.mxu1 %vm57_vm0, %v4792_v3  ;;  %v465_v23 = vld [vmem:[%s5759_s0 + $0xd8] sm:$0xff] }
   0x9   :  { %364 = vmatpush1.msra.mxu1 %v27_v10  ;;  %142 = vmatprep.mubr.f32.mxu0 %v5765_v2 }
   0xa   :  { %225 = vmatprep.mubr.f32.mxu1 %v5765_v2  ;;  %275 = vmatpush1.msra.mxu0 %v25_v11 }
   0xb   :  { %500 = vmatprep.subr.mxu0 %v455_v12  ;;  %589 = vmatprep.subr.mxu1 %v457_v13 }
   0xc   :  { %4226 = vmatmul.mubr.msk.f32.gmra.mxu0 %vm57_vm0, %v4842_v14  ;;  %4229 = vmatmul.mubr.msk.f32.gmra.mxu1 %vm57_vm0, %v4819_v9 }
   0xd   :  { %231 = vmatprep.mubr.f32.mxu1 %v5765_v2  ;;  %308 = vmatprep.mubr.f32.mxu0 %v5765_v2 }
   0xe   :  { %4684 = vset.pattern.permute.xlu1 %v4734_v15  ;;  %4683 = vset.pattern.permute.xlu0 %v4734_v15 }
   0xf   :  { %54 = vperm.xlu0 %4683, %v4797_v4   ;;  %44 = vperm.xlu1 %4684, %v4819_v9  }
  0x10   :  { %4230 = vmatmul.mubr.msk.f32.gmra.mxu1 %vm57_vm0, %v4842_v14  ;;  %4232 = vmatmul.mubr.msk.f32.vlgmr.msra.gmra.mxu0 %vm57_vm0, %v4792_v3 }
  0x11   :  { %237 = vmatprep.mubr.f32.mxu1 %v5765_v2  ;;  %314 = vmatprep.mubr.f32.mxu0 %v5765_v2 }
  0x12   :  { %501 = vmatpush1.msra.mxu0 %v454_v16 }
  0x13   :  { %678 = vmatprep.subr.mxu0 %v459_v17  ;;  %39 = vperm.xlu1 %4684, %v4792_v3  }
  0x14   :  { %4231 = vmatmul.mubr.msk.f32.gmra.mxu1 %vm57_vm0, %v4797_v4  ;;  %4233 = vmatmul.mubr.msk.f32.gmra.mxu0 %vm57_vm0, %v4819_v9 }
  0x15   :  { %320 = vmatprep.mubr.f32.mxu0 %v5765_v2  ;;  %397 = vmatprep.mubr.f32.mxu1 %v5765_v2 }
  0x16   :  { %49 = vperm.xlu0 %4683, %v4842_v14  }
  0x18   :  { %4234 = vmatmul.mubr.msk.f32.gmra.mxu0 %vm57_vm0, %v4842_v14  ;;  %4236 = vmatmul.mubr.msk.f32.vlgmr.msra.gmra.mxu1 %vm57_vm0, %v4792_v3 }
  0x19   :  { %590 = vmatpush1.msra.mxu1 %v456_v18  ;;  %326 = vmatprep.mubr.f32.mxu0 %v5765_v2 }
  0x1a   :  { %403 = vmatprep.mubr.f32.mxu1 %v5765_v2  ;;  %767 = vmatprep.subr.mxu1 %v461_v19 }
  0x1c   :  { %4235 = vmatmul.mubr.msk.f32.gmra.mxu0 %vm57_vm0, %v4797_v4  ;;  %4237 = vmatmul.mubr.msk.f32.gmra.mxu1 %vm57_vm0, %v4819_v9 }
  0x1d   :  { %409 = vmatprep.mubr.f32.mxu1 %v5765_v2  ;;  %534 = vmatprep.mubr.f32.mxu0 %v5765_v2 }
  0x20   :  { %4238 = vmatmul.mubr.msk.f32.gmra.mxu1 %vm57_vm0, %v4842_v14  ;;  %4240 = vmatmul.mubr.msk.f32.vlgmr.msra.gmra.mxu0 %vm57_vm0, %v4792_v3 }
  0x21   :  { %415 = vmatprep.mubr.f32.mxu1 %v5765_v2  ;;  %540 = vmatprep.mubr.f32.mxu0 %v5765_v2 }
  0x22   :  { %679 = vmatpush1.msra.mxu0 %v458_v20 }
  0x24   :  { %4239 = vmatmul.mubr.msk.f32.gmra.mxu1 %vm57_vm0, %v4797_v4  ;;  %4241 = vmatmul.mubr.msk.f32.gmra.mxu0 %vm57_vm0, %v4819_v9 }
  0x25   :  { %546 = vmatprep.mubr.f32.mxu0 %v5765_v2  ;;  %623 = vmatprep.mubr.f32.mxu1 %v5765_v2 }
  0x28   :  { %4242 = vmatmul.mubr.msk.f32.gmra.mxu0 %vm57_vm0, %v4842_v14  ;;  %4244 = vmatmul.mubr.msk.f32.vlgmr.msra.gmra.mxu1 %vm57_vm0, %v4792_v3 }
  0x29   :  { %768 = vmatpush1.msra.mxu1 %v460_v21  ;;  %552 = vmatprep.mubr.f32.mxu0 %v5765_v2 }
  0x2a   :  { %629 = vmatprep.mubr.f32.mxu1 %v5765_v2 }
  0x2c   :  { %4243 = vmatmul.mubr.msk.f32.gmra.mxu0 %vm57_vm0, %v4797_v4  ;;  %4245 = vmatmul.mubr.msk.f32.gmra.mxu1 %vm57_vm0, %v4819_v9 }
  0x2d   :  { %635 = vmatprep.mubr.f32.mxu1 %v5765_v2  ;;  %712 = vmatprep.mubr.f32.mxu0 %v5765_v2 }
  0x30   :  { %4246 = vmatmul.mubr.msk.f32.gmra.mxu1 %vm57_vm0, %v4842_v14  ;;  %4248 = vmatmul.mubr.msk.f32.vlgmr.msra.gmra.mxu0 %vm57_vm0, %v4792_v3 }
  0x31   :  { %641 = vmatprep.mubr.f32.mxu1 %v5765_v2  ;;  %718 = vmatprep.mubr.f32.mxu0 %v5765_v2 }
  0x34   :  { %4247 = vmatmul.mubr.msk.f32.gmra.mxu1 %vm57_vm0, %v4797_v4  ;;  %4249 = vmatmul.mubr.msk.f32.gmra.mxu0 %vm57_vm0, %v4819_v9 }
  0x35   :  { %724 = vmatprep.mubr.f32.mxu0 %v5765_v2  ;;  %801 = vmatprep.mubr.f32.mxu1 %v5765_v2 }
  0x38   :  { %4250 = vmatmul.mubr.msk.f32.gmra.mxu0 %vm57_vm0, %v4842_v14  ;;  %4252 = vmatmul.mubr.msk.f32.vlgmr.msra.gmra.mxu1 %vm57_vm0, %v4792_v3 }
  0x39   :  { %730 = vmatprep.mubr.f32.mxu0 %v5765_v2  ;;  %807 = vmatprep.mubr.f32.mxu1 %v5765_v2 }
  0x3c   :  { %4251 = vmatmul.mubr.msk.f32.gmra.mxu0 %vm57_vm0, %v4797_v4  ;;  %4253 = vmatmul.mubr.msk.f32.gmra.mxu1 %vm57_vm0, %v4819_v9 }
  0x3d   :  { %813 = vmatprep.mubr.f32.mxu1 %v5765_v2  ;;  %922 = vmatprep.mubr.f32.mxu0 %v463_v22 }
  0x40   :  { %4254 = vmatmul.mubr.msk.f32.gmra.mxu1 %vm57_vm0, %v4842_v14 }
  0x41   :  { %819 = vmatprep.mubr.f32.mxu1 %v5765_v2 }
  0x44   :  { %4255 = vmatmul.mubr.msk.f32.gmra.mxu1 %vm57_vm0, %v4797_v4 }
  0x45   :  { %992 = vmatprep.mubr.f32.mxu1 %v465_v23 }
  0x8a   :  { %v5021_v62 = vpop.permute.xlu0 %54  ;;  %v5026_v8 = vpop.permute.xlu1 %44 }
  0x8e   :  { %v5038_v22 = vpop.permute.xlu1 %39 }
  0x91   :  { %v5023_v4 = vpop.permute.xlu0 %49 }
  0xc4   :  { %v4955_v24 = vpop.f32.mrf.mxu0  ;;  %v4957_v25 = vpop.f32.mrf.mxu1 }
  0xc6   :  { %v4959_v26 = vpop.f32.mrf.mxu0  ;;  %v4961_v27 = vpop.f32.mrf.mxu1 }
  0xc8   :  { %v4963_v28 = vpop.f32.mrf.mxu0  ;;  %v4965_v29 = vpop.f32.mrf.mxu1 }
  0xca   :  { %v4967_v30 = vpop.f32.mrf.mxu0  ;;  %v4969_v31 = vpop.f32.mrf.mxu1 }
  0xcc   :  { %v4971_v32 = vpop.f32.mrf.mxu0  ;;  %v4973_v33 = vpop.f32.mrf.mxu1 }
  0xce   :  { %v4975_v34 = vpop.f32.mrf.mxu0  ;;  %v4977_v35 = vpop.f32.mrf.mxu1 }
  0xd0   :  { %v4979_v36 = vpop.f32.mrf.mxu1  ;;  %v4981_v37 = vpop.f32.mrf.mxu0 }
  0xd2   :  { %v4983_v38 = vpop.f32.mrf.mxu1  ;;  %v4985_v39 = vpop.f32.mrf.mxu0 }
  0xd4   :  { %v4987_v40 = vpop.f32.mrf.mxu1  ;;  %v4989_v41 = vpop.f32.mrf.mxu0 }
  0xd6   :  { %v4991_v42 = vpop.f32.mrf.mxu1  ;;  %v4993_v43 = vpop.f32.mrf.mxu0 }
  0xd8   :  { %v4995_v44 = vpop.f32.mrf.mxu0  ;;  %v4997_v45 = vpop.f32.mrf.mxu1 }
  0xd9   :  { %5767 = vst [vmem:[#allocation2_spill] sm:$0xff] %v4997_v45 }
  0xda   :  { %v4999_v46 = vpop.f32.mrf.mxu0  ;;  %v5001_v47 = vpop.f32.mrf.mxu1 }
  0xdb   :  { %5768 = vst [vmem:[#allocation3_spill] sm:$0xff] %v5001_v47 }
  0xdc   :  { %v5003_v48 = vpop.f32.mrf.mxu0  ;;  %v5005_v49 = vpop.f32.mrf.mxu1 }
  0xdd   :  { %5769 = vst [vmem:[#allocation4_spill] sm:$0xff] %v5005_v49 }
  0xde   :  { %v5007_v50 = vpop.f32.mrf.mxu0  ;;  %v5009_v51 = vpop.f32.mrf.mxu1 }
  0xe0   :  { %v5011_v52 = vpop.f32.mrf.mxu1  ;;  %v536_v53 = vpop.f32.mrf.mxu0 }
  0xe2   :  { %v5013_v54 = vpop.f32.mrf.mxu1  ;;  %v538_v55 = vpop.f32.mrf.mxu0 }
  0xe4   :  { %v5015_v56 = vpop.f32.mrf.mxu1  ;;  %v542_v57 = vpop.f32.mrf.mxu0 }
  0xe5   :  { %v543_v23 = vadd.f32 %v542_v57, %v5026_v8  ;;  %v537_v57 = vadd.f32 %v536_v53, %v5038_v22 }
  0xe6   :  { %v5017_v58 = vpop.f32.mrf.mxu1  ;;  %v544_v59 = vpop.f32.mrf.mxu0 }
  0xe7   :  { %v545_v18 = vadd.f32 %v544_v59, %v5026_v8  ;;  %v826_v53 = vmax.f32 %v537_v57, 0.0  ;;  %v462_v57 = vld [vmem:[%s5759_s0 + $0xc0] sm:$0xff] }
  0xe8   :  { %v548_v60 = vpop.f32.mrf.mxu0  ;;  %v5019_v61 = vpop.f32.mrf.mxu1 }
  0xe9   :  { %v549_v15 = vadd.f32 %v548_v60, %v5023_v4 }
  0xea   :  { %v550_v63 = vpop.f32.mrf.mxu0  ;;  %v627_v0 = vpop.f32.mrf.mxu1 }
  0xeb   :  { %v551_v9 = vadd.f32 %v550_v63, %v5023_v4  ;;  %v842_v63 = vmax.f32 %v549_v15, 0.0  ;;  %v834_v15 = vmax.f32 %v543_v23, 0.0 }
  0xec   :  { %v554_v1 = vpop.f32.mrf.mxu0  ;;  %v631_v3 = vpop.f32.mrf.mxu1 }
  0xed   :  { %v555_v5 = vadd.f32 %v554_v1, %v5021_v62  ;;  %v843_v19 = vmax.f32 %v551_v9, 0.0  ;;  %v632_v23 = vadd.f32 %v631_v3, %v5026_v8 }
  0xee   :  { %v556_v6 = vpop.f32.mrf.mxu0  ;;  %v633_v7 = vpop.f32.mrf.mxu1 }
  0xef   :  { %v557_v10 = vadd.f32 %v556_v6, %v5021_v62  ;;  %v850_v11 = vmax.f32 %v555_v5, 0.0  ;;  %v539_v6 = vadd.f32 %v538_v55, %v5038_v22 }
  0xf0   :  { %v637_v12 = vpop.f32.mrf.mxu1  ;;  %v5030_v13 = vpop.f32.mrf.mxu0 }
  0xf1   :  { %v851_v14 = vmax.f32 %v557_v10, 0.0  ;;  %v835_v10 = vmax.f32 %v545_v18, 0.0  ;;  %v827_v55 = vmax.f32 %v539_v6, 0.0  ;;  %v628_v6 = vadd.f32 %v627_v0, %v5038_v22 }
  0xf2   :  { %v639_v16 = vpop.f32.mrf.mxu1  ;;  %v5033_v17 = vpop.f32.mrf.mxu0 }
  0xf3   :  { %882 = vmatprep.subr.mxu0 %v851_v14  ;;  %v640_v59 = vadd.f32 %v639_v16, %v5023_v4  ;;  %v634_v16 = vadd.f32 %v633_v7, %v5026_v8 }
  0xf4   :  { %v643_v20 = vpop.f32.mrf.mxu1  ;;  %v5036_v21 = vpop.f32.mrf.mxu0  ;;  %883 = vmatpush1.xpose.msra.mxu0 %v850_v11 }
  0xf5   :  { %884 = vmatprep.subr.mxu0 %v843_v19  ;;  %v644_v1 = vadd.f32 %v643_v20, %v5021_v62  ;;  %v638_v19 = vadd.f32 %v637_v12, %v5023_v4  ;;  %v845_v18 = vmax.f32 %v640_v59, 0.0  ;;  %v837_v7 = vmax.f32 %v634_v16, 0.0 }
  0xf6   :  { %v645_v60 = vpop.f32.mrf.mxu1  ;;  %v722_v5 = vpop.f32.mrf.mxu0 }
  0xf7   :  { %v646_v9 = vadd.f32 %v645_v60, %v5021_v62  ;;  %v852_v20 = vmax.f32 %v644_v1, 0.0  ;;  %v844_v12 = vmax.f32 %v638_v19, 0.0  ;;  %v836_v19 = vmax.f32 %v632_v23, 0.0 }
  0xf8   :  { %v726_v14 = vpop.f32.mrf.mxu0  ;;  %v5045_v2 = vpop.f32.mrf.mxu1  ;;  %885 = vmatpush1.xpose.msra.mxu0 %v842_v63  ;;  %v723_v16 = vadd.f32 %v722_v5, %v5026_v8 }
  0xf9   :  { %v853_v11 = vmax.f32 %v646_v9, 0.0  ;;  %886 = vmatprep.subr.mxu0 %v835_v10  ;;  %v727_v0 = vadd.f32 %v726_v14, %v5023_v4  ;;  %v721_v14 = vadd.f32 %v5036_v21, %v5026_v8 }
  0xfa   :  { %v728_v45 = vpop.f32.mrf.mxu0  ;;  %v5049_v47 = vpop.f32.mrf.mxu1 }
  0xfb   :  { %952 = vmatprep.subr.mxu1 %v853_v11  ;;  %v729_v59 = vadd.f32 %v728_v45, %v5023_v4  ;;  %v829_v45 = vmax.f32 %v628_v6, 0.0  ;;  %v846_v23 = vmax.f32 %v727_v0, 0.0 }
  0xfc   :  { %v732_v60 = vpop.f32.mrf.mxu0  ;;  %v5052_v49 = vpop.f32.mrf.mxu1  ;;  %887 = vmatpush1.xpose.msra.mxu0 %v834_v15  ;;  %953 = vmatpush1.xpose.msra.mxu1 %v852_v20  ;;  %v626_v15 = vadd.f32 %v5019_v61, %v5038_v22 }
  0xfd   :  { %888 = vmatprep.subr.mxu0 %v827_v55  ;;  %954 = vmatprep.subr.mxu1 %v845_v18  ;;  %v733_v63 = vadd.f32 %v732_v60, %v5021_v62  ;;  %v847_v18 = vmax.f32 %v729_v59, 0.0  ;;  %v467_v60 = vld [vmem:[%s5759_s0 + $0xe8] sm:$0xff]  ;;  %v464_v59 = vld [vmem:[%s5759_s0 + $0xd0] sm:$0xff] }
  0xfe   :  { %v734_v1 = vpop.f32.mrf.mxu0  ;;  %v811_v10 = vpop.f32.mrf.mxu1  ;;  %v828_v61 = vmax.f32 %v626_v15, 0.0  ;;  %v153_v15 = vadd.f32 %v4961_v27, %v5021_v62  ;;  %v810_v27 = vadd.f32 %v5052_v49, %v5026_v8  ;;  %v804_v49 = vadd.f32 %v5045_v2, %v5038_v22 }
  0xff   :  { %v735_v9 = vadd.f32 %v734_v1, %v5021_v62  ;;  %v854_v20 = vmax.f32 %v733_v63, 0.0  ;;  %v717_v63 = vadd.f32 %v5033_v17, %v5038_v22  ;;  %v839_v1 = vmax.f32 %v723_v16, 0.0 }
 0x100   :  { %v815_v11 = vpop.f32.mrf.mxu1  ;;  %889 = vmatpush1.xpose.msra.mxu0 %v826_v53  ;;  %955 = vmatpush1.xpose.msra.mxu1 %v844_v12  ;;  %v812_v0 = vadd.f32 %v811_v10, %v5026_v8  ;;  %v447_v10 = vmax.f32 %v153_v15, 0.0  ;;  %v806_v16 = vadd.f32 %v5049_v47, %v5038_v22  ;;  %v145_v47 = vadd.f32 %v4971_v32, %v5023_v4 }
 0x101   :  { %v855_v3 = vmax.f32 %v735_v9, 0.0  ;;  %956 = vmatprep.subr.mxu1 %v837_v7  ;;  %v715_v9 = vadd.f32 %v5030_v13, %v5038_v22  ;;  %v151_v13 = vadd.f32 %v4957_v25, %v5021_v62  ;;  %v466_v25 = vld [vmem:[%s5759_s0 + $0xe0] sm:$0xff]  ;;  %v139_v2 = vadd.f32 %v4963_v28, %v5026_v8  ;;  %v468_v28 = vld [vmem:[%s5759_s0 + $0xf0] sm:$0xff] }
 0x102   :  { %v817_v55 = vpop.f32.mrf.mxu1  ;;  %v832_v32 = vmax.f32 %v804_v49, 0.0 }
 0x103   :  { %1022 = vmatprep.subr.mxu0 %v855_v3  ;;  %923 = vmatmul.mubr.f32.vlgmr.msra.gmra.mxu0 %v462_v57  ;;  %v818_v6 = vadd.f32 %v817_v55, %v5023_v4  ;;  %v838_v57 = vmax.f32 %v721_v14, 0.0  ;;  %v816_v3 = vadd.f32 %v815_v11, %v5023_v4  ;;  %v469_v55 = vld [vmem:[%s5759_s0 + $0xf8] sm:$0xff]  ;;  %v830_v11 = vmax.f32 %v715_v9, 0.0 }
 0x104   :  { %v821_v53 = vpop.f32.mrf.mxu1  ;;  %957 = vmatpush1.xpose.msra.mxu1 %v836_v19  ;;  %1023 = vmatpush1.xpose.msra.mxu0 %v854_v20  ;;  %v831_v19 = vmax.f32 %v717_v63, 0.0  ;;  %v141_v14 = vadd.f32 %v4967_v30, %v5026_v8  ;;  %v240_v30 = vadd.f32 %v4987_v40, %v5021_v62  ;;  %v438_v63 = vmax.f32 %v145_v47, 0.0  ;;  %v36_v47 = vld [vmem:[%s5759_s0 + $0xb8] sm:$0xff] }
 0x105   :  { %958 = vmatprep.subr.mxu1 %v829_v45  ;;  %1024 = vmatprep.subr.mxu0 %v847_v18  ;;  %v822_v12 = vadd.f32 %v821_v53, %v5021_v62  ;;  %v849_v20 = vmax.f32 %v818_v6, 0.0  ;;  %v848_v45 = vmax.f32 %v816_v3, 0.0  ;;  %v841_v18 = vmax.f32 %v812_v0, 0.0 }
 0x106   :  { %v823_v5 = vpop.f32.mrf.mxu1  ;;  %1062 = vmatprep.mubr.f32.mxu0 %v467_v60  ;;  %v147_v60 = vadd.f32 %v4975_v34, %v5023_v4  ;;  %v446_v53 = vmax.f32 %v151_v13, 0.0  ;;  %v242_v34 = vadd.f32 %v4991_v42, %v5021_v62  ;;  %v431_v42 = vmax.f32 %v141_v14, 0.0  ;;  %v5770_v14 = vld [vmem:[#allocation4_spill] sm:$0xff] }
 0x107   :  { %v824_v7 = vadd.f32 %v823_v5, %v5021_v62  ;;  %v856_v17 = vmax.f32 %v822_v12, 0.0  ;;  %v30_v5 = vld [vmem:[%s5759_s0 + $0x88] sm:$0xff]  ;;  %v430_v40 = vmax.f32 %v139_v2, 0.0  ;;  %v230_v9 = vadd.f32 %v4977_v35, %v5026_v8  ;;  %v5773_v2 = vld [vmem:[#allocation2_spill] sm:$0xff] }
 0x108   :  { %959 = vmatpush1.xpose.msra.mxu1 %v828_v61  ;;  %1025 = vmatpush1.xpose.msra.mxu0 %v846_v23  ;;  %v840_v61 = vmax.f32 %v810_v27, 0.0  ;;  %v833_v23 = vmax.f32 %v806_v16, 0.0  ;;  %v439_v12 = vmax.f32 %v147_v60, 0.0  ;;  %v449_v6 = vmax.f32 %v242_v34, 0.0 }
 0x109   :  { %v857_v21 = vmax.f32 %v824_v7, 0.0  ;;  %1026 = vmatprep.subr.mxu0 %v839_v1  ;;  %v236_v1 = vadd.f32 %v4983_v38, %v5023_v4  ;;  %v135_v7 = vadd.f32 %v4959_v26, %v5038_v22  ;;  %v133_v38 = vadd.f32 %v4955_v24, %v5038_v22 }
 0x10a   :  { %v228_v24 = vadd.f32 %v4973_v33, %v5026_v8  ;;  %v329_v35 = vadd.f32 %v5003_v48, %v5021_v62  ;;  %v325_v0 = vadd.f32 %v4999_v46, %v5023_v4  ;;  %v29_v33 = vld [vmem:[%s5759_s0 + $0x80] sm:$0xff]  ;;  %v222_v48 = vadd.f32 %v4965_v29, %v5038_v22 }
 0x10b   :  { %993 = vmatmul.mubr.f32.vlgmr.msra.gmra.mxu1 %v464_v59  ;;  %1092 = vmatprep.subr.mxu1 %v857_v21  ;;  %v234_v59 = vadd.f32 %v4979_v36, %v5023_v4  ;;  %v448_v21 = vmax.f32 %v240_v30, 0.0  ;;  %v441_v26 = vmax.f32 %v236_v1, 0.0  ;;  %v423_v3 = vmax.f32 %v135_v7, 0.0  ;;  %v1421_v1 = vld [vmem:[%s5760_s1 + $0x38] sm:$0xff]  ;;  %v1418_v7 = vld [vmem:[%s5760_s1 + $0x20] sm:$0xff] }
 0x10c   :  { %1027 = vmatpush1.xpose.msra.mxu0 %v838_v57  ;;  %1093 = vmatpush1.xpose.msra.mxu1 %v856_v17  ;;  %v331_v57 = vadd.f32 %v5007_v50, %v5021_v62  ;;  %v32_v17 = vld [vmem:[%s5759_s0 + $0x98] sm:$0xff]  ;;  %v422_v15 = vmax.f32 %v133_v38, 0.0  ;;  %v224_v50 = vadd.f32 %v4969_v31, %v5038_v22  ;;  %v323_v31 = vadd.f32 %v4995_v44, %v5023_v4 }
 0x10d   :  { %1028 = vmatprep.subr.mxu0 %v831_v19  ;;  %1094 = vmatprep.subr.mxu1 %v849_v20  ;;  %v440_v36 = vmax.f32 %v234_v59, 0.0  ;;  %v433_v19 = vmax.f32 %v230_v9, 0.0  ;;  %v450_v13 = vmax.f32 %v329_v35, 0.0  ;;  %v319_v46 = vadd.f32 %v4993_v43, %v5026_v8 }
 0x10e   :  { %1132 = vmatprep.mubr.f32.mxu1 %v469_v55  ;;  %v451_v20 = vmax.f32 %v331_v57, 0.0  ;;  %v432_v55 = vmax.f32 %v228_v24, 0.0  ;;  %v443_v27 = vmax.f32 %v325_v0, 0.0  ;;  %v424_v29 = vmax.f32 %v222_v48, 0.0 }
 0x10f   :  { %v317_v44 = vadd.f32 %v4989_v41, %v5026_v8  ;;  %v442_v16 = vmax.f32 %v323_v31, 0.0  ;;  %v418_v43 = vadd.f32 %v5015_v56, %v5021_v62  ;;  %v414_v60 = vadd.f32 %v5013_v54, %v5023_v4 }
 0x110   :  { %1029 = vmatpush1.xpose.msra.mxu0 %v830_v11  ;;  %1095 = vmatpush1.xpose.msra.mxu1 %v848_v45  ;;  %v425_v11 = vmax.f32 %v224_v50, 0.0  ;;  %v420_v45 = vadd.f32 %v5017_v58, %v5021_v62  ;;  %v313_v58 = vadd.f32 %v4985_v39, %v5038_v22  ;;  %v311_v41 = vadd.f32 %v4981_v37, %v5038_v22 }
 0x111   :  { %1096 = vmatprep.subr.mxu1 %v841_v18  ;;  %1162 = vmatprep.subr.mxu0 %v447_v10  ;;  %v34_v10 = vld [vmem:[%s5759_s0 + $0xa8] sm:$0xff]  ;;  %v435_v18 = vmax.f32 %v319_v46, 0.0  ;;  %v434_v56 = vmax.f32 %v317_v44, 0.0  ;;  %v412_v39 = vadd.f32 %v5011_v52, %v5023_v4  ;;  %v452_v62 = vmax.f32 %v418_v43, 0.0  ;;  %v5243_v43 = vld [vmem:[%s5760_s1 + $0x50] sm:$0xff] }
 0x112   :  { %v427_v49 = vmax.f32 %v313_v58, 0.0  ;;  %v408_v54 = vadd.f32 %v5009_v51, %v5026_v8  ;;  %v426_v37 = vmax.f32 %v311_v41, 0.0  ;;  %v406_v34 = vadd.f32 %v5770_v14, %v5026_v8  ;;  %v5771_v4 = vld [vmem:[#allocation3_spill] sm:$0xff] }
 0x113   :  { %1063 = vmatmul.mubr.f32.vlgmr.msra.gmra.mxu0 %v466_v25  ;;  %v453_v25 = vmax.f32 %v420_v45, 0.0  ;;  %v444_v52 = vmax.f32 %v412_v39, 0.0  ;;  %v400_v30 = vadd.f32 %v5773_v2, %v5038_v22  ;;  %v5227_v44 = vld [vmem:[%s5760_s1 + $0xca] ss:$0 sm:$0xff]  ;;  %v5285_v2 = vld [vmem:[%s5760_s1 + $0xc8] ss:$0 sm:$0xff] }
 0x114   :  { %1097 = vmatpush1.xpose.msra.mxu1 %v840_v61  ;;  %1163 = vmatpush1.xpose.msra.mxu0 %v446_v53  ;;  %v31_v53 = vld [vmem:[%s5759_s0 + $0x90] sm:$0xff]  ;;  %v445_v61 = vmax.f32 %v414_v60, 0.0  ;;  %v437_v51 = vmax.f32 %v408_v54, 0.0  ;;  %v5250_v58 = vld [vmem:[%s5760_s1 + $0x48] sm:$0xff] }
 0x115   :  { %1098 = vmatprep.subr.mxu1 %v833_v23  ;;  %1164 = vmatprep.subr.mxu0 %v439_v12  ;;  %v402_v23 = vadd.f32 %v5771_v4, %v5038_v22  ;;  %v33_v12 = vld [vmem:[%s5759_s0 + $0xa0] sm:$0xff]  ;;  %v1420_v22 = vld [vmem:[%s5760_s1 + $0x30] sm:$0xff]  ;;  %v5271_v4 = vld [vmem:[%s5761_s2 + $0x38] sm:$0xff] }
 0x116   :  { %1202 = vmatprep.mubr.f32.mxu0 %v30_v5  ;;  %v5772_v5 = vmov 0.0  }
 0x117   :  { %v429_v8 = vmax.f32 %v402_v23, 0.0 }
 0x118   :  { %1099 = vmatpush1.xpose.msra.mxu1 %v832_v32  ;;  %1165 = vmatpush1.xpose.msra.mxu0 %v438_v63  ;;  %v436_v32 = vmax.f32 %v406_v34, 0.0  ;;  %v428_v63 = vmax.f32 %v400_v30, 0.0 }
 0x119   :  { %1166 = vmatprep.subr.mxu0 %v431_v42  ;;  %1232 = vmatprep.subr.mxu1 %v449_v6  ;;  %v35_v42 = vld [vmem:[%s5759_s0 + $0xb0] sm:$0xff]  ;;  %v1419_v6 = vld [vmem:[%s5760_s1 + $0x28] sm:$0xff] }
 0x11b   :  { %1133 = vmatmul.mubr.f32.vlgmr.msra.gmra.mxu1 %v468_v28 }
 0x11c   :  { %1167 = vmatpush1.xpose.msra.mxu0 %v430_v40  ;;  %1233 = vmatpush1.xpose.msra.mxu1 %v448_v21 }
 0x11d   :  { %1168 = vmatprep.subr.mxu0 %v423_v3  ;;  %1234 = vmatprep.subr.mxu1 %v441_v26 }
 0x11e   :  { %1272 = vmatprep.mubr.f32.mxu1 %v32_v17 }
 0x120   :  { %1169 = vmatpush1.xpose.msra.mxu0 %v422_v15  ;;  %1235 = vmatpush1.xpose.msra.mxu1 %v440_v36 }
 0x121   :  { %1236 = vmatprep.subr.mxu1 %v433_v19  ;;  %1302 = vmatprep.subr.mxu0 %v451_v20 }
 0x123   :  { %1203 = vmatmul.mubr.f32.vlgmr.msra.gmra.mxu0 %v29_v33 }
 0x124   :  { %1237 = vmatpush1.xpose.msra.mxu1 %v432_v55  ;;  %1303 = vmatpush1.xpose.msra.mxu0 %v450_v13 }
 0x125   :  { %1238 = vmatprep.subr.mxu1 %v425_v11  ;;  %1304 = vmatprep.subr.mxu0 %v443_v27  ;;  %v4256_v11 = vld [vmem:[%s5760_s1 + $0x40] ss:$0 sm:$0xff] }
 0x126   :  { %1342 = vmatprep.mubr.f32.mxu0 %v34_v10 }
 0x128   :  { %1239 = vmatpush1.xpose.msra.mxu1 %v424_v29  ;;  %1305 = vmatpush1.xpose.msra.mxu0 %v442_v16  ;;  %v5221_v29 = vld [vmem:[%s5760_s1 + $0x60] sm:$0xff]  ;;  %v5235_v16 = vld [vmem:[%s5760_s1 + $0x58] sm:$0xff] }
 0x129   :  { %1306 = vmatprep.subr.mxu0 %v435_v18  ;;  %1372 = vmatprep.subr.mxu1 %v453_v25 }
 0x12b   :  { %1273 = vmatmul.mubr.f32.vlgmr.msra.gmra.mxu1 %v31_v53 }
 0x12c   :  { %1307 = vmatpush1.xpose.msra.mxu0 %v434_v56  ;;  %1373 = vmatpush1.xpose.msra.mxu1 %v452_v62 }
 0x12d   :  { %1308 = vmatprep.subr.mxu0 %v427_v49  ;;  %1374 = vmatprep.subr.mxu1 %v445_v61 }
 0x12e   :  { %1412 = vmatprep.mubr.f32.mxu1 %v36_v47 }
 0x130   :  { %1309 = vmatpush1.xpose.msra.mxu0 %v426_v37  ;;  %1375 = vmatpush1.xpose.msra.mxu1 %v444_v52 }
 0x131   :  { %1376 = vmatprep.subr.mxu1 %v437_v51  ;;  %4413 = vmatprep.subr.mxu0 %v5772_v5 }
 0x133   :  { %1343 = vmatmul.mubr.f32.vlgmr.msra.gmra.mxu0 %v33_v12 }
 0x134   :  { %1377 = vmatpush1.xpose.msra.mxu1 %v436_v32  ;;  %4414 = vmatpush3.msra.mxu0 %v1421_v1 }
 0x135   :  { %1378 = vmatprep.subr.mxu1 %v429_v8  ;;  %4415 = vmatprep.subr.mxu0 %v5772_v5 }
 0x136   :  { %4416 = vmatpush3.msra.mxu0 %v1420_v22  ;;  %4421 = vmatprep.mubr.msk.f32.mxu0 %vm4735_vm1, %v5772_v5 }
 0x137   :  { %4417 = vmatprep.subr.mxu0 %v5772_v5 }
 0x138   :  { %1379 = vmatpush1.xpose.msra.mxu1 %v428_v63  ;;  %4418 = vmatpush3.msra.mxu0 %v1419_v6 }
 0x139   :  { %4424 = vmatprep.subr.mxu1 %v5772_v5  ;;  %4419 = vmatprep.subr.mxu0 %v5772_v5 }
 0x13a   :  { %4420 = vmatpush3.msra.mxu0 %v1418_v7 }
 0x13b   :  { %1413 = vmatmul.mubr.f32.vlgmr.msra.gmra.mxu1 %v35_v42  ;;  %4435 = vmatprep.subr.mxu0 %v5772_v5 }
 0x13c   :  { %4432 = vmatprep.mubr.msk.f32.mxu1 %vm4735_vm1, %v5772_v5  ;;  %4425 = vmatpush3.msra.mxu1 %v5221_v29 }
 0x13d   :  { %4426 = vmatprep.subr.mxu1 %v5772_v5 }
 0x13e   :  { %4427 = vmatpush3.msra.mxu1 %v5235_v16 }
 0x13f   :  { %4428 = vmatprep.subr.mxu1 %v5772_v5 }
 0x140   :  { %4429 = vmatpush3.msra.mxu1 %v5243_v43 }
 0x141   :  { %4430 = vmatprep.subr.mxu1 %v5772_v5 }
 0x142   :  { %4431 = vmatpush3.msra.mxu1 %v5250_v58 }
 0x143   :  { %4446 = vmatprep.subr.mxu1 %v5772_v5 }
 0x1c3   :  { %v924_v28 = vpop.f32.mrf.mxu0 }
 0x1c5   :  { %v926_v40 = vpop.f32.mrf.mxu0 }
 0x1cb   :  { %v994_v59 = vpop.f32.mrf.mxu1 }
 0x1cc   :  { %v995_v35 = vadd.f32 %v994_v59, %v924_v28  ;;  %v5318_v59 = vld [vmem:[%s5761_s2 + $0x40] sm:$0xff] }
 0x1cd   :  { %v996_v21 = vpop.f32.mrf.mxu1 }
 0x1d3   :  { %v1064_v38 = vpop.f32.mrf.mxu0 }
 0x1d4   :  { %v1065_v15 = vadd.f32 %v1064_v38, %v995_v35 }
 0x1d5   :  { %v1066_v9 = vpop.f32.mrf.mxu0 }
 0x1db   :  { %v1134_v26 = vpop.f32.mrf.mxu1 }
 0x1dc   :  { %v1135_v19 = vadd.f32 %v1134_v26, %v1065_v15 }
 0x1dd   :  { %v1136_v57 = vpop.f32.mrf.mxu1 }
 0x1e3   :  { %v1204_v3 = vpop.f32.mrf.mxu0 }
 0x1e4   :  { %v1205_v20 = vadd.f32 %v1204_v3, %v1135_v19 }
 0x1e5   :  { %v1206_v17 = vpop.f32.mrf.mxu0 }
 0x1eb   :  { %v1274_v24 = vpop.f32.mrf.mxu1 }
 0x1ec   :  { %v1275_v33 = vadd.f32 %v1274_v24, %v1205_v20 }
 0x1ed   :  { %v1276_v36 = vpop.f32.mrf.mxu1 }
 0x1f3   :  { %v1344_v50 = vpop.f32.mrf.mxu0 }
 0x1f4   :  { %v1345_v48 = vadd.f32 %v1344_v50, %v1275_v33 }
 0x1f5   :  { %v1346_v0 = vpop.f32.mrf.mxu0 }
 0x1fb   :  { %v1414_v55 = vpop.f32.mrf.mxu1 }
 0x1fc   :  { %v1415_v31 = vadd.f32 %v1414_v55, %v1345_v48 }
 0x1fd   :  { %v1416_v13 = vpop.f32.mrf.mxu1 }
 0x1fe   :  { %4422 = vmatmul.mubr.msk.f32.vlgmr.msra.gmra.mxu0 %vm1427_vm2, %v1415_v31 }
 0x1ff   :  { %4443 = vmatprep.mubr.msk.f32.mxu0 %vm4735_vm1, %v5772_v5 }
 0x2be   :  { %v1497_v46 = vpop.f32.mrf.mxu0 }
 0x2bf   :  { %v5214_v27 = vadd.f32 %v4256_v11, %v1497_v46 }
 0x2c0   :  { %v4423_v45 = vpop.f32.mrf.mxu0 }
 0x2c1   :  { %v1505_v10 = vsel %vm1427_vm2, %v5214_v27, 0.0 }
 0x2c2   :  { %1506 = vadd.xlane.f32.xlu0 %v1505_v10 }
 0x2d8   :  { %1525 = vrot.lane.b32.xlu0 %v5227_v44, %s4736_s28 }
 0x2dc   :  { %1619 = vrot.lane.b32.xlu0 %v5235_v16, %s4737_s6 }
 0x34b   :  { %v1507_v18 = vpop.xlane.xlu0 %1506 }
 0x34c   :  { %v1509_v60 = vmul.f32 0.03125, %v1507_v18 }
 0x34e   :  { %v1510_v25 = vsub.f32 %v5214_v27, %v1509_v60 }
 0x34f   :  { %v1526_v56 = vpop.permute.xlu0 %1525 }
 0x350   :  { %v1511_v53 = vmul.f32 %v1510_v25, %v1510_v25 }
 0x352   :  { %v1512_v41 = vsel %vm1427_vm2, %v1511_v53, 0.0 }
 0x353   :  { %1513 = vadd.xlane.f32.xlu1 %v1512_v41  ;;  %v1620_v61 = vpop.permute.xlu0 %1619 }
 0x364   :  { %1621 = vrot.lane.b32.xlu1 %v5221_v29, %s4737_s6 }
 0x368   :  { %1617 = vrot.lane.b32.xlu1 %v5243_v43, %s4737_s6 }
 0x36c   :  { %1615 = vrot.lane.b32.xlu1 %v5250_v58, %s4737_s6 }
 0x3dc   :  { %v1514_v39 = vpop.xlane.xlu1 %1513 }
 0x3dd   :  { %v1515_v62 = vmul.f32 0.03125, %v1514_v39 }
 0x3df   :  { %v1516_v49 = vadd.f32 1e-05, %v1515_v62 }
 0x3e0   :  { %v1622_v54 = vpop.permute.xlu1 %1621 }
 0x3e1   :  { %4687 = vrsqrt.f32 %v1516_v49  ;;  %4436 = vmatpush3.msra.mxu0 %v1622_v54 }
 0x3e2   :  { %4437 = vmatprep.subr.mxu0 %v5772_v5 }
 0x3e3   :  { %4438 = vmatpush3.msra.mxu0 %v1620_v61 }
 0x3e4   :  { %v1618_v47 = vpop.permute.xlu1 %1617  ;;  %4439 = vmatprep.subr.mxu0 %v5772_v5 }
 0x3e5   :  { %4440 = vmatpush3.msra.mxu0 %v1618_v47 }
 0x3e6   :  { %4441 = vmatprep.subr.mxu0 %v5772_v5 }
 0x3e8   :  { %v1616_v37 = vpop.permute.xlu1 %1615 }
 0x3e9   :  { %4442 = vmatpush3.msra.mxu0 %v1616_v37 }
 0x3ea   :  { %4456 = vmatprep.subr.mxu0 %v5772_v5 }
 0x3ee   :  { %v4688_v14 = vpop.eup %4687 }
 0x3ef   :  { %v1518_v34 = vmul.f32 %v4688_v14, %v1510_v25 }
 0x3f1   :  { %v1523_v52 = vmul.f32 %v5227_v44, %v1518_v34 }
 0x3f3   :  { %v1528_v23 = vadd.f32 %v1526_v56, %v1523_v52 }
 0x3f5   :  { %v1529_v51 = vadd.f32 %v1528_v23, %v5271_v4  ;;  %4444 = vmatmul.mubr.msk.f32.vlgmr.msra.gmra.mxu0 %vm1427_vm2, %v1528_v23 }
 0x3f6   :  { %4458 = vmatprep.mubr.msk.f32.mxu0 %vm4735_vm1, %v5772_v5 }
 0x3f7   :  { %4433 = vmatmul.mubr.msk.f32.vlgmr.msra.gmra.mxu1 %vm1427_vm2, %v1529_v51 }
 0x3f8   :  { %4448 = vmatprep.mubr.msk.f32.mxu1 %vm4735_vm1, %v5772_v5 }
 0x4b5   :  { %v5280_v12 = vpop.f32.mrf.mxu0 }
 0x4b7   :  { %v1607_v30 = vpop.f32.mrf.mxu1  ;;  %v4445_v32 = vpop.f32.mrf.mxu0 }
 0x4b8   :  { %v1608_v8 = vadd.f32 %v5285_v2, %v1607_v30 }
 0x4b9   :  { %v4434_v63 = vpop.f32.mrf.mxu1 }
 0x4ba   :  { %1865 = vrot.lane.b32.xlu1 %v1608_v8, %s4738_s15  ;;  %1705 = vrot.lane.b32.xlu0 %v1608_v8, %s4736_s28 }
 0x4be   :  { %2031 = vrot.lane.b32.xlu1 %v1608_v8, %s4739_s16  ;;  %1867 = vrot.lane.b32.xlu0 %v1608_v8, %s4740_s17 }
 0x4c2   :  { %2196 = vrot.lane.b32.xlu1 %v1608_v8, %s4741_s18  ;;  %2033 = vrot.lane.b32.xlu0 %v1608_v8, %s4742_s19 }
 0x4c6   :  { %2198 = vrot.lane.b32.xlu0 %v1608_v8, %s4743_s20 }
 0x52c   :  { %v1706_v42 = vpop.permute.xlu0 %1705  ;;  %v1866_v1 = vpop.permute.xlu1 %1865 }
 0x52d   :  { %4447 = vmatpush3.xpose.msk.msra.mxu1 %vm57_vm0, %v1706_v42 }
 0x52e   :  { %4451 = vmatprep.subr.mxu1 %v5772_v5 }
 0x530   :  { %4449 = vmatmul.mubr.msk.f32.vlgmr.msra.gmra.mxu1 %vm57_vm0, %v1608_v8  ;;  %v1868_v22 = vpop.permute.xlu0 %1867  ;;  %v2032_v7 = vpop.permute.xlu1 %2031 }
 0x531   :  { %4457 = vmatpush3.xpose.msk.msra.mxu0 %vm57_vm0, %v1868_v22  ;;  %4453 = vmatprep.mubr.msk.f32.mxu1 %vm4735_vm1, %v5772_v5 }
 0x532   :  { %4466 = vmatprep.subr.mxu0 %v5772_v5 }
 0x534   :  { %4459 = vmatmul.mubr.msk.f32.vlgmr.msra.gmra.mxu0 %vm57_vm0, %v1866_v1  ;;  %v2034_v6 = vpop.permute.xlu0 %2033  ;;  %v2197_v40 = vpop.permute.xlu1 %2196 }
 0x535   :  { %4467 = vmatpush3.xpose.msk.msra.mxu0 %vm57_vm0, %v2034_v6  ;;  %4468 = vmatprep.mubr.msk.f32.mxu0 %vm4735_vm1, %v5772_v5 }
 0x536   :  { %4476 = vmatprep.subr.mxu0 %v5772_v5 }
 0x538   :  { %4469 = vmatmul.mubr.msk.f32.vlgmr.msra.gmra.mxu0 %vm57_vm0, %v2032_v7  ;;  %v2199_v28 = vpop.permute.xlu0 %2198 }
 0x539   :  { %4477 = vmatpush3.xpose.msk.msra.mxu0 %vm57_vm0, %v2199_v28  ;;  %4478 = vmatprep.mubr.msk.f32.mxu0 %vm4735_vm1, %v5772_v5 }
 0x53a   :  { %4486 = vmatprep.subr.mxu0 %v5772_v5 }
 0x53c   :  { %4479 = vmatmul.mubr.msk.f32.vlgmr.msra.gmra.mxu0 %vm57_vm0, %v2197_v40 }
 0x53d   :  { %4494 = vmatprep.mubr.msk.f32.mxu0 %vm4735_vm1, %v5772_v5 }
 0x5f0   :  { %v1777_v21 = vpop.f32.mrf.mxu1 }
 0x5f1   :  { %v1778_v38 = vadd.f32 %v1777_v21, %v5318_v59 }
 0x5f2   :  { %v4450_v9 = vpop.f32.mrf.mxu1 }
 0x5f3   :  { %v1781_v26 = vsel %vm57_vm0, %v1778_v38, -inf }
 0x5f4   :  { %1782 = vmax.xlane.f32.xlu0 %v1781_v26  ;;  %v1939_v57 = vpop.f32.mrf.mxu0 }
 0x5f5   :  { %v1940_v3 = vadd.f32 %v1939_v57, %v5318_v59 }
 0x5f6   :  { %v4460_v17 = vpop.f32.mrf.mxu0 }
 0x5f7   :  { %v1943_v24 = vsel %vm57_vm0, %v1940_v3, -inf }
 0x5f8   :  { %1944 = vmax.xlane.f32.xlu1 %v1943_v24  ;;  %v2105_v36 = vpop.f32.mrf.mxu0 }
 0x5f9   :  { %v2106_v35 = vadd.f32 %v2105_v36, %v5318_v59 }
 0x5fa   :  { %v4470_v15 = vpop.f32.mrf.mxu0 }
 0x5fb   :  { %v2109_v50 = vsel %vm57_vm0, %v2106_v35, -inf }
 0x5fc   :  { %2110 = vmax.xlane.f32.xlu0 %v2109_v50  ;;  %v2270_v19 = vpop.f32.mrf.mxu0 }
 0x5fd   :  { %v2271_v0 = vadd.f32 %v2270_v19, %v5318_v59 }
 0x5fe   :  { %v4480_v20 = vpop.f32.mrf.mxu0 }
 0x5ff   :  { %v2274_v33 = vsel %vm57_vm0, %v2271_v0, -inf }
 0x600   :  { %2275 = vmax.xlane.f32.xlu0 %v2274_v33 }
 0x609   :  { %1628 = vrot.lane.b32.xlu1 %v5285_v2, %s4737_s6 }
 0x67d   :  { %v1783_v48 = vpop.xlane.xlu0 %1782 }
 0x67e   :  { %v1784_v55 = vsub.f32 %v1778_v38, %v1783_v48 }
 0x680   :  { %v1785_v31 = vmul.f32 1.442695, %v1784_v55 }
 0x681   :  { %v1945_v13 = vpop.xlane.xlu1 %1944 }
 0x682   :  { %4689 = vpow2.f32 %v1785_v31  ;;  %v1946_v11 = vsub.f32 %v1940_v3, %v1945_v13 }
 0x684   :  { %v1947_v46 = vmul.f32 1.442695, %v1946_v11 }
 0x685   :  { %v1629_v45 = vpop.permute.xlu1 %1628  ;;  %v2111_v10 = vpop.xlane.xlu0 %2110 }
 0x686   :  { %4691 = vpow2.f32 %v1947_v46  ;;  %v1701_v18 = vadd.f32 %v5280_v12, %v1629_v45  ;;  %v2112_v60 = vsub.f32 %v2106_v35, %v2111_v10  ;;  %v2491_v10 = vld [vmem:[%s5760_s1 + $0x78] sm:$0xff] }
 0x688   :  { %v2113_v25 = vmul.f32 1.442695, %v2112_v60  ;;  %1955 = vrot.lane.b32.xlu1 %v1701_v18, %s4738_s15  ;;  %4452 = vmatpush3.msra.mxu1 %v1701_v18  ;;  %v2489_v60 = vld [vmem:[%s5760_s1 + $0x68] sm:$0xff] }
 0x689   :  { %v2276_v53 = vpop.xlane.xlu0 %2275  ;;  %4461 = vmatprep.subr.mxu1 %v5772_v5 }
 0x68a   :  { %4693 = vpow2.f32 %v2113_v25  ;;  %v2277_v41 = vsub.f32 %v2271_v0, %v2276_v53  ;;  %v2500_v25 = vld [vmem:[%s5760_s1 + $0xc0] sm:$0xff]  ;;  %v4275_v53 = vld [vmem:[%s5760_s1 + $0xc9] ss:$0 sm:$0xff] }
 0x68c   :  { %v2278_v56 = vmul.f32 1.442695, %v2277_v41  ;;  %2285 = vrot.lane.b32.xlu1 %v1701_v18, %s4741_s18  ;;  %v2498_v41 = vld [vmem:[%s5760_s1 + $0xb0] sm:$0xff] }
 0x68e   :  { %4695 = vpow2.f32 %v2278_v56  ;;  %v2497_v56 = vld [vmem:[%s5760_s1 + $0xa8] sm:$0xff] }
 0x68f   :  { %v4690_v39 = vpop.eup %4689 }
 0x690   :  { %v1787_v62 = vsel %vm57_vm0, %v4690_v39, 0.0  ;;  %2384 = vrot.lane.b32.xlu1 %v5221_v29, %s4744_s22 }
 0x691   :  { %1788 = vadd.xlane.f32.xlu0 %v1787_v62 }
 0x693   :  { %v4692_v49 = vpop.eup %4691 }
 0x694   :  { %v1949_v54 = vsel %vm57_vm0, %v4692_v49, 0.0  ;;  %2382 = vrot.lane.b32.xlu1 %v5235_v16, %s4744_s22 }
 0x695   :  { %1950 = vadd.xlane.f32.xlu0 %v1949_v54 }
 0x697   :  { %v4694_v61 = vpop.eup %4693 }
 0x698   :  { %v2115_v47 = vsel %vm57_vm0, %v4694_v61, 0.0  ;;  %2380 = vrot.lane.b32.xlu1 %v5243_v43, %s4744_s22 }
 0x699   :  { %2116 = vadd.xlane.f32.xlu0 %v2115_v47 }
 0x69b   :  { %v4696_v37 = vpop.eup %4695 }
 0x69c   :  { %v2280_v14 = vsel %vm57_vm0, %v4696_v37, 0.0 }
 0x69d   :  { %2281 = vadd.xlane.f32.xlu0 %v2280_v14 }
 0x6b3   :  { %2120 = vrot.lane.b32.xlu0 %v1701_v18, %s4739_s16  ;;  %v2490_v18 = vld [vmem:[%s5760_s1 + $0x70] sm:$0xff] }
 0x6fa   :  { %v1956_v32 = vpop.permute.xlu1 %1955 }
 0x6fe   :  { %v2286_v42 = vpop.permute.xlu1 %2285 }
 0x702   :  { %v2385_v6 = vpop.permute.xlu1 %2384 }
 0x703   :  { %4487 = vmatpush3.msra.mxu0 %v2385_v6 }
 0x704   :  { %4488 = vmatprep.subr.mxu0 %v5772_v5 }
 0x706   :  { %v2383_v7 = vpop.permute.xlu1 %2382 }
 0x707   :  { %4489 = vmatpush3.msra.mxu0 %v2383_v7 }
 0x708   :  { %4490 = vmatprep.subr.mxu0 %v5772_v5 }
 0x70a   :  { %v2381_v28 = vpop.permute.xlu1 %2380 }
 0x70b   :  { %4491 = vmatpush3.msra.mxu0 %v2381_v28 }
 0x70c   :  { %4492 = vmatprep.subr.mxu0 %v5772_v5 }
 0x71a   :  { %v1789_v34 = vpop.xlane.xlu0 %1788 }
 0x71b   :  { %4697 = vrcp.f32 %v1789_v34 }
 0x71e   :  { %v1951_v52 = vpop.xlane.xlu0 %1950 }
 0x71f   :  { %4699 = vrcp.f32 %v1951_v52 }
 0x722   :  { %v2117_v23 = vpop.xlane.xlu0 %2116 }
 0x723   :  { %4701 = vrcp.f32 %v2117_v23  ;;  %v2495_v23 = vld [vmem:[%s5760_s1 + $0x98] sm:$0xff] }
 0x726   :  { %v2282_v51 = vpop.xlane.xlu0 %2281 }
 0x727   :  { %4703 = vrcp.f32 %v2282_v51  ;;  %v2494_v51 = vld [vmem:[%s5760_s1 + $0x90] sm:$0xff] }
 0x728   :  { %v4698_v12 = vpop.eup %4697 }
 0x729   :  { %v1791_v30 = vmul.f32 %v4698_v12, %v4690_v39  ;;  %v2496_v39 = vld [vmem:[%s5760_s1 + $0xa0] sm:$0xff]  ;;  %v2493_v12 = vld [vmem:[%s5760_s1 + $0x88] sm:$0xff] }
 0x72a   :  { %v2121_v43 = vpop.permute.xlu0 %2120 }
 0x72b   :  { %4454 = vmatmul.mubr.msk.f32.vlgmr.msra.gmra.mxu1 %vm57_vm0, %v1791_v30 }
 0x72c   :  { %v4700_v29 = vpop.eup %4699  ;;  %4462 = vmatpush3.msra.mxu1 %v1956_v32  ;;  %4463 = vmatprep.mubr.msk.f32.mxu1 %vm4735_vm1, %v5772_v5 }
 0x72d   :  { %4471 = vmatprep.subr.mxu1 %v5772_v5  ;;  %v1953_v16 = vmul.f32 %v4700_v29, %v4692_v49 }
 0x72f   :  { %4464 = vmatmul.mubr.msk.f32.vlgmr.msra.gmra.mxu1 %vm57_vm0, %v1953_v16 }
 0x730   :  { %v4702_v8 = vpop.eup %4701  ;;  %4472 = vmatpush3.msra.mxu1 %v2121_v43  ;;  %4473 = vmatprep.mubr.msk.f32.mxu1 %vm4735_vm1, %v5772_v5 }
 0x731   :  { %4481 = vmatprep.subr.mxu1 %v5772_v5  ;;  %v2119_v63 = vmul.f32 %v4702_v8, %v4694_v61 }
 0x733   :  { %4474 = vmatmul.mubr.msk.f32.vlgmr.msra.gmra.mxu1 %vm57_vm0, %v2119_v63 }
 0x734   :  { %v4704_v1 = vpop.eup %4703  ;;  %4482 = vmatpush3.msra.mxu1 %v2286_v42  ;;  %4483 = vmatprep.mubr.msk.f32.mxu1 %vm4735_vm1, %v5772_v5 }
 0x735   :  { %v2284_v22 = vmul.f32 %v4704_v1, %v4696_v37  ;;  %4497 = vmatprep.subr.mxu1 %v5772_v5 }
 0x737   :  { %4484 = vmatmul.mubr.msk.f32.vlgmr.msra.gmra.mxu1 %vm57_vm0, %v2284_v22 }
 0x738   :  { %4505 = vmatprep.mubr.msk.f32.mxu1 %vm4735_vm1, %v5772_v5 }
 0x7eb   :  { %v1861_v40 = vpop.f32.mrf.mxu1 }
 0x7ed   :  { %v4455_v21 = vpop.f32.mrf.mxu1 }
 0x7ef   :  { %v2027_v38 = vpop.f32.mrf.mxu1 }
 0x7f0   :  { %2362 = vrot.lane.b32.xlu1 %v2027_v38, %s4745_s23  ;;  %v5456_v38 = vld [vmem:[%s5760_s1 + $0xe8] sm:$0xff] }
 0x7f1   :  { %v4465_v9 = vpop.f32.mrf.mxu1 }
 0x7f2   :  { %v5461_v9 = vld [vmem:[%s5760_s1 + $0xe0] sm:$0xff] }
 0x7f3   :  { %v2192_v26 = vpop.f32.mrf.mxu1 }
 0x7f4   :  { %2366 = vrot.lane.b32.xlu0 %v2192_v26, %s4746_s24  ;;  %v5470_v26 = vld [vmem:[%s5760_s1 + $0x152] ss:$0 sm:$0xff] }
 0x7f5   :  { %v4475_v57 = vpop.f32.mrf.mxu1 }
 0x7f6   :  { %v5477_v57 = vld [vmem:[%s5760_s1 + $0xd8] sm:$0xff] }
 0x7f7   :  { %v2357_v3 = vpop.f32.mrf.mxu1 }
 0x7f8   :  { %2378 = vrot.lane.b32.xlu0 %v5250_v58, %s4744_s22  ;;  %2370 = vrot.lane.b32.xlu1 %v2357_v3, %s4747_s25  ;;  %v5483_v3 = vld [vmem:[%s5760_s1 + $0xd0] sm:$0xff] }
 0x7f9   :  { %v4485_v17 = vpop.f32.mrf.mxu1 }
 0x7fc   :  { %2464 = vrot.lane.b32.xlu1 %v5285_v2, %s4744_s22 }
 0x862   :  { %v2363_v24 = vpop.permute.xlu1 %2362 }
 0x863   :  { %v2373_v35 = vsel %vm57_vm0, %v1861_v40, %v2363_v24 }
 0x866   :  { %v2367_v36 = vpop.permute.xlu0 %2366 }
 0x867   :  { %v2375_v15 = vsel %vm2374_vm3, %v2373_v35, %v2367_v36 }
 0x86a   :  { %v2379_v50 = vpop.permute.xlu0 %2378  ;;  %v2371_v19 = vpop.permute.xlu1 %2370 }
 0x86b   :  { %v2377_v0 = vsel %vm2376_vm4, %v2375_v15, %v2371_v19  ;;  %4493 = vmatpush3.msra.mxu0 %v2379_v50 }
 0x86c   :  { %4495 = vmatmul.mubr.msk.f32.vlgmr.msra.gmra.mxu0 %vm1427_vm2, %v2377_v0  ;;  %4508 = vmatprep.subr.mxu0 %v5772_v5 }
 0x86d   :  { %4524 = vmatprep.mubr.msk.f32.mxu0 %vm4735_vm1, %v5772_v5  ;;  %4509 = vmatpush3.msra.mxu0 %v2500_v25 }
 0x86e   :  { %v2465_v2 = vpop.permute.xlu1 %2464  ;;  %4510 = vmatprep.subr.mxu0 %v5772_v5 }
 0x92c   :  { %v2459_v58 = vpop.f32.mrf.mxu0 }
 0x92d   :  { %v2463_v20 = vadd.f32 %v2459_v58, %v5214_v27  ;;  %v2492_v27 = vld [vmem:[%s5760_s1 + $0x80] sm:$0xff] }
 0x92e   :  { %v4496_v33 = vpop.f32.mrf.mxu0  ;;  %4498 = vmatpush3.msra.mxu1 %v2492_v27 }
 0x92f   :  { %v5378_v48 = vadd.f32 %v2465_v2, %v2463_v20  ;;  %4499 = vmatprep.subr.mxu1 %v5772_v5  ;;  %v5496_v2 = vld [vmem:[%s5760_s1 + $0x150] ss:$0 sm:$0xff] }
 0x930   :  { %4500 = vmatpush3.msra.mxu1 %v2491_v10 }
 0x931   :  { %v2468_v55 = vsel %vm1427_vm2, %v5378_v48, 0.0  ;;  %4501 = vmatprep.subr.mxu1 %v5772_v5 }
 0x932   :  { %2469 = vadd.xlane.f32.xlu0 %v2468_v55  ;;  %4502 = vmatpush3.msra.mxu1 %v2490_v18 }
 0x933   :  { %4503 = vmatprep.subr.mxu1 %v5772_v5 }
 0x934   :  { %4504 = vmatpush3.msra.mxu1 %v2489_v60 }
 0x935   :  { %4527 = vmatprep.subr.mxu1 %v5772_v5 }
 0x948   :  { %2481 = vrot.lane.b32.xlu0 %v5227_v44, %s4737_s6 }
 0x94c   :  { %2656 = vrot.lane.b32.xlu0 %v4275_v53, %s4737_s6 }
 0x9bb   :  { %v2470_v31 = vpop.xlane.xlu0 %2469 }
 0x9bc   :  { %v2471_v13 = vmul.f32 0.03125, %v2470_v31 }
 0x9be   :  { %v2472_v11 = vsub.f32 %v5378_v48, %v2471_v13 }
 0x9bf   :  { %v2482_v47 = vpop.permute.xlu0 %2481 }
 0x9c0   :  { %v2473_v46 = vmul.f32 %v2472_v11, %v2472_v11 }
 0x9c2   :  { %v2474_v45 = vsel %vm1427_vm2, %v2473_v46, 0.0 }
 0x9c3   :  { %2475 = vadd.xlane.f32.xlu1 %v2474_v45  ;;  %v2657_v8 = vpop.permute.xlu0 %2656 }
 0x9d4   :  { %2485 = vrot.lane.b32.xlu1 %v5227_v44, %s4744_s22  ;;  %v2499_v44 = vld [vmem:[%s5760_s1 + $0xb8] sm:$0xff] }
 0x9d5   :  { %4511 = vmatpush3.msra.mxu0 %v2499_v44 }
 0x9d6   :  { %4512 = vmatprep.subr.mxu0 %v5772_v5 }
 0x9d7   :  { %4513 = vmatpush3.msra.mxu0 %v2498_v41 }
 0x9d8   :  { %4514 = vmatprep.subr.mxu0 %v5772_v5 }
 0x9d9   :  { %4515 = vmatpush3.msra.mxu0 %v2497_v56 }
 0x9da   :  { %4516 = vmatprep.subr.mxu0 %v5772_v5 }
 0x9db   :  { %4517 = vmatpush3.msra.mxu0 %v2496_v39 }
 0x9dc   :  { %4518 = vmatprep.subr.mxu0 %v5772_v5 }
 0x9dd   :  { %4519 = vmatpush3.msra.mxu0 %v2495_v23 }
 0x9de   :  { %4520 = vmatprep.subr.mxu0 %v5772_v5 }
 0x9df   :  { %4521 = vmatpush3.msra.mxu0 %v2494_v51 }
 0x9e0   :  { %4522 = vmatprep.subr.mxu0 %v5772_v5 }
 0x9e1   :  { %4523 = vmatpush3.msra.mxu0 %v2493_v12 }
 0x9e2   :  { %4549 = vmatprep.subr.mxu0 %v5772_v5 }
 0xa4c   :  { %v2476_v62 = vpop.xlane.xlu1 %2475 }
 0xa4d   :  { %v2477_v49 = vmul.f32 0.03125, %v2476_v62 }
 0xa4f   :  { %v2478_v54 = vadd.f32 1e-05, %v2477_v49 }
 0xa50   :  { %v2486_v14 = vpop.permute.xlu1 %2485 }
 0xa51   :  { %4705 = vrsqrt.f32 %v2478_v54 }
 0xa5e   :  { %v4706_v61 = vpop.eup %4705 }
 0xa5f   :  { %v2480_v37 = vmul.f32 %v4706_v61, %v2472_v11 }
 0xa61   :  { %v2484_v34 = vmul.f32 %v2482_v47, %v2480_v37 }
 0xa63   :  { %v2488_v52 = vadd.f32 %v2486_v14, %v2484_v34 }
 0xa65   :  { %4506 = vmatmul.mubr.msk.f32.vlgmr.msra.gmra.mxu1 %vm1427_vm2, %v2488_v52 }
 0xa66   :  { %4535 = vmatprep.mubr.msk.f32.mxu1 %vm4735_vm1, %v5772_v5  ;;  %4528 = vmatpush3.msra.mxu1 %v5456_v38 }
 0xa67   :  { %4529 = vmatprep.subr.mxu1 %v5772_v5 }
 0xa68   :  { %4530 = vmatpush3.msra.mxu1 %v5461_v9 }
 0xa69   :  { %4531 = vmatprep.subr.mxu1 %v5772_v5 }
 0xa6a   :  { %4532 = vmatpush3.msra.mxu1 %v5477_v57 }
 0xa6b   :  { %4533 = vmatprep.subr.mxu1 %v5772_v5 }
 0xa6c   :  { %4534 = vmatpush3.msra.mxu1 %v5483_v3 }
 0xa6d   :  { %4538 = vmatprep.subr.mxu1 %v5772_v5 }
 0xb25   :  { %v2575_v30 = vpop.f32.mrf.mxu1 }
 0xb26   :  { %v2576_v32 = vadd.f32 %v4275_v53, %v2575_v30 }
 0xb27   :  { %v4507_v29 = vpop.f32.mrf.mxu1 }
 0xb28   :  { %v2579_v16 = vmax.f32 %v2576_v32, 0.0 }
 0xb2a   :  { %4525 = vmatmul.mubr.msk.f32.vlgmr.msra.gmra.mxu0 %vm2580_vm5, %v2579_v16 }
 0xb2b   :  { %4551 = vmatprep.mubr.msk.f32.mxu0 %vm4735_vm1, %v5772_v5 }
 0xbea   :  { %v2650_v43 = vpop.f32.mrf.mxu0 }
 0xbeb   :  { %v2654_v63 = vadd.f32 %v2650_v43, %v5378_v48 }
 0xbec   :  { %v4526_v42 = vpop.f32.mrf.mxu0 }
 0xbed   :  { %v5447_v1 = vadd.f32 %v2657_v8, %v2654_v63 }
 0xbef   :  { %v2662_v22 = vsel %vm1427_vm2, %v5447_v1, 0.0 }
 0xbf0   :  { %2663 = vadd.xlane.f32.xlu1 %v2662_v22 }
 0xc79   :  { %v2664_v6 = vpop.xlane.xlu1 %2663 }
 0xc7a   :  { %v2665_v7 = vmul.f32 0.03125, %v2664_v6 }
 0xc7c   :  { %v2666_v28 = vsub.f32 %v5447_v1, %v2665_v7 }
 0xc7e   :  { %v2667_v40 = vmul.f32 %v2666_v28, %v2666_v28 }
 0xc80   :  { %v2668_v21 = vsel %vm1427_vm2, %v2667_v40, 0.0 }
 0xc81   :  { %2669 = vadd.xlane.f32.xlu0 %v2668_v21 }
 0xc97   :  { %2681 = vrot.lane.b32.xlu0 %v5470_v26, %s4736_s28 }
 0xd0a   :  { %v2670_v17 = vpop.xlane.xlu0 %2669 }
 0xd0b   :  { %v2671_v24 = vmul.f32 0.03125, %v2670_v17 }
 0xd0d   :  { %v2672_v36 = vadd.f32 1e-05, %v2671_v24 }
 0xd0e   :  { %v2682_v50 = vpop.permute.xlu0 %2681 }
 0xd0f   :  { %4707 = vrsqrt.f32 %v2672_v36 }
 0xd1c   :  { %v4708_v35 = vpop.eup %4707 }
 0xd1d   :  { %v2674_v15 = vmul.f32 %v4708_v35, %v2666_v28 }
 0xd1f   :  { %v2679_v19 = vmul.f32 %v5470_v26, %v2674_v15 }
 0xd21   :  { %v2684_v0 = vadd.f32 %v2682_v50, %v2679_v19 }
 0xd23   :  { %v2685_v58 = vadd.f32 %v2684_v0, %v5271_v4 }
 0xd25   :  { %4536 = vmatmul.mubr.msk.f32.vlgmr.msra.gmra.mxu1 %vm1427_vm2, %v2685_v58 }
 0xd26   :  { %4546 = vmatprep.mubr.msk.f32.mxu1 %vm4735_vm1, %v5772_v5 }
 0xde5   :  { %v2763_v20 = vpop.f32.mrf.mxu1 }
 0xde6   :  { %v2764_v33 = vadd.f32 %v5496_v2, %v2763_v20 }
 0xde7   :  { %v4537_v48 = vpop.f32.mrf.mxu1 }
 0xde8   :  { %3021 = vrot.lane.b32.xlu0 %v2764_v33, %s4738_s15  ;;  %2861 = vrot.lane.b32.xlu1 %v2764_v33, %s4736_s28 }
 0xdec   :  { %3187 = vrot.lane.b32.xlu0 %v2764_v33, %s4739_s16  ;;  %3023 = vrot.lane.b32.xlu1 %v2764_v33, %s4740_s17  ;;  %s4748_s17 = smov 126  }
 0xdf0   :  { %3352 = vrot.lane.b32.xlu0 %v2764_v33, %s4741_s18  ;;  %3189 = vrot.lane.b32.xlu1 %v2764_v33, %s4742_s19 }
 0xdf4   :  { %3354 = vrot.lane.b32.xlu1 %v2764_v33, %s4743_s20  ;;  %2775 = vrot.lane.b32.xlu0 %v5461_v9, %s4737_s6 }
 0xdf8   :  { %2777 = vrot.lane.b32.xlu1 %v5456_v38, %s4737_s6  ;;  %2771 = vrot.lane.b32.xlu0 %v5483_v3, %s4737_s6 }
 0xdfc   :  { %2773 = vrot.lane.b32.xlu1 %v5477_v57, %s4737_s6 }
 0xe5a   :  { %v3022_v4 = vpop.permute.xlu0 %3021  ;;  %v2862_v55 = vpop.permute.xlu1 %2861 }
 0xe5b   :  { %4550 = vmatpush3.xpose.msk.msra.mxu0 %vm57_vm0, %v2862_v55 }
 0xe5c   :  { %4559 = vmatprep.subr.mxu0 %v5772_v5 }
 0xe5e   :  { %v3188_v31 = vpop.permute.xlu0 %3187  ;;  %4552 = vmatmul.mubr.msk.f32.vlgmr.msra.gmra.mxu0 %vm57_vm0, %v2764_v33  ;;  %v3024_v13 = vpop.permute.xlu1 %3023 }
 0xe5f   :  { %4560 = vmatpush3.xpose.msk.msra.mxu0 %vm57_vm0, %v3024_v13  ;;  %4561 = vmatprep.mubr.msk.f32.mxu0 %vm4735_vm1, %v5772_v5 }
 0xe60   :  { %4569 = vmatprep.subr.mxu0 %v5772_v5 }
 0xe62   :  { %4562 = vmatmul.mubr.msk.f32.vlgmr.msra.gmra.mxu0 %vm57_vm0, %v3022_v4  ;;  %v3190_v11 = vpop.permute.xlu1 %3189  ;;  %v3353_v46 = vpop.permute.xlu0 %3352 }
 0xe63   :  { %4570 = vmatpush3.xpose.msk.msra.mxu0 %vm57_vm0, %v3190_v11  ;;  %4571 = vmatprep.mubr.msk.f32.mxu0 %vm4735_vm1, %v5772_v5 }
 0xe64   :  { %4579 = vmatprep.subr.mxu0 %v5772_v5 }
 0xe66   :  { %4572 = vmatmul.mubr.msk.f32.vlgmr.msra.gmra.mxu0 %vm57_vm0, %v3188_v31  ;;  %v3355_v45 = vpop.permute.xlu1 %3354  ;;  %v2776_v27 = vpop.permute.xlu0 %2775 }
 0xe67   :  { %4580 = vmatpush3.xpose.msk.msra.mxu0 %vm57_vm0, %v3355_v45  ;;  %4581 = vmatprep.mubr.msk.f32.mxu0 %vm4735_vm1, %v5772_v5 }
 0xe68   :  { %4589 = vmatprep.subr.mxu0 %v5772_v5 }
 0xe6a   :  { %4582 = vmatmul.mubr.msk.f32.vlgmr.msra.gmra.mxu0 %vm57_vm0, %v3353_v46  ;;  %v2778_v10 = vpop.permute.xlu1 %2777  ;;  %v2772_v60 = vpop.permute.xlu0 %2771 }
 0xe6b   :  { %4539 = vmatpush3.msra.mxu1 %v2778_v10  ;;  %4597 = vmatprep.mubr.msk.f32.mxu0 %vm4735_vm1, %v5772_v5 }
 0xe6c   :  { %4540 = vmatprep.subr.mxu1 %v5772_v5 }
 0xe6d   :  { %4541 = vmatpush3.msra.mxu1 %v2776_v27 }
 0xe6e   :  { %4542 = vmatprep.subr.mxu1 %v5772_v5  ;;  %v2774_v18 = vpop.permute.xlu1 %2773 }
 0xe6f   :  { %4543 = vmatpush3.msra.mxu1 %v2774_v18 }
 0xe70   :  { %4544 = vmatprep.subr.mxu1 %v5772_v5 }
 0xe71   :  { %4545 = vmatpush3.msra.mxu1 %v2772_v60 }
 0xe72   :  { %4547 = vmatmul.mubr.msk.f32.vlgmr.msra.gmra.mxu1 %vm1427_vm2, %v2684_v0  ;;  %4554 = vmatprep.subr.mxu1 %v5772_v5 }
 0xe73   :  { %4556 = vmatprep.mubr.msk.f32.mxu1 %vm4735_vm1, %v5772_v5 }
 0xf1e   :  { %v2933_v25 = vpop.f32.mrf.mxu0 }
 0xf1f   :  { %v2934_v44 = vadd.f32 %v2933_v25, %v5318_v59 }
 0xf20   :  { %v4553_v53 = vpop.f32.mrf.mxu0 }
 0xf21   :  { %v2937_v41 = vsel %vm57_vm0, %v2934_v44, -inf }
 0xf22   :  { %2938 = vmax.xlane.f32.xlu1 %v2937_v41  ;;  %v3095_v56 = vpop.f32.mrf.mxu0 }
 0xf23   :  { %v3096_v39 = vadd.f32 %v3095_v56, %v5318_v59 }
 0xf24   :  { %v4563_v62 = vpop.f32.mrf.mxu0 }
 0xf25   :  { %v3099_v49 = vsel %vm57_vm0, %v3096_v39, -inf }
 0xf26   :  { %3100 = vmax.xlane.f32.xlu0 %v3099_v49  ;;  %v3261_v54 = vpop.f32.mrf.mxu0 }
 0xf27   :  { %v3262_v61 = vadd.f32 %v3261_v54, %v5318_v59 }
 0xf28   :  { %v4573_v47 = vpop.f32.mrf.mxu0 }
 0xf29   :  { %v3265_v37 = vsel %vm57_vm0, %v3262_v61, -inf }
 0xf2a   :  { %3266 = vmax.xlane.f32.xlu0 %v3265_v37  ;;  %v3426_v14 = vpop.f32.mrf.mxu0 }
 0xf2b   :  { %v3427_v34 = vadd.f32 %v3426_v14, %v5318_v59 }
 0xf2c   :  { %v4583_v52 = vpop.f32.mrf.mxu0 }
 0xf2d   :  { %v3430_v23 = vsel %vm57_vm0, %v3427_v34, -inf }
 0xf2e   :  { %3431 = vmax.xlane.f32.xlu1 %v3430_v23 }
 0xf32   :  { %v2856_v51 = vpop.f32.mrf.mxu1 }
 0xf34   :  { %v4548_v12 = vpop.f32.mrf.mxu1 }
 0xf40   :  { %2784 = vrot.lane.b32.xlu0 %v5496_v2, %s4737_s6 }
 0xfab   :  { %v2939_v30 = vpop.xlane.xlu1 %2938 }
 0xfac   :  { %v2940_v32 = vsub.f32 %v2934_v44, %v2939_v30 }
 0xfae   :  { %v2941_v29 = vmul.f32 1.442695, %v2940_v32 }
 0xfaf   :  { %v3101_v16 = vpop.xlane.xlu0 %3100 }
 0xfb0   :  { %4709 = vpow2.f32 %v2941_v29  ;;  %v3102_v43 = vsub.f32 %v3096_v39, %v3101_v16 }
 0xfb2   :  { %v3103_v8 = vmul.f32 1.442695, %v3102_v43 }
 0xfb3   :  { %v3267_v63 = vpop.xlane.xlu0 %3266 }
 0xfb4   :  { %4711 = vpow2.f32 %v3103_v8  ;;  %v3268_v42 = vsub.f32 %v3262_v61, %v3267_v63  ;;  %v3645_v8 = vld [vmem:[%s5760_s1 + $0x100] sm:$0xff]  ;;  %v3644_v63 = vld [vmem:[%s5760_s1 + $0xf8] sm:$0xff] }
 0xfb6   :  { %v3269_v59 = vmul.f32 1.442695, %v3268_v42  ;;  %v3643_v42 = vld [vmem:[%s5760_s1 + $0xf0] sm:$0xff] }
 0xfb7   :  { %v2785_v22 = vpop.permute.xlu0 %2784  ;;  %v3432_v6 = vpop.xlane.xlu1 %3431 }
 0xfb8   :  { %4713 = vpow2.f32 %v3269_v59  ;;  %v2857_v7 = vadd.f32 %v2856_v51, %v2785_v22  ;;  %v3433_v28 = vsub.f32 %v3427_v34, %v3432_v6  ;;  %v3654_v59 = vld [vmem:[%s5760_s1 + $0x148] sm:$0xff]  ;;  %v4295_v22 = vld [vmem:[%s5760_s1 + $0x151] ss:$0 sm:$0xff]  ;;  %v3652_v6 = vld [vmem:[%s5760_s1 + $0x138] sm:$0xff] }
 0xfba   :  { %v3434_v40 = vmul.f32 1.442695, %v3433_v28  ;;  %3276 = vrot.lane.b32.xlu0 %v2857_v7, %s4739_s16  ;;  %4555 = vmatpush3.msra.mxu1 %v2857_v7  ;;  %v3650_v28 = vld [vmem:[%s5760_s1 + $0x128] sm:$0xff] }
 0xfbb   :  { %4564 = vmatprep.subr.mxu1 %v5772_v5 }
 0xfbc   :  { %4715 = vpow2.f32 %v3434_v40 }
 0xfbd   :  { %v4710_v21 = vpop.eup %4709 }
 0xfbe   :  { %3441 = vrot.lane.b32.xlu0 %v2857_v7, %s4741_s18  ;;  %v2943_v17 = vsel %vm57_vm0, %v4710_v21, 0.0  ;;  %s4749_s18 = smov 127  }
 0xfbf   :  { %2944 = vadd.xlane.f32.xlu1 %v2943_v17 }
 0xfc1   :  { %v4712_v24 = vpop.eup %4711 }
 0xfc2   :  { %v3105_v36 = vsel %vm57_vm0, %v4712_v24, 0.0  ;;  %3538 = vrot.lane.b32.xlu0 %v5456_v38, %s4744_s22 }
 0xfc3   :  { %3106 = vadd.xlane.f32.xlu1 %v3105_v36 }
 0xfc5   :  { %v4714_v35 = vpop.eup %4713 }
 0xfc6   :  { %v3271_v15 = vsel %vm57_vm0, %v4714_v35, 0.0  ;;  %3536 = vrot.lane.b32.xlu0 %v5461_v9, %s4744_s22 }
 0xfc7   :  { %3272 = vadd.xlane.f32.xlu1 %v3271_v15 }
 0xfc9   :  { %v4716_v50 = vpop.eup %4715 }
 0xfca   :  { %v3436_v19 = vsel %vm57_vm0, %v4716_v50, 0.0  ;;  %3534 = vrot.lane.b32.xlu0 %v5477_v57, %s4744_s22 }
 0xfcb   :  { %3437 = vadd.xlane.f32.xlu1 %v3436_v19 }
 0xfdc   :  { %3111 = vrot.lane.b32.xlu1 %v2857_v7, %s4738_s15  ;;  %v3651_v7 = vld [vmem:[%s5760_s1 + $0x130] sm:$0xff] }
0x102c   :  { %v3277_v57 = vpop.permute.xlu0 %3276 }
0x1030   :  { %v3442_v11 = vpop.permute.xlu0 %3441 }
0x1034   :  { %v3539_v27 = vpop.permute.xlu0 %3538 }
0x1035   :  { %4590 = vmatpush3.msra.mxu0 %v3539_v27 }
0x1036   :  { %4591 = vmatprep.subr.mxu0 %v5772_v5 }
0x1038   :  { %v3537_v10 = vpop.permute.xlu0 %3536 }
0x1039   :  { %4592 = vmatpush3.msra.mxu0 %v3537_v10 }
0x103a   :  { %4593 = vmatprep.subr.mxu0 %v5772_v5 }
0x103c   :  { %v3535_v18 = vpop.permute.xlu0 %3534 }
0x103d   :  { %4594 = vmatpush3.msra.mxu0 %v3535_v18 }
0x103e   :  { %4595 = vmatprep.subr.mxu0 %v5772_v5 }
0x1048   :  { %v2945_v0 = vpop.xlane.xlu1 %2944 }
0x1049   :  { %4717 = vrcp.f32 %v2945_v0  ;;  %v3649_v0 = vld [vmem:[%s5760_s1 + $0x120] sm:$0xff] }
0x104c   :  { %v3107_v38 = vpop.xlane.xlu1 %3106 }
0x104d   :  { %4719 = vrcp.f32 %v3107_v38  ;;  %v3648_v38 = vld [vmem:[%s5760_s1 + $0x118] sm:$0xff] }
0x1050   :  { %v3273_v58 = vpop.xlane.xlu1 %3272 }
0x1051   :  { %4721 = vrcp.f32 %v3273_v58  ;;  %v3647_v58 = vld [vmem:[%s5760_s1 + $0x110] sm:$0xff] }
0x1054   :  { %v3438_v20 = vpop.xlane.xlu1 %3437 }
0x1055   :  { %4723 = vrcp.f32 %v3438_v20 }
0x1056   :  { %v4718_v33 = vpop.eup %4717 }
0x1057   :  { %v2947_v9 = vmul.f32 %v4718_v33, %v4710_v21 }
0x1058   :  { %v3112_v48 = vpop.permute.xlu1 %3111 }
0x1059   :  { %4557 = vmatmul.mubr.msk.f32.vlgmr.msra.gmra.mxu1 %vm57_vm0, %v2947_v9 }
0x105a   :  { %v4720_v4 = vpop.eup %4719  ;;  %4565 = vmatpush3.msra.mxu1 %v3112_v48  ;;  %4566 = vmatprep.mubr.msk.f32.mxu1 %vm4735_vm1, %v5772_v5 }
0x105b   :  { %4574 = vmatprep.subr.mxu1 %v5772_v5  ;;  %v3109_v55 = vmul.f32 %v4720_v4, %v4712_v24 }
0x105d   :  { %4567 = vmatmul.mubr.msk.f32.vlgmr.msra.gmra.mxu1 %vm57_vm0, %v3109_v55 }
0x105e   :  { %v4722_v31 = vpop.eup %4721  ;;  %4575 = vmatpush3.msra.mxu1 %v3277_v57  ;;  %4576 = vmatprep.mubr.msk.f32.mxu1 %vm4735_vm1, %v5772_v5 }
0x105f   :  { %4584 = vmatprep.subr.mxu1 %v5772_v5  ;;  %v3275_v13 = vmul.f32 %v4722_v31, %v4714_v35 }
0x1061   :  { %4577 = vmatmul.mubr.msk.f32.vlgmr.msra.gmra.mxu1 %vm57_vm0, %v3275_v13 }
0x1062   :  { %v4724_v46 = vpop.eup %4723  ;;  %4585 = vmatpush3.msra.mxu1 %v3442_v11  ;;  %4586 = vmatprep.mubr.msk.f32.mxu1 %vm4735_vm1, %v5772_v5 }
0x1063   :  { %v3440_v45 = vmul.f32 %v4724_v46, %v4716_v50  ;;  %4600 = vmatprep.subr.mxu1 %v5772_v5  ;;  %v4298_v46 = vld [vmem:[%s5760_s1 + $0x198] ss:$0 sm:$0xff] }
0x1065   :  { %4587 = vmatmul.mubr.msk.f32.vlgmr.msra.gmra.mxu1 %vm57_vm0, %v3440_v45 }
0x1066   :  { %4608 = vmatprep.mubr.msk.f32.mxu1 %vm4735_vm1, %v5772_v5 }
0x1119   :  { %v3017_v60 = vpop.f32.mrf.mxu1 }
0x111b   :  { %v4558_v25 = vpop.f32.mrf.mxu1 }
0x111c   :  { %v3840_v25 = vld [vmem:[%s5760_s1 + $0x170] sm:$0xff] }
0x111d   :  { %v3183_v44 = vpop.f32.mrf.mxu1 }
0x111e   :  { %3518 = vrot.lane.b32.xlu1 %v3183_v44, %s4745_s23  ;;  %v3839_v44 = vld [vmem:[%s5760_s1 + $0x168] sm:$0xff] }
0x111f   :  { %v4568_v53 = vpop.f32.mrf.mxu1 }
0x1120   :  { %v3838_v53 = vld [vmem:[%s5760_s1 + $0x160] sm:$0xff] }
0x1121   :  { %v3348_v41 = vpop.f32.mrf.mxu1 }
0x1122   :  { %3522 = vrot.lane.b32.xlu1 %v3348_v41, %s4746_s24  ;;  %v3837_v41 = vld [vmem:[%s5760_s1 + $0x158] sm:$0xff] }
0x1123   :  { %v4578_v56 = vpop.f32.mrf.mxu1 }
0x1125   :  { %v3513_v39 = vpop.f32.mrf.mxu1 }
0x1126   :  { %3532 = vrot.lane.b32.xlu1 %v5483_v3, %s4744_s22  ;;  %3526 = vrot.lane.b32.xlu0 %v3513_v39, %s4747_s25 }
0x1127   :  { %v4588_v62 = vpop.f32.mrf.mxu1 }
0x112a   :  { %3618 = vrot.lane.b32.xlu0 %v5496_v2, %s4744_s22 }
0x1190   :  { %v3519_v49 = vpop.permute.xlu1 %3518 }
0x1191   :  { %v3529_v61 = vsel %vm57_vm0, %v3017_v60, %v3519_v49 }
0x1194   :  { %v3523_v54 = vpop.permute.xlu1 %3522 }
0x1195   :  { %v3530_v47 = vsel %vm2374_vm3, %v3529_v61, %v3523_v54 }
0x1198   :  { %v3533_v37 = vpop.permute.xlu1 %3532  ;;  %v3527_v14 = vpop.permute.xlu0 %3526 }
0x1199   :  { %v3531_v34 = vsel %vm2376_vm4, %v3530_v47, %v3527_v14  ;;  %4596 = vmatpush3.msra.mxu0 %v3533_v37 }
0x119a   :  { %4598 = vmatmul.mubr.msk.f32.vlgmr.msra.gmra.mxu0 %vm1427_vm2, %v3531_v34  ;;  %4611 = vmatprep.subr.mxu0 %v5772_v5 }
0x119b   :  { %4627 = vmatprep.mubr.msk.f32.mxu0 %vm4735_vm1, %v5772_v5  ;;  %4612 = vmatpush3.msra.mxu0 %v3654_v59 }
0x119c   :  { %v3619_v2 = vpop.permute.xlu0 %3618  ;;  %4613 = vmatprep.subr.mxu0 %v5772_v5 }
0x125a   :  { %v3613_v3 = vpop.f32.mrf.mxu0 }
0x125b   :  { %v3617_v52 = vadd.f32 %v3613_v3, %v5447_v1  ;;  %v3646_v1 = vld [vmem:[%s5760_s1 + $0x108] sm:$0xff] }
0x125c   :  { %v4599_v23 = vpop.f32.mrf.mxu0  ;;  %4601 = vmatpush3.msra.mxu1 %v3646_v1  ;;  %v3841_v1 = vld [vmem:[%s5760_s1 + $0x178] sm:$0xff] }
0x125d   :  { %v5598_v51 = vadd.f32 %v3619_v2, %v3617_v52  ;;  %4602 = vmatprep.subr.mxu1 %v5772_v5  ;;  %v3844_v23 = vld [vmem:[%s5760_s1 + $0x190] sm:$0xff] }
0x125e   :  { %4603 = vmatpush3.msra.mxu1 %v3645_v8 }
0x125f   :  { %v3622_v12 = vsel %vm1427_vm2, %v5598_v51, 0.0  ;;  %4604 = vmatprep.subr.mxu1 %v5772_v5 }
0x1260   :  { %3623 = vadd.xlane.f32.xlu1 %v3622_v12  ;;  %4605 = vmatpush3.msra.mxu1 %v3644_v63 }
0x1261   :  { %4606 = vmatprep.subr.mxu1 %v5772_v5 }
0x1262   :  { %4607 = vmatpush3.msra.mxu1 %v3643_v42 }
0x1263   :  { %4630 = vmatprep.subr.mxu1 %v5772_v5 }
0x1271   :  { %3639 = vrot.lane.b32.xlu1 %v5470_v26, %s4744_s22 }
0x1275   :  { %3809 = vrot.lane.b32.xlu1 %v4295_v22, %s4737_s6 }
0x12e9   :  { %v3624_v30 = vpop.xlane.xlu1 %3623 }
0x12ea   :  { %v3625_v32 = vmul.f32 0.03125, %v3624_v30 }
0x12ec   :  { %v3626_v29 = vsub.f32 %v5598_v51, %v3625_v32 }
0x12ed   :  { %v3640_v15 = vpop.permute.xlu1 %3639 }
0x12ee   :  { %v3627_v16 = vmul.f32 %v3626_v29, %v3626_v29 }
0x12f0   :  { %v3628_v43 = vsel %vm1427_vm2, %v3627_v16, 0.0  ;;  %v3843_v16 = vld [vmem:[%s5760_s1 + $0x188] sm:$0xff] }
0x12f1   :  { %3629 = vadd.xlane.f32.xlu0 %v3628_v43  ;;  %v3810_v57 = vpop.permute.xlu1 %3809  ;;  %v3842_v43 = vld [vmem:[%s5760_s1 + $0x180] sm:$0xff] }
0x1307   :  { %3635 = vrot.lane.b32.xlu0 %v5470_v26, %s4737_s6  ;;  %v3653_v26 = vld [vmem:[%s5760_s1 + $0x140] sm:$0xff] }
0x1308   :  { %4614 = vmatpush3.msra.mxu0 %v3653_v26 }
0x1309   :  { %4615 = vmatprep.subr.mxu0 %v5772_v5 }
0x130a   :  { %4616 = vmatpush3.msra.mxu0 %v3652_v6  ;;  %v4301_v6 = vld [vmem:[%s5760_s1 + $0x199] ss:$0 sm:$0xff] }
0x130b   :  { %4617 = vmatprep.subr.mxu0 %v5772_v5 }
0x130c   :  { %4618 = vmatpush3.msra.mxu0 %v3651_v7 }
0x130d   :  { %4619 = vmatprep.subr.mxu0 %v5772_v5 }
0x130e   :  { %4620 = vmatpush3.msra.mxu0 %v3650_v28  ;;  %v4098_v28 = vld [vmem:[%s5761_s2 + $0x28] sm:$0xff] }
0x130f   :  { %4621 = vmatprep.subr.mxu0 %v5772_v5  ;;  %vm4100_vm8 = vcmp.gt.f32.partialorder %v4098_v28, 0.5 }
0x1310   :  { %4622 = vmatpush3.msra.mxu0 %v3649_v0 }
0x1311   :  { %4623 = vmatprep.subr.mxu0 %v5772_v5 }
0x1312   :  { %4624 = vmatpush3.msra.mxu0 %v3648_v38 }
0x1313   :  { %4625 = vmatprep.subr.mxu0 %v5772_v5 }
0x1314   :  { %4626 = vmatpush3.msra.mxu0 %v3647_v58  ;;  %v4126_v58 = vld [vmem:[%s5761_s2 + $0x48] sm:$0xff] }
0x1315   :  { %4652 = vmatprep.subr.mxu0 %v5772_v5 }
0x137a   :  { %v3630_v40 = vpop.xlane.xlu0 %3629 }
0x137b   :  { %v3631_v21 = vmul.f32 0.03125, %v3630_v40 }
0x137d   :  { %v3632_v17 = vadd.f32 1e-05, %v3631_v21  ;;  %v4099_v21 = vld [vmem:[%s5761_s2 + $0x30] sm:$0xff] }
0x137e   :  { %v3636_v36 = vpop.permute.xlu0 %3635  ;;  %vm4101_vm9 = vcmp.gt.f32.partialorder %v4099_v21, 0.5 }
0x137f   :  { %4725 = vrsqrt.f32 %v3632_v17 }
0x138c   :  { %v4726_v24 = vpop.eup %4725 }
0x138d   :  { %v3634_v35 = vmul.f32 %v4726_v24, %v3626_v29 }
0x138f   :  { %v3638_v50 = vmul.f32 %v3636_v36, %v3634_v35 }
0x1391   :  { %v3642_v19 = vadd.f32 %v3640_v15, %v3638_v50 }
0x1393   :  { %4609 = vmatmul.mubr.msk.f32.vlgmr.msra.gmra.mxu1 %vm1427_vm2, %v3642_v19  ;;  %v4124_v19 = vld [vmem:[%s5761_s2] sm:$0xff] }
0x1394   :  { %4638 = vmatprep.mubr.msk.f32.mxu1 %vm4735_vm1, %v5772_v5  ;;  %4631 = vmatpush3.msra.mxu1 %v3840_v25 }
0x1395   :  { %4632 = vmatprep.subr.mxu1 %v5772_v5 }
0x1396   :  { %4633 = vmatpush3.msra.mxu1 %v3839_v44 }
0x1397   :  { %4634 = vmatprep.subr.mxu1 %v5772_v5 }
0x1398   :  { %4635 = vmatpush3.msra.mxu1 %v3838_v53 }
0x1399   :  { %4636 = vmatprep.subr.mxu1 %v5772_v5 }
0x139a   :  { %4637 = vmatpush3.msra.mxu1 %v3837_v41 }
0x139b   :  { %4641 = vmatprep.subr.mxu1 %v5772_v5 }
0x1453   :  { %v3729_v20 = vpop.f32.mrf.mxu1 }
0x1454   :  { %v3730_v33 = vadd.f32 %v4295_v22, %v3729_v20 }
0x1455   :  { %v4610_v9 = vpop.f32.mrf.mxu1 }
0x1456   :  { %v3733_v48 = vmax.f32 %v3730_v33, 0.0  ;;  %v4097_v9 = vld [vmem:[%s5761_s2 + $0x20] sm:$0xff] }
0x1458   :  { %4628 = vmatmul.mubr.msk.f32.vlgmr.msra.gmra.mxu0 %vm2580_vm5, %v3733_v48 }
0x1459   :  { %4660 = vmatprep.mubr.msk.f32.mxu0 %vm4735_vm1, %v5772_v5  ;;  %4653 = vmatpush3.msra.mxu0 %v3844_v23 }
0x145a   :  { %4654 = vmatprep.subr.mxu0 %v5772_v5 }
0x145b   :  { %4655 = vmatpush3.msra.mxu0 %v3843_v16 }
0x145c   :  { %4656 = vmatprep.subr.mxu0 %v5772_v5 }
0x145d   :  { %4657 = vmatpush3.msra.mxu0 %v3842_v43 }
0x145e   :  { %4658 = vmatprep.subr.mxu0 %v5772_v5 }
0x145f   :  { %4659 = vmatpush3.msra.mxu0 %v3841_v1 }
0x1518   :  { %v3803_v4 = vpop.f32.mrf.mxu0 }
0x1519   :  { %v3807_v55 = vadd.f32 %v3803_v4, %v5598_v51  ;;  %v4750_v4 = vmov 0  }
0x151a   :  { %v4629_v31 = vpop.f32.mrf.mxu0  ;;  %4686 = vset.pattern.permute.xlu0 %v4750_v4  ;;  %4685 = vset.pattern.permute.xlu1 %v4750_v4 }
0x151b   :  { %v3812_v13 = vadd.f32 %v3810_v57, %v3807_v55  ;;  %v4115_v57 = vld [vmem:[%s5761_s2 + $0x18] sm:$0xff]  ;;  %v4114_v55 = vld [vmem:[%s5761_s2 + $0x10] sm:$0xff] }
0x151d   :  { %v3814_v11 = vsel %vm1427_vm2, %v3812_v13, 0.0 }
0x151e   :  { %3815 = vadd.xlane.f32.xlu0 %v3814_v11 }
0x1534   :  { %3833 = vrot.lane.b32.xlu0 %v4298_v46, %s4736_s28 }
0x1538   :  { %3846 = vrot.lane.b32.xlu0 %v4298_v46, %s4737_s6 }
0x153c   :  { %3931 = vrot.lane.b32.xlu0 %v3838_v53, %s4736_s28 }
0x1540   :  { %3941 = vrot.lane.b32.xlu0 %v4298_v46, %s4744_s22 }
0x15a7   :  { %v3816_v45 = vpop.xlane.xlu0 %3815 }
0x15a8   :  { %v3817_v27 = vmul.f32 0.03125, %v3816_v45 }
0x15aa   :  { %v3818_v10 = vsub.f32 %v3812_v13, %v3817_v27 }
0x15ab   :  { %v3834_v47 = vpop.permute.xlu0 %3833 }
0x15ac   :  { %v3819_v18 = vmul.f32 %v3818_v10, %v3818_v10 }
0x15ae   :  { %v3820_v60 = vsel %vm1427_vm2, %v3819_v18, 0.0 }
0x15af   :  { %3821 = vadd.xlane.f32.xlu1 %v3820_v60  ;;  %v3847_v3 = vpop.permute.xlu0 %3846  ;;  %v4125_v60 = vld [vmem:[%s5761_s2 + $0x8] sm:$0xff] }
0x15b3   :  { %v3932_v2 = vpop.permute.xlu0 %3931 }
0x15b7   :  { %v3942_v8 = vpop.permute.xlu0 %3941 }
0x15c0   :  { %3935 = vrot.lane.b32.xlu1 %v3840_v25, %s4736_s28 }
0x15c4   :  { %3933 = vrot.lane.b32.xlu1 %v3839_v44, %s4736_s28 }
0x15c8   :  { %3929 = vrot.lane.b32.xlu1 %v3837_v41, %s4736_s28 }
0x1638   :  { %v3822_v56 = vpop.xlane.xlu1 %3821 }
0x1639   :  { %v3823_v39 = vmul.f32 0.03125, %v3822_v56 }
0x163b   :  { %v3824_v62 = vadd.f32 1e-05, %v3823_v39 }
0x163c   :  { %v3936_v61 = vpop.permute.xlu1 %3935 }
0x163d   :  { %4727 = vrsqrt.f32 %v3824_v62  ;;  %v4134_v62 = vsel %vm4133_vm10, %v4126_v58, 0.0 }
0x163e   :  { %4729 = vrcp.f32 %v4115_v57 }
0x1640   :  { %v3934_v34 = vpop.permute.xlu1 %3933 }
0x1644   :  { %v3930_v52 = vpop.permute.xlu1 %3929 }
0x164a   :  { %v4728_v49 = vpop.eup %4727 }
0x164b   :  { %v3826_v54 = vmul.f32 %v4728_v49, %v3818_v10  ;;  %v4730_v27 = vpop.eup %4729  ;;  %v4135_v49 = vrot.slane %v4134_v62, 4 }
0x164d   :  { %v3831_v37 = vmul.f32 %v4298_v46, %v3826_v54  ;;  %v4136_v54 = vadd.f32 %v4135_v49, %v4134_v62 }
0x164f   :  { %v3836_v14 = vadd.f32 %v3834_v47, %v3831_v37 }
0x1651   :  { %4639 = vmatmul.mubr.msk.f32.vlgmr.msra.gmra.mxu1 %vm1427_vm2, %v3836_v14 }
0x1652   :  { %4642 = vmatpush3.msra.mxu1 %v3936_v61  ;;  %4649 = vmatprep.mubr.msk.f32.mxu1 %vm4735_vm1, %v5772_v5  ;;  %v4137_v61 = vrot.slane %v4136_v54, 2 }
0x1653   :  { %4643 = vmatprep.subr.mxu1 %v5772_v5 }
0x1654   :  { %4644 = vmatpush3.msra.mxu1 %v3934_v34  ;;  %v4138_v47 = vadd.f32 %v4137_v61, %v4136_v54 }
0x1655   :  { %4645 = vmatprep.subr.mxu1 %v5772_v5 }
0x1656   :  { %4646 = vmatpush3.msra.mxu1 %v3932_v2  ;;  %v4139_v37 = vrot.slane %v4138_v47, 1 }
0x1657   :  { %4647 = vmatprep.subr.mxu1 %v5772_v5 }
0x1658   :  { %4648 = vmatpush3.msra.mxu1 %v3930_v52  ;;  %v4140_v14 = vadd.f32 %v4139_v37, %v4138_v47 }
0x165a   :  { %v4141_v34 = vadd.f32 1e-08, %v4140_v14 }
0x165c   :  { %4731 = vrcp.f32 %v4141_v34 }
0x1669   :  { %v4732_v16 = vpop.eup %4731 }
0x1711   :  { %v3918_v51 = vpop.f32.mrf.mxu1 }
0x1712   :  { %v3919_v12 = vadd.f32 %v3918_v51, %v3847_v3 }
0x1713   :  { %v4640_v30 = vpop.f32.mrf.mxu1 }
0x1714   :  { %vm3922_vm6 = vcmp.ge.f32.partialorder %v3919_v12, 0.0  ;;  %v3923_v32 = vmul.f32 0.01, %v3919_v12 }
0x1716   :  { %v3924_v29 = vsel %vm3922_vm6, %v3919_v12, %v3923_v32 }
0x1717   :  { %4650 = vmatmul.mubr.msk.f32.vlgmr.msra.gmra.mxu1 %vm1427_vm2, %v3924_v29 }
0x17d7   :  { %v4013_v63 = vpop.f32.mrf.mxu1 }
0x17d8   :  { %v4014_v42 = vadd.f32 %v4013_v63, %v3942_v8 }
0x17d9   :  { %v4651_v59 = vpop.f32.mrf.mxu1 }
0x17da   :  { %vm4017_vm7 = vcmp.ge.f32.partialorder %v4014_v42, 0.0  ;;  %v4018_v26 = vmul.f32 0.01, %v4014_v42 }
0x17dc   :  { %v4019_v22 = vsel %vm4017_vm7, %v4014_v42, %v4018_v26 }
0x17dd   :  { %4661 = vmatmul.mubr.msk.f32.vlgmr.msra.gmra.mxu0 %vm1427_vm2, %v4019_v22 }
0x189d   :  { %v4093_v7 = vpop.f32.mrf.mxu0 }
0x189e   :  { %v4094_v5 = vadd.f32 %v4301_v6, %v4093_v7 }
0x189f   :  { %v4662_v40 = vpop.f32.mrf.mxu0 }
0x18a0   :  { %v4102_v17 = vmul.f32 0.0001, %v4094_v5  ;;  %v4104_v36 = vmul.f32 100.0, %v4094_v5 }
0x18a2   :  { %v4103_v24 = vadd.f32 0.4, %v4102_v17 }
0x18a4   :  { %v4105_v35 = vsel %vm4100_vm8, %v4103_v24, %v4104_v36 }
0x18a5   :  { %v4106_v15 = vsel %vm4101_vm9, %v4105_v35, 0.0 }
0x18a6   :  { %v4107_v50 = vsel %vm4100_vm8, %v4106_v15, 0.0  ;;  %4122 = vst [vmem:[%s5762_s3] sm:$0xff] %v4106_v15  ;;  %v4127_v0 = vsub.f32 %v4106_v15, %v4124_v19  ;;  %v4116_v46 = vsub.f32 %v4106_v15, %v4114_v55 }
0x18a7   :  { %4111 = vrot.lane.b32.xlu0 %v4107_v50, %s4748_s17  ;;  %4108 = vrot.lane.b32.xlu1 %v4107_v50, %s4749_s18 }
0x18a8   :  { %v4129_v38 = vmul.f32 %v4127_v0, %v4127_v0 }
0x18aa   :  { %v4130_v20 = vmul.f32 %v4129_v38, %v4126_v58 }
0x18ac   :  { %v4155_v33 = vmul.f32 %v4130_v20, %v4098_v28  ;;  %v4144_v48 = vmul.f32 %v4130_v20, %v4097_v9 }
0x18c6   :  { %4156 = vadd.xlane.f32.xlu0 %v4155_v33 }
0x18cb   :  { %4145 = vadd.xlane.f32.xlu1 %v4144_v48 }
0x1919   :  { %v4109_v31 = vpop.permute.xlu1 %4108  ;;  %v4112_v11 = vpop.permute.xlu0 %4111 }
0x191a   :  { %v4110_v13 = vadd.f32 %v4109_v31, %v4107_v50  ;;  %v4178_v50 = vlaneseq }
0x191c   :  { %v4113_v45 = vadd.f32 %v4112_v11, %v4110_v13  ;;  %v4179_v19 = vand.u32 127, %v4178_v50 }
0x191e   :  { %v4117_v10 = vmul.f32 %v4116_v46, %v4113_v45  ;;  %vm4180_vm11 = vcmp.eq.s32.totalorder %v4179_v19, 0  ;;  %vm4187_vm12 = vcmp.eq.s32.totalorder %v4179_v19, 1  ;;  %vm4195_vm13 = vcmp.eq.s32.totalorder %v4179_v19, 2 }
0x191f   :  { %vm4203_vm14 = vcmp.eq.s32.totalorder %v4179_v19, 3 }
0x1920   :  { %v4119_v18 = vmul.f32 %v4730_v27, %v4117_v10 }
0x1922   :  { %v4120_v25 = vsel %vm4100_vm8, %v4106_v15, %v4119_v18 }
0x1923   :  { %v4121_v44 = vsel %vm4101_vm9, %v4120_v25, 0.0 }
0x1924   :  { %v4128_v53 = vsub.f32 %v4121_v44, %v4125_v60  ;;  %4123 = vst [vmem:[%s5763_s4] sm:$0xff] %v4121_v44 }
0x1926   :  { %v4131_v41 = vmul.f32 %v4128_v53, %v4128_v53 }
0x1928   :  { %v4132_v56 = vmul.f32 %v4131_v41, %v4126_v58 }
0x192a   :  { %v4166_v39 = vmul.f32 %v4132_v56, %v4099_v21 }
0x192c   :  { %4167 = vadd.xlane.f32.xlu0 %v4166_v39 }
0x194f   :  { %v4157_v3 = vpop.xlane.xlu0 %4156 }
0x1950   :  { %v4158_v2 = vrot.slane %v4157_v3, 4 }
0x1952   :  { %v4159_v52 = vadd.f32 %v4158_v2, %v4157_v3 }
0x1954   :  { %v4160_v23 = vrot.slane %v4159_v52, 2  ;;  %v4146_v51 = vpop.xlane.xlu1 %4145 }
0x1955   :  { %v4147_v12 = vrot.slane %v4146_v51, 4 }
0x1956   :  { %v4161_v30 = vadd.f32 %v4160_v23, %v4159_v52 }
0x1957   :  { %v4148_v32 = vadd.f32 %v4147_v12, %v4146_v51 }
0x1958   :  { %v4162_v29 = vrot.slane %v4161_v30, 1 }
0x1959   :  { %v4149_v43 = vrot.slane %v4148_v32, 2 }
0x195a   :  { %v4163_v1 = vadd.f32 %v4162_v29, %v4161_v30 }
0x195b   :  { %v4150_v8 = vadd.f32 %v4149_v43, %v4148_v32 }
0x195c   :  { %v4164_v63 = vmul.f32 %v4732_v16, %v4163_v1 }
0x195d   :  { %v4151_v42 = vrot.slane %v4150_v8, 1 }
0x195e   :  { %v4165_v59 = vmul.f32 0.04761905, %v4164_v63 }
0x195f   :  { %v4152_v26 = vadd.f32 %v4151_v42, %v4150_v8 }
0x1960   :  { %4190 = vperm.xlu0 %4686, %v4165_v59  }
0x1961   :  { %v4153_v22 = vmul.f32 %v4732_v16, %v4152_v26 }
0x1963   :  { %v4154_v6 = vmul.f32 0.023809524, %v4153_v22 }
0x1965   :  { %4183 = vperm.xlu1 %4685, %v4154_v6   ;;  %v4177_v7 = vadd.f32 %v4165_v59, %v4154_v6 }
0x19b5   :  { %v4168_v5 = vpop.xlane.xlu0 %4167 }
0x19b6   :  { %v4169_v28 = vrot.slane %v4168_v5, 4 }
0x19b8   :  { %v4170_v40 = vadd.f32 %v4169_v28, %v4168_v5 }
0x19ba   :  { %v4171_v21 = vrot.slane %v4170_v40, 2 }
0x19bc   :  { %v4172_v17 = vadd.f32 %v4171_v21, %v4170_v40 }
0x19be   :  { %v4173_v24 = vrot.slane %v4172_v17, 1 }
0x19c0   :  { %v4174_v36 = vadd.f32 %v4173_v24, %v4172_v17 }
0x19c2   :  { %v4175_v35 = vmul.f32 %v4732_v16, %v4174_v36 }
0x19c4   :  { %v4176_v15 = vmul.f32 0.015873017, %v4175_v35 }
0x19c6   :  { %4198 = vperm.xlu1 %4685, %v4176_v15  }
0x19ca   :  { %4206 = vperm.xlu1 %4685, %v4177_v7  }
0x19db   :  { %v4191_v38 = vpop.permute.xlu0 %4190 }
0x19dc   :  { %v4193_v33 = vsel %vm4187_vm12, %v4191_v38, 0.0 }
0x19e0   :  { %v4184_v0 = vpop.permute.xlu1 %4183 }
0x19e1   :  { %v4186_v58 = vsel %vm4180_vm11, %v4184_v0, 0.0 }
0x19e2   :  { %v4194_v48 = vadd.f32 %v4193_v33, %v4186_v58 }
0x1a41   :  { %v4199_v20 = vpop.permute.xlu1 %4198 }
0x1a42   :  { %v4201_v9 = vsel %vm4195_vm13, %v4199_v20, 0.0 }
0x1a43   :  { %v4202_v4 = vadd.f32 %v4201_v9, %v4194_v48 }
0x1a45   :  { %v4207_v57 = vpop.permute.xlu1 %4206 }
0x1a46   :  { %v4209_v55 = vsel %vm4203_vm14, %v4207_v57, 0.0 }
0x1a47   :  { %v4210_v31 = vadd.f32 %v4209_v55, %v4202_v4 }
0x1a49   :  { %4211 = vst [vmem:[%s5764_s5] sm:$0x1] %v4210_v31 }

</bundles_post_ra>
